<compile_context>
chip_gen: v5e
topology: v5e:2x2
jax: 0.10.0
libtpu: 0.0.40
codegen_flags: <defaults>
</compile_context>

<pallas_src>
import jax
import jax.numpy as jnp
from jax.experimental import pallas as pl
from jax.experimental.pallas import tpu as pltpu

# conf.WINDOW_GIVEN / conf.WINDOW_PREDICT from the original module.
WINDOW_GIVEN = 16
WINDOW_PREDICT = 8

# bf16 MXU operands on all generations; accumulation and elementwise stay f32.
MATMUL_DTYPE = jnp.bfloat16


def _mm(a, w):
    """MXU matmul: operands cast to the (bf16) weight dtype, f32 accumulation."""
    return jnp.dot(a.astype(w.dtype), w, preferred_element_type=jnp.float32)


def attention_decoder_kernel(enc_ref, ctx_ref, pred_ref, wstack_ref, bstack_ref,
                             out_ref):
    # enc_ref:    (Bb, W, H)  encoder_outs, native layout (no wrapper transpose)
    # ctx_ref:    (Bb, H)     context
    # pred_ref:   (Bb, P, F)  predict, native layout
    # wstack_ref: (8, H, 4H)  bf16 weight slabs (see pack_params for order)
    # bstack_ref: (8, 4H)     f32 bias rows
    # out_ref:    (Bb, F)
    Bb, W, H = enc_ref.shape
    P, F = pred_ref.shape[1], pred_ref.shape[2]

    # ---- unpack the stacked weight / bias slabs (static slices only) -------
    w_ext    = wstack_ref[0][:F, :H]      # (F, H)
    w_attn_x = wstack_ref[1][:, :W]       # (H, W)   attn rows acting on inp
    w_attn_c = wstack_ref[2][:, :W]       # (H, W)   attn rows acting on context
    w_comb_x = wstack_ref[3][:, :H]       # (H, H)   combine rows acting on inp
    w_comb_a = wstack_ref[4][:, :H]       # (H, H)   combine rows on attn_applied
    w_ih     = wstack_ref[5]              # (H, 4H)  g-gate columns pre-scaled x2
    w_hh     = wstack_ref[6]              # (H, 4H)  g-gate columns pre-scaled x2
    w_out    = wstack_ref[7][:, :F]       # (H, F)

    biases = bstack_ref[...]
    b_ext  = biases[0:1, :H]
    b_attn = biases[1:2, :W]
    b_comb = biases[2:3, :H]
    b_gate = biases[3:4, :]               # (1, 4H) = b_ih + b_hh, g part x2
    b_out  = biases[4:5, :F]

    context = ctx_ref[...]                # (Bb, H) f32
    enc = enc_ref[...]                    # (Bb, W, H) f32

    # ---- hoisted, carry-independent work, batched over all P steps ---------
    x = pred_ref[...].reshape(Bb * P, F)                       # (Bb*P, F)

    # inp = extend(predict[idx]) for all steps at once
    inp = _mm(x, w_ext) + b_ext                                # (Bb*P, H)

    # attention scores: cat(inp, context) @ W_attn.T + b
    #   = inp @ W_x + (context @ W_c + b)   (context term is loop-invariant)
    ctx_score = _mm(context, w_attn_c) + b_attn                # (Bb, W)
    scores = _mm(inp, w_attn_x).reshape(Bb, P, W) + ctx_score[:, None, :]

    # softmax over the window axis (lanes)
    scores = scores - jnp.max(scores, axis=-1, keepdims=True)
    e = jnp.exp(scores)
    attn_w = e / jnp.sum(e, axis=-1, keepdims=True)            # (Bb, P, W)

    # attn_applied = bmm(attn_w, encoder_outs): one batched MXU matmul over B
    # (no padded broadcast intermediate, encoder stays in native layout).
    attn_applied = jnp.einsum(
        'bpw,bwh->bph',
        attn_w.astype(MATMUL_DTYPE), enc.astype(MATMUL_DTYPE),
        preferred_element_type=jnp.float32)                    # (Bb, P, H)

    # attn_combine = relu(cat(inp, attn_applied) @ W_comb.T + b)
    comb = (_mm(inp, w_comb_x)
            + _mm(attn_applied.reshape(Bb * P, H), w_comb_a)
            + b_comb)
    comb = jnp.maximum(comb, 0.0)                              # (Bb*P, H)

    # input half of the LSTM gates; both gate biases folded, g columns doubled
    gates_x = (_mm(comb, w_ih) + b_gate).reshape(Bb, P, 4 * H)

    # ---- recurrence: only h @ W_hh + elementwise remains --------------------
    # Fully unrolled (small static trip count). Per step: one MXU matmul and
    # two EUP pushes (sigmoid over all gates, tanh(c)); the g-gate tanh is
    # recovered on the VPU as 2*sigmoid(2x) - 1 (weights pre-scaled by 2).
    h_i = context
    c_i = jnp.zeros_like(context)
    for idx in range(P):
        gates = gates_x[:, idx, :] + _mm(h_i, w_hh)            # (Bb, 4H)
        sg = jax.nn.sigmoid(gates)                             # single EUP pass
        i_g = sg[:, 0 * H:1 * H]
        f_g = sg[:, 1 * H:2 * H]
        g_g = 2.0 * sg[:, 2 * H:3 * H] - 1.0                   # tanh via sigmoid
        o_g = sg[:, 3 * H:4 * H]
        c_i = f_g * c_i + i_g * g_g
        h_i = o_g * jnp.tanh(c_i)

    # return self.out(h_i)
    out_ref[...] = _mm(h_i, w_out) + b_out


def pack_params(params):
    """One-time packing of torch-shaped params into two tile-aligned stacks:
    wstack (8, H, 4H) bf16 and bstack (8, 4H) f32. Weights are transposed to
    (in, out), the concatenated attn / attn_combine weights are pre-split,
    b_ih + b_hh are folded, and the g-gate columns are pre-scaled by 2 for the
    tanh(x) = 2*sigmoid(2x) - 1 rewrite."""
    H = params['w_hh'].shape[1]
    F = params['w_ext'].shape[1]
    W = params['w_attn'].shape[0]
    assert H % 32 == 0, "slab shape (H, 4H) must be (8,128)-tile aligned"
    assert F <= H and W <= 4 * H

    rows, cols = H, 4 * H

    def slab(w_t):  # w_t: (K, N), already (in, out)
        s = jnp.zeros((rows, cols), jnp.float32)
        return s.at[:w_t.shape[0], :w_t.shape[1]].set(w_t.astype(jnp.float32))

    def brow(b):
        r = jnp.zeros((cols,), jnp.float32)
        return r.at[:b.shape[0]].set(b.astype(jnp.float32))

    w_attn_t = params['w_attn'].T          # (2H, W)
    w_comb_t = params['w_comb'].T          # (2H, H)
    w_ih_t = params['w_ih'].T              # (H, 4H)
    w_hh_t = params['w_hh'].T              # (H, 4H)

    # Pre-scale the g-gate (tanh) columns by 2 (exact in bf16: exponent shift).
    gscale = jnp.ones((4 * H,), jnp.float32).at[2 * H:3 * H].set(2.0)
    w_ih_t = w_ih_t * gscale[None, :]
    w_hh_t = w_hh_t * gscale[None, :]
    b_gate = (params['b_ih'] + params['b_hh']) * gscale

    wstack = jnp.stack([
        slab(params['w_ext'].T),           # 0: (F, H)
        slab(w_attn_t[:H]),                # 1: (H, W)   inp rows
        slab(w_attn_t[H:]),                # 2: (H, W)   context rows
        slab(w_comb_t[:H]),                # 3: (H, H)   inp rows
        slab(w_comb_t[H:]),                # 4: (H, H)   attn_applied rows
        slab(w_ih_t),                      # 5: (H, 4H)
        slab(w_hh_t),                      # 6: (H, 4H)
        slab(params['w_out'].T),           # 7: (H, F)
    ]).astype(MATMUL_DTYPE)                # (8, H, 4H) bf16

    zero = jnp.zeros((cols,), jnp.float32)
    bstack = jnp.stack([
        brow(params['b_ext']),             # 0
        brow(params['b_attn']),            # 1
        brow(params['b_comb']),            # 2
        brow(b_gate),                      # 3
        brow(params['b_out']),             # 4
        zero, zero, zero,                  # pad to 8 rows (sublane tile)
    ])                                     # (8, 4H) f32

    return dict(wstack=wstack, bstack=bstack)


def attention_decoder_forward(packed, encoder_outs, context, predict,
                              *, batch_block=None):
    """Pallas wrapper. `packed` comes from pack_params(); data args follow the
    torch forward() signature (encoder_outs (B,W,H), context (B,H),
    predict (B,P,F)). No wrapper-side transposes.

    batch_block: optional batch tile size (must divide B; multiple of 8 unless
    equal to B). With large batched calls this adds a "parallel" grid axis so
    v7x's second TensorCore is used."""
    B, W, H = encoder_outs.shape
    P, F = predict.shape[1], predict.shape[2]
    assert context.shape == (B, H)

    bb = B if batch_block is None else batch_block
    assert B % bb == 0 and (bb == B or bb % 8 == 0)
    grid = (B // bb,)

    args = (
        encoder_outs.astype(jnp.float32),
        context.astype(jnp.float32),
        predict.astype(jnp.float32),
        packed['wstack'],
        packed['bstack'],
    )

    return pl.pallas_call(
        attention_decoder_kernel,
        out_shape=jax.ShapeDtypeStruct((B, F), jnp.float32),
        grid=grid,
        in_specs=[
            pl.BlockSpec((bb, W, H), lambda i: (i, 0, 0)),
            pl.BlockSpec((bb, H), lambda i: (i, 0)),
            pl.BlockSpec((bb, P, F), lambda i: (i, 0, 0)),
            pl.BlockSpec(packed['wstack'].shape, lambda i: (0, 0, 0)),
            pl.BlockSpec(packed['bstack'].shape, lambda i: (0, 0)),
        ],
        out_specs=pl.BlockSpec((bb, F), lambda i: (i, 0)),
        compiler_params=pltpu.CompilerParams(
            dimension_semantics=("parallel",)),
    )(*args)


def init_params(key, n_hiddens, n_features):
    """Deterministic synthetic params matching the torch module's shapes."""
    H, F, W = n_hiddens, n_features, WINDOW_GIVEN
    ks = jax.random.split(key, 12)

    def u(k, shape, fan_in):
        bound = 1.0 / (fan_in ** 0.5)
        return jax.random.uniform(k, shape, jnp.float32, -bound, bound)

    return dict(
        w_ext=u(ks[0], (H, F), F),          b_ext=u(ks[1], (H,), F),
        w_attn=u(ks[2], (W, 2 * H), 2 * H), b_attn=u(ks[3], (W,), 2 * H),
        w_comb=u(ks[4], (H, 2 * H), 2 * H), b_comb=u(ks[5], (H,), 2 * H),
        w_ih=u(ks[6], (4 * H, H), H),       b_ih=u(ks[7], (4 * H,), H),
        w_hh=u(ks[8], (4 * H, H), H),       b_hh=u(ks[9], (4 * H,), H),
        w_out=u(ks[10], (F, H), H),         b_out=u(ks[11], (F,), H),
    )


def _reference_core(params, encoder_outs, context, predict, mm, ein):
    """Torch-order reference loop; mm(a, w_torch_shaped) and ein(aw, enc)
    parameterize the matmul precision."""
    h = context
    c = jnp.zeros_like(context)
    P = predict.shape[1]
    for idx in range(P):
        xi = predict[:, idx, :]
        inp = mm(xi, params['w_ext']) + params['b_ext']
        scores = mm(jnp.concatenate([inp, context], axis=1), params['w_attn']) \
            + params['b_attn']
        aw = jax.nn.softmax(scores, axis=1)
        applied = ein(aw, encoder_outs)
        comb = jax.nn.relu(
            mm(jnp.concatenate([inp, applied], axis=1), params['w_comb'])
            + params['b_comb'])
        gates = (mm(comb, params['w_ih']) + params['b_ih']
                 + mm(h, params['w_hh']) + params['b_hh'])
        i_g, f_g, g_g, o_g = jnp.split(gates, 4, axis=1)
        c = jax.nn.sigmoid(f_g) * c + jax.nn.sigmoid(i_g) * jnp.tanh(g_g)
        h = jax.nn.sigmoid(o_g) * jnp.tanh(c)
    return mm(h, params['w_out']) + params['b_out']


def reference_forward_f32(params, encoder_outs, context, predict):
    """Pure-f32 replica of the torch forward() (Precision.HIGHEST)."""
    hi = jax.lax.Precision.HIGHEST
    mm = lambda a, w: jnp.dot(a, w.T, precision=hi)
    ein = lambda aw, enc: jnp.einsum('bw,bwh->bh', aw, enc, precision=hi)
    return _reference_core(params, encoder_outs, context, predict, mm, ein)


def reference_forward_bf16(params, encoder_outs, context, predict):
    """Reference with matmul operands rounded to bf16 and f32 accumulation,
    matching the kernel's MXU precision (tight correctness baseline)."""
    bf = jnp.bfloat16
    mm = lambda a, w: jnp.dot(a.astype(bf), w.T.astype(bf),
                              preferred_element_type=jnp.float32)
    ein = lambda aw, enc: jnp.einsum('bw,bwh->bh', aw.astype(bf),
                                     enc.astype(bf),
                                     preferred_element_type=jnp.float32)
    return _reference_core(params, encoder_outs, context, predict, mm, ein)


if __name__ == "__main__":
    B, H, F = 8, 32, 8  # batch, n_hiddens, n_features

    key = jax.random.PRNGKey(0)
    k_params, k_enc, k_ctx, k_pred = jax.random.split(key, 4)

    params = init_params(k_params, H, F)
    packed = pack_params(params)   # one-time weight packing, not per call

    encoder_outs = jax.random.normal(k_enc, (B, WINDOW_GIVEN, H), jnp.float32)
    context = jax.random.normal(k_ctx, (B, H), jnp.float32)
    predict = jax.random.normal(k_pred, (B, WINDOW_PREDICT, F), jnp.float32)

    out = attention_decoder_forward(packed, encoder_outs, context, predict)
    out = jax.block_until_ready(out)
    assert out.shape == (B, F)

    # Tight check vs. a reference with identical (bf16-operand) matmul precision.
    ref_bf16 = reference_forward_bf16(params, encoder_outs, context, predict)
    err_b = jnp.max(jnp.abs(out - ref_bf16))
    assert jnp.allclose(out, ref_bf16, atol=5e-3, rtol=5e-3), \
        f"bf16-matched reference mismatch, max abs err {err_b}"

    # Looser sanity check vs. the pure-f32 reference (bf16 operand rounding).
    ref_f32 = reference_forward_f32(params, encoder_outs, context, predict)
    err_a = jnp.max(jnp.abs(out - ref_f32))
    assert jnp.allclose(out, ref_f32, atol=6e-2, rtol=6e-2), \
        f"f32 reference mismatch, max abs err {err_a}"

    print("KERNEL_OK")
</pallas_src>

<mosaic_0001>
module attributes {stable_mosaic.version = 11 : i64} {
  func.func @attention_decoder_kernel(%arg0: i32, %arg1: memref<8x16x32xf32, #tpu.memory_space<vmem>>, %arg2: memref<8x32xf32, #tpu.memory_space<vmem>>, %arg3: memref<8x8x8xf32, #tpu.memory_space<vmem>>, %arg4: memref<8x32x128xbf16, #tpu.memory_space<vmem>>, %arg5: memref<8x128xf32, #tpu.memory_space<vmem>>, %arg6: memref<8x8xf32, #tpu.memory_space<vmem>>) attributes {dimension_semantics = [#tpu.dimension_semantics<parallel>], iteration_bounds = array<i64: 1>, scalar_prefetch = 0 : i64, scratch_operands = 0 : i64, tpu.core_type = #tpu.core_type<tc>, window_params = [{transform_indices = @transform_0, window_bounds = array<i64: 8, 16, 32>}, {transform_indices = @transform_1, window_bounds = array<i64: 8, 32>}, {transform_indices = @transform_2, window_bounds = array<i64: 8, 8, 8>}, {pipeline_mode = #tpu.pipeline_mode<synchronous>, transform_indices = @transform_3, window_bounds = array<i64: 8, 32, 128>}, {pipeline_mode = #tpu.pipeline_mode<synchronous>, transform_indices = @transform_4, window_bounds = array<i64: 8, 128>}, {transform_indices = @transform_5, window_bounds = array<i64: 8, 8>}]} {
    %c0 = arith.constant 0 : index
    %c0_0 = arith.constant 0 : index
    %c0_1 = arith.constant 0 : index
    %0 = vector.load %arg4[%c0, %c0_0, %c0_1] : memref<8x32x128xbf16, #tpu.memory_space<vmem>>, vector<1x32x128xbf16>
    %1 = vector.shape_cast %0 : vector<1x32x128xbf16> to vector<32x128xbf16>
    %2 = vector.extract_strided_slice %1 {offsets = [0, 0], sizes = [8, 32], strides = [1, 1]} : vector<32x128xbf16> to vector<8x32xbf16>
    %c1 = arith.constant 1 : index
    %c0_2 = arith.constant 0 : index
    %c0_3 = arith.constant 0 : index
    %3 = vector.load %arg4[%c1, %c0_2, %c0_3] : memref<8x32x128xbf16, #tpu.memory_space<vmem>>, vector<1x32x128xbf16>
    %4 = vector.shape_cast %3 : vector<1x32x128xbf16> to vector<32x128xbf16>
    %5 = vector.extract_strided_slice %4 {offsets = [0, 0], sizes = [32, 16], strides = [1, 1]} : vector<32x128xbf16> to vector<32x16xbf16>
    %c2 = arith.constant 2 : index
    %c0_4 = arith.constant 0 : index
    %c0_5 = arith.constant 0 : index
    %6 = vector.load %arg4[%c2, %c0_4, %c0_5] : memref<8x32x128xbf16, #tpu.memory_space<vmem>>, vector<1x32x128xbf16>
    %7 = vector.shape_cast %6 : vector<1x32x128xbf16> to vector<32x128xbf16>
    %8 = vector.extract_strided_slice %7 {offsets = [0, 0], sizes = [32, 16], strides = [1, 1]} : vector<32x128xbf16> to vector<32x16xbf16>
    %c3 = arith.constant 3 : index
    %c0_6 = arith.constant 0 : index
    %c0_7 = arith.constant 0 : index
    %9 = vector.load %arg4[%c3, %c0_6, %c0_7] : memref<8x32x128xbf16, #tpu.memory_space<vmem>>, vector<1x32x128xbf16>
    %10 = vector.shape_cast %9 : vector<1x32x128xbf16> to vector<32x128xbf16>
    %11 = vector.extract_strided_slice %10 {offsets = [0, 0], sizes = [32, 32], strides = [1, 1]} : vector<32x128xbf16> to vector<32x32xbf16>
    %c4 = arith.constant 4 : index
    %c0_8 = arith.constant 0 : index
    %c0_9 = arith.constant 0 : index
    %12 = vector.load %arg4[%c4, %c0_8, %c0_9] : memref<8x32x128xbf16, #tpu.memory_space<vmem>>, vector<1x32x128xbf16>
    %13 = vector.shape_cast %12 : vector<1x32x128xbf16> to vector<32x128xbf16>
    %14 = vector.extract_strided_slice %13 {offsets = [0, 0], sizes = [32, 32], strides = [1, 1]} : vector<32x128xbf16> to vector<32x32xbf16>
    %c5 = arith.constant 5 : index
    %c0_10 = arith.constant 0 : index
    %c0_11 = arith.constant 0 : index
    %15 = vector.load %arg4[%c5, %c0_10, %c0_11] : memref<8x32x128xbf16, #tpu.memory_space<vmem>>, vector<1x32x128xbf16>
    %16 = vector.shape_cast %15 : vector<1x32x128xbf16> to vector<32x128xbf16>
    %c6 = arith.constant 6 : index
    %c0_12 = arith.constant 0 : index
    %c0_13 = arith.constant 0 : index
    %17 = vector.load %arg4[%c6, %c0_12, %c0_13] : memref<8x32x128xbf16, #tpu.memory_space<vmem>>, vector<1x32x128xbf16>
    %18 = vector.shape_cast %17 : vector<1x32x128xbf16> to vector<32x128xbf16>
    %c7 = arith.constant 7 : index
    %c0_14 = arith.constant 0 : index
    %c0_15 = arith.constant 0 : index
    %19 = vector.load %arg4[%c7, %c0_14, %c0_15] : memref<8x32x128xbf16, #tpu.memory_space<vmem>>, vector<1x32x128xbf16>
    %20 = vector.shape_cast %19 : vector<1x32x128xbf16> to vector<32x128xbf16>
    %21 = vector.extract_strided_slice %20 {offsets = [0, 0], sizes = [32, 8], strides = [1, 1]} : vector<32x128xbf16> to vector<32x8xbf16>
    %c0_16 = arith.constant 0 : index
    %c0_17 = arith.constant 0 : index
    %22 = vector.load %arg5[%c0_16, %c0_17] : memref<8x128xf32, #tpu.memory_space<vmem>>, vector<8x128xf32>
    %23 = vector.extract_strided_slice %22 {offsets = [0, 0], sizes = [1, 32], strides = [1, 1]} : vector<8x128xf32> to vector<1x32xf32>
    %24 = vector.extract_strided_slice %22 {offsets = [1, 0], sizes = [1, 16], strides = [1, 1]} : vector<8x128xf32> to vector<1x16xf32>
    %25 = vector.extract_strided_slice %22 {offsets = [2, 0], sizes = [1, 32], strides = [1, 1]} : vector<8x128xf32> to vector<1x32xf32>
    %26 = vector.extract_strided_slice %22 {offsets = [3, 0], sizes = [1, 128], strides = [1, 1]} : vector<8x128xf32> to vector<1x128xf32>
    %27 = vector.extract_strided_slice %22 {offsets = [4, 0], sizes = [1, 8], strides = [1, 1]} : vector<8x128xf32> to vector<1x8xf32>
    %c0_18 = arith.constant 0 : index
    %c0_19 = arith.constant 0 : index
    %28 = vector.load %arg2[%c0_18, %c0_19] : memref<8x32xf32, #tpu.memory_space<vmem>>, vector<8x32xf32>
    %c0_20 = arith.constant 0 : index
    %c0_21 = arith.constant 0 : index
    %c0_22 = arith.constant 0 : index
    %29 = vector.load %arg1[%c0_20, %c0_21, %c0_22] : memref<8x16x32xf32, #tpu.memory_space<vmem>>, vector<8x16x32xf32>
    %c0_23 = arith.constant 0 : index
    %c0_24 = arith.constant 0 : index
    %c0_25 = arith.constant 0 : index
    %30 = vector.load %arg3[%c0_23, %c0_24, %c0_25] : memref<8x8x8xf32, #tpu.memory_space<vmem>>, vector<8x8x8xf32>
    %31 = vector.shape_cast %30 : vector<8x8x8xf32> to vector<64x8xf32>
    %32 = arith.truncf %31 : vector<64x8xf32> to vector<64x8xbf16>
    %cst = arith.constant dense<0.000000e+00> : vector<64x32xf32>
    %33 = tpu.matmul %32, %2, %cst {dimension_numbers = #tpu.dot_dimension_numbers<[1], [0], [0], [1], [0, 0, 1, 1], [], []>} : vector<64x8xbf16>, vector<8x32xbf16>, vector<64x32xf32> -> vector<64x32xf32>
    %34 = vector.broadcast %23 : vector<1x32xf32> to vector<64x32xf32>
    %35 = arith.addf %33, %34 : vector<64x32xf32>
    %36 = arith.truncf %28 : vector<8x32xf32> to vector<8x32xbf16>
    %cst_26 = arith.constant dense<0.000000e+00> : vector<8x16xf32>
    %37 = tpu.matmul %36, %8, %cst_26 {dimension_numbers = #tpu.dot_dimension_numbers<[1], [0], [0], [1], [0, 0, 1, 1], [], []>} : vector<8x32xbf16>, vector<32x16xbf16>, vector<8x16xf32> -> vector<8x16xf32>
    %38 = vector.broadcast %24 : vector<1x16xf32> to vector<8x16xf32>
    %39 = arith.addf %37, %38 : vector<8x16xf32>
    %40 = arith.truncf %35 : vector<64x32xf32> to vector<64x32xbf16>
    %cst_27 = arith.constant dense<0.000000e+00> : vector<64x16xf32>
    %41 = tpu.matmul %40, %5, %cst_27 {dimension_numbers = #tpu.dot_dimension_numbers<[1], [0], [0], [1], [0, 0, 1, 1], [], []>} : vector<64x32xbf16>, vector<32x16xbf16>, vector<64x16xf32> -> vector<64x16xf32>
    %42 = vector.shape_cast %41 : vector<64x16xf32> to vector<8x8x16xf32>
    %43 = vector.shape_cast %39 : vector<8x16xf32> to vector<8x1x16xf32>
    %44 = vector.broadcast %43 : vector<8x1x16xf32> to vector<8x8x16xf32>
    %45 = arith.addf %42, %44 : vector<8x8x16xf32>
    %cst_28 = arith.constant dense<0xFF800000> : vector<8x8xf32>
    %46 = vector.multi_reduction <maximumf>, %45, %cst_28 [2] : vector<8x8x16xf32> to vector<8x8xf32>
    %47 = vector.shape_cast %46 : vector<8x8xf32> to vector<8x8x1xf32>
    %48 = vector.broadcast %47 : vector<8x8x1xf32> to vector<8x8x16xf32>
    %49 = arith.subf %45, %48 : vector<8x8x16xf32>
    %50 = math.exp %49 : vector<8x8x16xf32>
    %cst_29 = arith.constant dense<0.000000e+00> : vector<8x8xf32>
    %51 = vector.multi_reduction <add>, %50, %cst_29 [2] : vector<8x8x16xf32> to vector<8x8xf32>
    %52 = vector.shape_cast %51 : vector<8x8xf32> to vector<8x8x1xf32>
    %53 = vector.broadcast %52 : vector<8x8x1xf32> to vector<8x8x16xf32>
    %54 = arith.divf %50, %53 : vector<8x8x16xf32>
    %55 = arith.truncf %54 : vector<8x8x16xf32> to vector<8x8x16xbf16>
    %56 = arith.truncf %29 : vector<8x16x32xf32> to vector<8x16x32xbf16>
    "tpu.trace_start"() <{level = 10 : i32, message = "bpw,bwh->bph"}> : () -> ()
    %cst_30 = arith.constant dense<0.000000e+00> : vector<8x8x32xf32>
    %57 = tpu.matmul %55, %56, %cst_30 {dimension_numbers = #tpu.dot_dimension_numbers<[2], [1], [1], [2], [0, 0, 0, 1, 1, 2], [0], [0]>} : vector<8x8x16xbf16>, vector<8x16x32xbf16>, vector<8x8x32xf32> -> vector<8x8x32xf32>
    "tpu.trace_stop"() : () -> ()
    %58 = arith.truncf %35 : vector<64x32xf32> to vector<64x32xbf16>
    %cst_31 = arith.constant dense<0.000000e+00> : vector<64x32xf32>
    %59 = tpu.matmul %58, %11, %cst_31 {dimension_numbers = #tpu.dot_dimension_numbers<[1], [0], [0], [1], [0, 0, 1, 1], [], []>} : vector<64x32xbf16>, vector<32x32xbf16>, vector<64x32xf32> -> vector<64x32xf32>
    %60 = vector.shape_cast %57 : vector<8x8x32xf32> to vector<64x32xf32>
    %61 = arith.truncf %60 : vector<64x32xf32> to vector<64x32xbf16>
    %cst_32 = arith.constant dense<0.000000e+00> : vector<64x32xf32>
    %62 = tpu.matmul %61, %14, %cst_32 {dimension_numbers = #tpu.dot_dimension_numbers<[1], [0], [0], [1], [0, 0, 1, 1], [], []>} : vector<64x32xbf16>, vector<32x32xbf16>, vector<64x32xf32> -> vector<64x32xf32>
    %63 = arith.addf %59, %62 : vector<64x32xf32>
    %64 = vector.broadcast %25 : vector<1x32xf32> to vector<64x32xf32>
    %65 = arith.addf %63, %64 : vector<64x32xf32>
    %cst_33 = arith.constant 0.000000e+00 : f32
    %66 = vector.broadcast %cst_33 : f32 to vector<64x32xf32>
    %67 = arith.maximumf %65, %66 : vector<64x32xf32>
    %68 = arith.truncf %67 : vector<64x32xf32> to vector<64x32xbf16>
    %cst_34 = arith.constant dense<0.000000e+00> : vector<64x128xf32>
    %69 = tpu.matmul %68, %16, %cst_34 {dimension_numbers = #tpu.dot_dimension_numbers<[1], [0], [0], [1], [0, 0, 1, 1], [], []>} : vector<64x32xbf16>, vector<32x128xbf16>, vector<64x128xf32> -> vector<64x128xf32>
    %70 = vector.broadcast %26 : vector<1x128xf32> to vector<64x128xf32>
    %71 = arith.addf %69, %70 : vector<64x128xf32>
    %72 = vector.shape_cast %71 : vector<64x128xf32> to vector<8x8x128xf32>
    %cst_35 = arith.constant 0.000000e+00 : f32
    %73 = vector.broadcast %cst_35 : f32 to vector<8x32xf32>
    %74 = vector.extract_strided_slice %72 {offsets = [0, 0, 0], sizes = [8, 1, 128], strides = [1, 1, 1]} : vector<8x8x128xf32> to vector<8x1x128xf32>
    %75 = vector.shape_cast %74 : vector<8x1x128xf32> to vector<8x128xf32>
    %76 = arith.truncf %28 : vector<8x32xf32> to vector<8x32xbf16>
    %cst_36 = arith.constant dense<0.000000e+00> : vector<8x128xf32>
    %77 = tpu.matmul %76, %18, %cst_36 {dimension_numbers = #tpu.dot_dimension_numbers<[1], [0], [0], [1], [0, 0, 1, 1], [], []>} : vector<8x32xbf16>, vector<32x128xbf16>, vector<8x128xf32> -> vector<8x128xf32>
    %78 = arith.addf %75, %77 : vector<8x128xf32>
    %79 = arith.negf %78 : vector<8x128xf32>
    %80 = math.exp %79 : vector<8x128xf32>
    %cst_37 = arith.constant 1.000000e+00 : f32
    %81 = vector.broadcast %cst_37 : f32 to vector<8x128xf32>
    %82 = arith.addf %81, %80 : vector<8x128xf32>
    %83 = arith.divf %81, %82 : vector<8x128xf32>
    %84 = vector.extract_strided_slice %83 {offsets = [0, 0], sizes = [8, 32], strides = [1, 1]} : vector<8x128xf32> to vector<8x32xf32>
    %85 = vector.extract_strided_slice %83 {offsets = [0, 32], sizes = [8, 32], strides = [1, 1]} : vector<8x128xf32> to vector<8x32xf32>
    %86 = vector.extract_strided_slice %83 {offsets = [0, 64], sizes = [8, 32], strides = [1, 1]} : vector<8x128xf32> to vector<8x32xf32>
    %cst_38 = arith.constant 2.000000e+00 : f32
    %87 = vector.broadcast %cst_38 : f32 to vector<8x32xf32>
    %88 = arith.mulf %87, %86 : vector<8x32xf32>
    %cst_39 = arith.constant 1.000000e+00 : f32
    %89 = vector.broadcast %cst_39 : f32 to vector<8x32xf32>
    %90 = arith.subf %88, %89 : vector<8x32xf32>
    %91 = vector.extract_strided_slice %83 {offsets = [0, 96], sizes = [8, 32], strides = [1, 1]} : vector<8x128xf32> to vector<8x32xf32>
    %92 = arith.mulf %85, %73 : vector<8x32xf32>
    %93 = arith.mulf %84, %90 : vector<8x32xf32>
    %94 = arith.addf %92, %93 : vector<8x32xf32>
    %95 = math.tanh %94 : vector<8x32xf32>
    %96 = arith.mulf %91, %95 : vector<8x32xf32>
    %97 = vector.extract_strided_slice %72 {offsets = [0, 1, 0], sizes = [8, 1, 128], strides = [1, 1, 1]} : vector<8x8x128xf32> to vector<8x1x128xf32>
    %98 = vector.shape_cast %97 : vector<8x1x128xf32> to vector<8x128xf32>
    %99 = arith.truncf %96 : vector<8x32xf32> to vector<8x32xbf16>
    %cst_40 = arith.constant dense<0.000000e+00> : vector<8x128xf32>
    %100 = tpu.matmul %99, %18, %cst_40 {dimension_numbers = #tpu.dot_dimension_numbers<[1], [0], [0], [1], [0, 0, 1, 1], [], []>} : vector<8x32xbf16>, vector<32x128xbf16>, vector<8x128xf32> -> vector<8x128xf32>
    %101 = arith.addf %98, %100 : vector<8x128xf32>
    %102 = arith.negf %101 : vector<8x128xf32>
    %103 = math.exp %102 : vector<8x128xf32>
    %cst_41 = arith.constant 1.000000e+00 : f32
    %104 = vector.broadcast %cst_41 : f32 to vector<8x128xf32>
    %105 = arith.addf %104, %103 : vector<8x128xf32>
    %106 = arith.divf %104, %105 : vector<8x128xf32>
    %107 = vector.extract_strided_slice %106 {offsets = [0, 0], sizes = [8, 32], strides = [1, 1]} : vector<8x128xf32> to vector<8x32xf32>
    %108 = vector.extract_strided_slice %106 {offsets = [0, 32], sizes = [8, 32], strides = [1, 1]} : vector<8x128xf32> to vector<8x32xf32>
    %109 = vector.extract_strided_slice %106 {offsets = [0, 64], sizes = [8, 32], strides = [1, 1]} : vector<8x128xf32> to vector<8x32xf32>
    %cst_42 = arith.constant 2.000000e+00 : f32
    %110 = vector.broadcast %cst_42 : f32 to vector<8x32xf32>
    %111 = arith.mulf %110, %109 : vector<8x32xf32>
    %cst_43 = arith.constant 1.000000e+00 : f32
    %112 = vector.broadcast %cst_43 : f32 to vector<8x32xf32>
    %113 = arith.subf %111, %112 : vector<8x32xf32>
    %114 = vector.extract_strided_slice %106 {offsets = [0, 96], sizes = [8, 32], strides = [1, 1]} : vector<8x128xf32> to vector<8x32xf32>
    %115 = arith.mulf %108, %94 : vector<8x32xf32>
    %116 = arith.mulf %107, %113 : vector<8x32xf32>
    %117 = arith.addf %115, %116 : vector<8x32xf32>
    %118 = math.tanh %117 : vector<8x32xf32>
    %119 = arith.mulf %114, %118 : vector<8x32xf32>
    %120 = vector.extract_strided_slice %72 {offsets = [0, 2, 0], sizes = [8, 1, 128], strides = [1, 1, 1]} : vector<8x8x128xf32> to vector<8x1x128xf32>
    %121 = vector.shape_cast %120 : vector<8x1x128xf32> to vector<8x128xf32>
    %122 = arith.truncf %119 : vector<8x32xf32> to vector<8x32xbf16>
    %cst_44 = arith.constant dense<0.000000e+00> : vector<8x128xf32>
    %123 = tpu.matmul %122, %18, %cst_44 {dimension_numbers = #tpu.dot_dimension_numbers<[1], [0], [0], [1], [0, 0, 1, 1], [], []>} : vector<8x32xbf16>, vector<32x128xbf16>, vector<8x128xf32> -> vector<8x128xf32>
    %124 = arith.addf %121, %123 : vector<8x128xf32>
    %125 = arith.negf %124 : vector<8x128xf32>
    %126 = math.exp %125 : vector<8x128xf32>
    %cst_45 = arith.constant 1.000000e+00 : f32
    %127 = vector.broadcast %cst_45 : f32 to vector<8x128xf32>
    %128 = arith.addf %127, %126 : vector<8x128xf32>
    %129 = arith.divf %127, %128 : vector<8x128xf32>
    %130 = vector.extract_strided_slice %129 {offsets = [0, 0], sizes = [8, 32], strides = [1, 1]} : vector<8x128xf32> to vector<8x32xf32>
    %131 = vector.extract_strided_slice %129 {offsets = [0, 32], sizes = [8, 32], strides = [1, 1]} : vector<8x128xf32> to vector<8x32xf32>
    %132 = vector.extract_strided_slice %129 {offsets = [0, 64], sizes = [8, 32], strides = [1, 1]} : vector<8x128xf32> to vector<8x32xf32>
    %cst_46 = arith.constant 2.000000e+00 : f32
    %133 = vector.broadcast %cst_46 : f32 to vector<8x32xf32>
    %134 = arith.mulf %133, %132 : vector<8x32xf32>
    %cst_47 = arith.constant 1.000000e+00 : f32
    %135 = vector.broadcast %cst_47 : f32 to vector<8x32xf32>
    %136 = arith.subf %134, %135 : vector<8x32xf32>
    %137 = vector.extract_strided_slice %129 {offsets = [0, 96], sizes = [8, 32], strides = [1, 1]} : vector<8x128xf32> to vector<8x32xf32>
    %138 = arith.mulf %131, %117 : vector<8x32xf32>
    %139 = arith.mulf %130, %136 : vector<8x32xf32>
    %140 = arith.addf %138, %139 : vector<8x32xf32>
    %141 = math.tanh %140 : vector<8x32xf32>
    %142 = arith.mulf %137, %141 : vector<8x32xf32>
    %143 = vector.extract_strided_slice %72 {offsets = [0, 3, 0], sizes = [8, 1, 128], strides = [1, 1, 1]} : vector<8x8x128xf32> to vector<8x1x128xf32>
    %144 = vector.shape_cast %143 : vector<8x1x128xf32> to vector<8x128xf32>
    %145 = arith.truncf %142 : vector<8x32xf32> to vector<8x32xbf16>
    %cst_48 = arith.constant dense<0.000000e+00> : vector<8x128xf32>
    %146 = tpu.matmul %145, %18, %cst_48 {dimension_numbers = #tpu.dot_dimension_numbers<[1], [0], [0], [1], [0, 0, 1, 1], [], []>} : vector<8x32xbf16>, vector<32x128xbf16>, vector<8x128xf32> -> vector<8x128xf32>
    %147 = arith.addf %144, %146 : vector<8x128xf32>
    %148 = arith.negf %147 : vector<8x128xf32>
    %149 = math.exp %148 : vector<8x128xf32>
    %cst_49 = arith.constant 1.000000e+00 : f32
    %150 = vector.broadcast %cst_49 : f32 to vector<8x128xf32>
    %151 = arith.addf %150, %149 : vector<8x128xf32>
    %152 = arith.divf %150, %151 : vector<8x128xf32>
    %153 = vector.extract_strided_slice %152 {offsets = [0, 0], sizes = [8, 32], strides = [1, 1]} : vector<8x128xf32> to vector<8x32xf32>
    %154 = vector.extract_strided_slice %152 {offsets = [0, 32], sizes = [8, 32], strides = [1, 1]} : vector<8x128xf32> to vector<8x32xf32>
    %155 = vector.extract_strided_slice %152 {offsets = [0, 64], sizes = [8, 32], strides = [1, 1]} : vector<8x128xf32> to vector<8x32xf32>
    %cst_50 = arith.constant 2.000000e+00 : f32
    %156 = vector.broadcast %cst_50 : f32 to vector<8x32xf32>
    %157 = arith.mulf %156, %155 : vector<8x32xf32>
    %cst_51 = arith.constant 1.000000e+00 : f32
    %158 = vector.broadcast %cst_51 : f32 to vector<8x32xf32>
    %159 = arith.subf %157, %158 : vector<8x32xf32>
    %160 = vector.extract_strided_slice %152 {offsets = [0, 96], sizes = [8, 32], strides = [1, 1]} : vector<8x128xf32> to vector<8x32xf32>
    %161 = arith.mulf %154, %140 : vector<8x32xf32>
    %162 = arith.mulf %153, %159 : vector<8x32xf32>
    %163 = arith.addf %161, %162 : vector<8x32xf32>
    %164 = math.tanh %163 : vector<8x32xf32>
    %165 = arith.mulf %160, %164 : vector<8x32xf32>
    %166 = vector.extract_strided_slice %72 {offsets = [0, 4, 0], sizes = [8, 1, 128], strides = [1, 1, 1]} : vector<8x8x128xf32> to vector<8x1x128xf32>
    %167 = vector.shape_cast %166 : vector<8x1x128xf32> to vector<8x128xf32>
    %168 = arith.truncf %165 : vector<8x32xf32> to vector<8x32xbf16>
    %cst_52 = arith.constant dense<0.000000e+00> : vector<8x128xf32>
    %169 = tpu.matmul %168, %18, %cst_52 {dimension_numbers = #tpu.dot_dimension_numbers<[1], [0], [0], [1], [0, 0, 1, 1], [], []>} : vector<8x32xbf16>, vector<32x128xbf16>, vector<8x128xf32> -> vector<8x128xf32>
    %170 = arith.addf %167, %169 : vector<8x128xf32>
    %171 = arith.negf %170 : vector<8x128xf32>
    %172 = math.exp %171 : vector<8x128xf32>
    %cst_53 = arith.constant 1.000000e+00 : f32
    %173 = vector.broadcast %cst_53 : f32 to vector<8x128xf32>
    %174 = arith.addf %173, %172 : vector<8x128xf32>
    %175 = arith.divf %173, %174 : vector<8x128xf32>
    %176 = vector.extract_strided_slice %175 {offsets = [0, 0], sizes = [8, 32], strides = [1, 1]} : vector<8x128xf32> to vector<8x32xf32>
    %177 = vector.extract_strided_slice %175 {offsets = [0, 32], sizes = [8, 32], strides = [1, 1]} : vector<8x128xf32> to vector<8x32xf32>
    %178 = vector.extract_strided_slice %175 {offsets = [0, 64], sizes = [8, 32], strides = [1, 1]} : vector<8x128xf32> to vector<8x32xf32>
    %cst_54 = arith.constant 2.000000e+00 : f32
    %179 = vector.broadcast %cst_54 : f32 to vector<8x32xf32>
    %180 = arith.mulf %179, %178 : vector<8x32xf32>
    %cst_55 = arith.constant 1.000000e+00 : f32
    %181 = vector.broadcast %cst_55 : f32 to vector<8x32xf32>
    %182 = arith.subf %180, %181 : vector<8x32xf32>
    %183 = vector.extract_strided_slice %175 {offsets = [0, 96], sizes = [8, 32], strides = [1, 1]} : vector<8x128xf32> to vector<8x32xf32>
    %184 = arith.mulf %177, %163 : vector<8x32xf32>
    %185 = arith.mulf %176, %182 : vector<8x32xf32>
    %186 = arith.addf %184, %185 : vector<8x32xf32>
    %187 = math.tanh %186 : vector<8x32xf32>
    %188 = arith.mulf %183, %187 : vector<8x32xf32>
    %189 = vector.extract_strided_slice %72 {offsets = [0, 5, 0], sizes = [8, 1, 128], strides = [1, 1, 1]} : vector<8x8x128xf32> to vector<8x1x128xf32>
    %190 = vector.shape_cast %189 : vector<8x1x128xf32> to vector<8x128xf32>
    %191 = arith.truncf %188 : vector<8x32xf32> to vector<8x32xbf16>
    %cst_56 = arith.constant dense<0.000000e+00> : vector<8x128xf32>
    %192 = tpu.matmul %191, %18, %cst_56 {dimension_numbers = #tpu.dot_dimension_numbers<[1], [0], [0], [1], [0, 0, 1, 1], [], []>} : vector<8x32xbf16>, vector<32x128xbf16>, vector<8x128xf32> -> vector<8x128xf32>
    %193 = arith.addf %190, %192 : vector<8x128xf32>
    %194 = arith.negf %193 : vector<8x128xf32>
    %195 = math.exp %194 : vector<8x128xf32>
    %cst_57 = arith.constant 1.000000e+00 : f32
    %196 = vector.broadcast %cst_57 : f32 to vector<8x128xf32>
    %197 = arith.addf %196, %195 : vector<8x128xf32>
    %198 = arith.divf %196, %197 : vector<8x128xf32>
    %199 = vector.extract_strided_slice %198 {offsets = [0, 0], sizes = [8, 32], strides = [1, 1]} : vector<8x128xf32> to vector<8x32xf32>
    %200 = vector.extract_strided_slice %198 {offsets = [0, 32], sizes = [8, 32], strides = [1, 1]} : vector<8x128xf32> to vector<8x32xf32>
    %201 = vector.extract_strided_slice %198 {offsets = [0, 64], sizes = [8, 32], strides = [1, 1]} : vector<8x128xf32> to vector<8x32xf32>
    %cst_58 = arith.constant 2.000000e+00 : f32
    %202 = vector.broadcast %cst_58 : f32 to vector<8x32xf32>
    %203 = arith.mulf %202, %201 : vector<8x32xf32>
    %cst_59 = arith.constant 1.000000e+00 : f32
    %204 = vector.broadcast %cst_59 : f32 to vector<8x32xf32>
    %205 = arith.subf %203, %204 : vector<8x32xf32>
    %206 = vector.extract_strided_slice %198 {offsets = [0, 96], sizes = [8, 32], strides = [1, 1]} : vector<8x128xf32> to vector<8x32xf32>
    %207 = arith.mulf %200, %186 : vector<8x32xf32>
    %208 = arith.mulf %199, %205 : vector<8x32xf32>
    %209 = arith.addf %207, %208 : vector<8x32xf32>
    %210 = math.tanh %209 : vector<8x32xf32>
    %211 = arith.mulf %206, %210 : vector<8x32xf32>
    %212 = vector.extract_strided_slice %72 {offsets = [0, 6, 0], sizes = [8, 1, 128], strides = [1, 1, 1]} : vector<8x8x128xf32> to vector<8x1x128xf32>
    %213 = vector.shape_cast %212 : vector<8x1x128xf32> to vector<8x128xf32>
    %214 = arith.truncf %211 : vector<8x32xf32> to vector<8x32xbf16>
    %cst_60 = arith.constant dense<0.000000e+00> : vector<8x128xf32>
    %215 = tpu.matmul %214, %18, %cst_60 {dimension_numbers = #tpu.dot_dimension_numbers<[1], [0], [0], [1], [0, 0, 1, 1], [], []>} : vector<8x32xbf16>, vector<32x128xbf16>, vector<8x128xf32> -> vector<8x128xf32>
    %216 = arith.addf %213, %215 : vector<8x128xf32>
    %217 = arith.negf %216 : vector<8x128xf32>
    %218 = math.exp %217 : vector<8x128xf32>
    %cst_61 = arith.constant 1.000000e+00 : f32
    %219 = vector.broadcast %cst_61 : f32 to vector<8x128xf32>
    %220 = arith.addf %219, %218 : vector<8x128xf32>
    %221 = arith.divf %219, %220 : vector<8x128xf32>
    %222 = vector.extract_strided_slice %221 {offsets = [0, 0], sizes = [8, 32], strides = [1, 1]} : vector<8x128xf32> to vector<8x32xf32>
    %223 = vector.extract_strided_slice %221 {offsets = [0, 32], sizes = [8, 32], strides = [1, 1]} : vector<8x128xf32> to vector<8x32xf32>
    %224 = vector.extract_strided_slice %221 {offsets = [0, 64], sizes = [8, 32], strides = [1, 1]} : vector<8x128xf32> to vector<8x32xf32>
    %cst_62 = arith.constant 2.000000e+00 : f32
    %225 = vector.broadcast %cst_62 : f32 to vector<8x32xf32>
    %226 = arith.mulf %225, %224 : vector<8x32xf32>
    %cst_63 = arith.constant 1.000000e+00 : f32
    %227 = vector.broadcast %cst_63 : f32 to vector<8x32xf32>
    %228 = arith.subf %226, %227 : vector<8x32xf32>
    %229 = vector.extract_strided_slice %221 {offsets = [0, 96], sizes = [8, 32], strides = [1, 1]} : vector<8x128xf32> to vector<8x32xf32>
    %230 = arith.mulf %223, %209 : vector<8x32xf32>
    %231 = arith.mulf %222, %228 : vector<8x32xf32>
    %232 = arith.addf %230, %231 : vector<8x32xf32>
    %233 = math.tanh %232 : vector<8x32xf32>
    %234 = arith.mulf %229, %233 : vector<8x32xf32>
    %235 = vector.extract_strided_slice %72 {offsets = [0, 7, 0], sizes = [8, 1, 128], strides = [1, 1, 1]} : vector<8x8x128xf32> to vector<8x1x128xf32>
    %236 = vector.shape_cast %235 : vector<8x1x128xf32> to vector<8x128xf32>
    %237 = arith.truncf %234 : vector<8x32xf32> to vector<8x32xbf16>
    %cst_64 = arith.constant dense<0.000000e+00> : vector<8x128xf32>
    %238 = tpu.matmul %237, %18, %cst_64 {dimension_numbers = #tpu.dot_dimension_numbers<[1], [0], [0], [1], [0, 0, 1, 1], [], []>} : vector<8x32xbf16>, vector<32x128xbf16>, vector<8x128xf32> -> vector<8x128xf32>
    %239 = arith.addf %236, %238 : vector<8x128xf32>
    %240 = arith.negf %239 : vector<8x128xf32>
    %241 = math.exp %240 : vector<8x128xf32>
    %cst_65 = arith.constant 1.000000e+00 : f32
    %242 = vector.broadcast %cst_65 : f32 to vector<8x128xf32>
    %243 = arith.addf %242, %241 : vector<8x128xf32>
    %244 = arith.divf %242, %243 : vector<8x128xf32>
    %245 = vector.extract_strided_slice %244 {offsets = [0, 0], sizes = [8, 32], strides = [1, 1]} : vector<8x128xf32> to vector<8x32xf32>
    %246 = vector.extract_strided_slice %244 {offsets = [0, 32], sizes = [8, 32], strides = [1, 1]} : vector<8x128xf32> to vector<8x32xf32>
    %247 = vector.extract_strided_slice %244 {offsets = [0, 64], sizes = [8, 32], strides = [1, 1]} : vector<8x128xf32> to vector<8x32xf32>
    %cst_66 = arith.constant 2.000000e+00 : f32
    %248 = vector.broadcast %cst_66 : f32 to vector<8x32xf32>
    %249 = arith.mulf %248, %247 : vector<8x32xf32>
    %cst_67 = arith.constant 1.000000e+00 : f32
    %250 = vector.broadcast %cst_67 : f32 to vector<8x32xf32>
    %251 = arith.subf %249, %250 : vector<8x32xf32>
    %252 = vector.extract_strided_slice %244 {offsets = [0, 96], sizes = [8, 32], strides = [1, 1]} : vector<8x128xf32> to vector<8x32xf32>
    %253 = arith.mulf %246, %232 : vector<8x32xf32>
    %254 = arith.mulf %245, %251 : vector<8x32xf32>
    %255 = arith.addf %253, %254 : vector<8x32xf32>
    %256 = math.tanh %255 : vector<8x32xf32>
    %257 = arith.mulf %252, %256 : vector<8x32xf32>
    %258 = arith.truncf %257 : vector<8x32xf32> to vector<8x32xbf16>
    %cst_68 = arith.constant dense<0.000000e+00> : vector<8x8xf32>
    %259 = tpu.matmul %258, %21, %cst_68 {dimension_numbers = #tpu.dot_dimension_numbers<[1], [0], [0], [1], [0, 0, 1, 1], [], []>} : vector<8x32xbf16>, vector<32x8xbf16>, vector<8x8xf32> -> vector<8x8xf32>
    %260 = vector.broadcast %27 : vector<1x8xf32> to vector<8x8xf32>
    %261 = arith.addf %259, %260 : vector<8x8xf32>
    %c0_69 = arith.constant 0 : index
    %c0_70 = arith.constant 0 : index
    %262 = vector.load %arg6[%c0_69, %c0_70] : memref<8x8xf32, #tpu.memory_space<vmem>>, vector<8x8xf32>
    tpu.vector_store %arg6[%c0_69, %c0_70], %261 {strides = array<i32>} : memref<8x8xf32, #tpu.memory_space<vmem>>, vector<8x8xf32>,
    return
  }
  func.func @transform_0(%arg0: i32) -> (i32, i32, i32) {
    %c0_i32 = arith.constant 0 : i32
    %c0_i32_0 = arith.constant 0 : i32
    %c0_i32_1 = arith.constant 0 : i32
    return %arg0, %c0_i32, %c0_i32_0 : i32, i32, i32
  }
  func.func @transform_1(%arg0: i32) -> (i32, i32) {
    %c0_i32 = arith.constant 0 : i32
    %c0_i32_0 = arith.constant 0 : i32
    return %arg0, %c0_i32 : i32, i32
  }
  func.func @transform_2(%arg0: i32) -> (i32, i32, i32) {
    %c0_i32 = arith.constant 0 : i32
    %c0_i32_0 = arith.constant 0 : i32
    %c0_i32_1 = arith.constant 0 : i32
    return %arg0, %c0_i32, %c0_i32_0 : i32, i32, i32
  }
  func.func @transform_3(%arg0: i32) -> (i32, i32, i32) {
    %c0_i32 = arith.constant 0 : i32
    %c0_i32_0 = arith.constant 0 : i32
    %c0_i32_1 = arith.constant 0 : i32
    %c0_i32_2 = arith.constant 0 : i32
    return %c0_i32, %c0_i32_0, %c0_i32_1 : i32, i32, i32
  }
  func.func @transform_4(%arg0: i32) -> (i32, i32) {
    %c0_i32 = arith.constant 0 : i32
    %c0_i32_0 = arith.constant 0 : i32
    %c0_i32_1 = arith.constant 0 : i32
    return %c0_i32, %c0_i32_0 : i32, i32
  }
  func.func @transform_5(%arg0: i32) -> (i32, i32) {
    %c0_i32 = arith.constant 0 : i32
    %c0_i32_0 = arith.constant 0 : i32
    return %arg0, %c0_i32 : i32, i32
  }
}

</mosaic_0001>

<bundles_post_ra>
// kernel: tpu_custom_call.1
= control target key start
LH: loop header
LB: loop body
LE: loop exit
PB: predicated region body
PF: predicated region fallthrough
CT: control target
= control target key end

     0   :  { %10 = vsyncpa [#allocation3], 0  ;;  %s6965_s0 = inlined_call_operand.hbm [shape: f32[8,16,32], index: 0, kind: input, shape index: {}]   ;;  %s6966_s1 = inlined_call_operand.hbm [shape: f32[8,32], index: 1, kind: input, shape index: {}]   ;;  %s6967_s2 = inlined_call_operand.hbm [shape: f32[8,8,8], index: 2, kind: input, shape index: {}]   ;;  %s6968_s3 = inlined_call_operand.hbm [shape: bf16[8,32,128], index: 3, kind: input, shape index: {}]   ;;  %s6969_s4 = inlined_call_operand.hbm [shape: f32[8,128], index: 4, kind: input, shape index: {}]   ;;  %s6970_s5 = inlined_call_operand.hbm [shape: f32[8,8], index: 5, kind: output, shape index: {}]  }
   0x1   :  { %11 = vsyncpa [#allocation6], 0 }
   0x2   :  { %12 = vsyncpa [#allocation9], 0  ;;  %s32_s20 = sshll.u32 %s6966_s1, 4  ;;  %s33_s20 = int_to_ptr.hbm [resolvable:$true] %s32_s20 }
   0x3   :  { %13 = vsyncpa [#allocation4], 0  ;;  %s5026_s21 = smov [#allocation5]   ;;  %s55_s25 = sshll.u32 %s6968_s3, 4  ;;  %s56_s25 = int_to_ptr.hbm [resolvable:$true] %s55_s25 }
   0x4   :  { %s34_s22 = sshll.u32 %s5026_s21, 4  ;;  %s5027_s26 = smov [#allocation8]   ;;  %s35_s22 = int_to_ptr.vmem [resolvable:$true] %s34_s22 }
   0x5   :  { %37 = dma.hbm_to_vmem [thread:$0]  %s33_s20, 128, %s35_s22, [#allocation6]  }
   0x6   :  { %s57_s27 = sshll.u32 %s5027_s26, 4  ;;  %s5028_s28 = smov 64   ;;  %s58_s27 = int_to_ptr.vmem [resolvable:$true] %s57_s27 }
   0x7   :  { %s5029_s29 = smov 4   ;;  %s18_s6 = sshll.u32 %s6965_s0, 4  ;;  %s19_s6 = int_to_ptr.hbm [resolvable:$true] %s18_s6 }
   0x8   :  { %63 = dma.hbm_to_vmem [thread:$0]  %s56_s25, 2048, %s58_s27, [#allocation9], %s5028_s28, %s5028_s28, %s5029_s29  }
   0x9   :  { %s5030_s7 = smov [#allocation2]   ;;  %s42_s10 = sshll.u32 %s6967_s2, 4  ;;  %s43_s10 = int_to_ptr.hbm [resolvable:$true] %s42_s10 }
   0xa   :  { %s20_s8 = sshll.u32 %s5030_s7, 4  ;;  %s5031_s11 = smov 128   ;;  %s21_s8 = int_to_ptr.vmem [resolvable:$true] %s20_s8 }
   0xb   :  { %s5032_s12 = smov 8   ;;  %s5033_s13 = smov [#allocation7]  }
   0xc   :  { %26 = dma.hbm_to_vmem [thread:$0]  %s19_s6, 2048, %s21_s8, [#allocation3], %s5031_s11, %s5031_s11, %s5032_s12  }
   0xd   :  { %s44_s14 = sshll.u32 %s5033_s13, 4  ;;  %s69_s17 = sshll.u32 %s6969_s4, 4  ;;  %s45_s14 = int_to_ptr.vmem [resolvable:$true] %s44_s14  ;;  %s70_s17 = int_to_ptr.hbm [resolvable:$true] %s69_s17 }
   0xe   :  { %50 = dma.hbm_to_vmem [thread:$0]  %s43_s10, 1024, %s45_s14, [#allocation6], %s5031_s11, %s5031_s11, %s5032_s12  }
   0xf   :  { %s5034_s0 = smov [#allocation10]  }
  0x10   :  { %s71_s18 = sshll.u32 %s5034_s0, 4  ;;  %s72_s18 = int_to_ptr.vmem [resolvable:$true] %s71_s18 }
  0x11   :  { %74 = dma.hbm_to_vmem [thread:$0]  %s70_s17, 128, %s72_s18, [#allocation9]  }
  0x12   :  { %5018 = dma.done.wait [#allocation3], 2048  }
  0x13   :  { %5019 = vsyncadd [#allocation3], 4294965248 }
  0x14   :  { %5020 = dma.done.wait [#allocation6], 1152  }
  0x15   :  { %5021 = vsyncadd [#allocation6], 4294966144 }
  0x16   :  { %5022 = dma.done.wait [#allocation9], 2176  }
  0x17   :  { %5023 = vsyncadd [#allocation9], 4294965120  ;;  %vm176_vm0 = vcmask 1043456   ;;  %v96_v0 = vld [vmem:[#allocation8] sm:$0xf]  ;;  %v151_v2 = vld [vmem:[#allocation7 + $0x8] sm:$0xff] }
  0x18   :  { %v150_v1 = vld [vmem:[#allocation7] sm:$0xff]  ;;  %v178_v3 = vsel %vm176_vm0, %v96_v0, 0  ;;  %vm6971_vm1 = vcmask 64512   ;;  %v152_v5 = vld [vmem:[#allocation7 + $0x10] sm:$0xff]  ;;  %v153_v6 = vld [vmem:[#allocation7 + $0x18] sm:$0xff]  ;;  %vm6972_vm2 = vcmask 261120  }
  0x19   :  { %v158_v4 = vpack.c.bf16 %v151_v2, %v150_v1  ;;  %187 = vmatpush.bf16.msra.mxu0 %v178_v3  ;;  %v159_v7 = vpack.c.bf16 %v153_v6, %v152_v5  ;;  %v154_v8 = vld [vmem:[#allocation7 + $0x20] sm:$0xff]  ;;  %v155_v9 = vld [vmem:[#allocation7 + $0x28] sm:$0xff]  ;;  %v156_v11 = vld [vmem:[#allocation7 + $0x30] sm:$0xff]  ;;  %vm329_vm3 = vcmask 130048   ;;  %s5035_s2 = smov 32   ;;  %s5036_s4 = smov [#allocation11]  }
  0x1a   :  { %v160_v10 = vpack.c.bf16 %v155_v9, %v154_v8  ;;  %v157_v12 = vld [vmem:[#allocation7 + $0x38] sm:$0xff]  ;;  %v4433_v14 = vld [vmem:[#allocation8 + $0x28] sm:$0xff]  ;;  %v4432_v15 = vld [vmem:[#allocation8 + $0x20] sm:$0xff]  ;;  %s4194_s19 = sshll.u32 %s5036_s4, 4  ;;  %s4196_s22 = sshll.u32 %s6970_s5, 4  ;;  %s4195_s19 = int_to_ptr.vmem [resolvable:$true] %s4194_s19  ;;  %s4197_s22 = int_to_ptr.hbm [resolvable:$true] %s4196_s22 }
  0x1b   :  { %v161_v13 = vpack.c.bf16 %v157_v12, %v156_v11  ;;  %233 = vmatpush.bf16.msra.mxu1 %v4433_v14  ;;  %v4431_v16 = vld [vmem:[#allocation8 + $0x18] sm:$0xff]  ;;  %v4430_v19 = vld [vmem:[#allocation8 + $0x10] sm:$0xff]  ;;  %v5092_v21 = vld [vmem:[#allocation10] sm:$0xff] }
  0x1c   :  { %4208 = vmatmul.msk.bf16.vlgmr.msra.gmra.mxu0 %vm6971_vm1, %v158_v4  ;;  %v133_v17 = vld [vmem:[#allocation5] sm:$0xff]  ;;  %274 = vmatpush.bf16.msra.mxu2 %v4431_v16  ;;  %v162_v22 = vperm.slane %v5092_v21, 0  ;;  %v210_v44 = vperm.slane %v5092_v21, 1 }
  0x1d   :  { %v5088_v18 = vpack.c.bf16 %v133_v17, %v133_v17 }
  0x1f   :  { %234 = vmatpush.bf16.msra.mxu1 %v4432_v15 }
  0x20   :  { %275 = vmatpush.bf16.msra.mxu2 %v4430_v19 }
  0x22   :  { %4220 = vmatmul.msk.bf16.vlgmr.msra.gmra.mxu1 %vm6972_vm2, %v5088_v18 }
  0x2c   :  { %4209 = vmatmul.msk.bf16.gmra.mxu0 %vm6971_vm1, %v159_v7 }
  0x3c   :  { %4210 = vmatmul.msk.bf16.gmra.mxu0 %vm6971_vm1, %v160_v10 }
  0x4c   :  { %4211 = vmatmul.msk.bf16.gmra.mxu0 %vm6971_vm1, %v161_v13 }
  0x99   :  { %v189_v20 = vpop.f32.mrf.mxu0 }
  0x9a   :  { %v190_v24 = vadd.f32 %v189_v20, %v162_v22 }
  0x9f   :  { %v236_v42 = vpop.f32.mrf.mxu1 }
  0xa0   :  { %v237_v45 = vadd.f32 %v236_v42, %v210_v44 }
  0xa1   :  { %v191_v23 = vpop.f32.mrf.mxu0 }
  0xa2   :  { %v192_v25 = vadd.f32 %v191_v23, %v162_v22  ;;  %v305_v46 = vperm.slane %v237_v45, 0  ;;  %v298_v50 = vrot.slane %v237_v45, 1  ;;  %v300_v56 = vrot.slane %v237_v45, 3 }
  0xa3   :  { %v299_v59 = vrot.slane %v237_v45, 2  ;;  %v301_v62 = vrot.slane %v237_v45, 4  ;;  %v302_v6 = vrot.slane %v237_v45, 5  ;;  %v303_v11 = vrot.slane %v237_v45, 6 }
  0xa4   :  { %v5095_v26 = vpack.c.bf16 %v192_v25, %v190_v24  ;;  %v306_v51 = vperm.slane %v298_v50, 0  ;;  %v308_v57 = vperm.slane %v300_v56, 0  ;;  %v304_v15 = vrot.slane %v237_v45, 7 }
  0xa5   :  { %v307_v63 = vperm.slane %v299_v59, 0  ;;  %v309_v1 = vperm.slane %v301_v62, 0  ;;  %v310_v7 = vperm.slane %v302_v6, 0  ;;  %v311_v12 = vperm.slane %v303_v11, 0  ;;  %v134_v62 = vld [vmem:[#allocation2] sm:$0xff]  ;;  %v137_v6 = vld [vmem:[#allocation2 + $0x18] sm:$0xff] }
  0xa6   :  { %4229 = vmatmul.msk.bf16.vlgmr.msra.gmra.mxu2 %vm6972_vm2, %v5095_v26  ;;  %v312_v16 = vperm.slane %v304_v15, 0 }
  0xa7   :  { %v238_v43 = vpop.f32.mrf.mxu1 }
  0xa9   :  { %v194_v27 = vpop.f32.mrf.mxu0 }
  0xaa   :  { %v195_v28 = vadd.f32 %v194_v27, %v162_v22 }
  0xb1   :  { %v196_v29 = vpop.f32.mrf.mxu0 }
  0xb2   :  { %v197_v30 = vadd.f32 %v196_v29, %v162_v22 }
  0xb4   :  { %v5099_v31 = vpack.c.bf16 %v197_v30, %v195_v28 }
  0xb6   :  { %4230 = vmatmul.msk.bf16.gmra.mxu2 %vm6972_vm2, %v5099_v31 }
  0xb9   :  { %v199_v32 = vpop.f32.mrf.mxu0 }
  0xba   :  { %v200_v33 = vadd.f32 %v199_v32, %v162_v22 }
  0xc1   :  { %v201_v34 = vpop.f32.mrf.mxu0 }
  0xc2   :  { %v202_v35 = vadd.f32 %v201_v34, %v162_v22 }
  0xc4   :  { %v5103_v36 = vpack.c.bf16 %v202_v35, %v200_v33 }
  0xc6   :  { %4231 = vmatmul.msk.bf16.gmra.mxu2 %vm6972_vm2, %v5103_v36 }
  0xc9   :  { %v204_v37 = vpop.f32.mrf.mxu0 }
  0xca   :  { %v205_v38 = vadd.f32 %v204_v37, %v162_v22 }
  0xd1   :  { %v206_v39 = vpop.f32.mrf.mxu0 }
  0xd2   :  { %v207_v40 = vadd.f32 %v206_v39, %v162_v22 }
  0xd4   :  { %v5107_v41 = vpack.c.bf16 %v207_v40, %v205_v38 }
  0xd6   :  { %4232 = vmatmul.msk.bf16.gmra.mxu2 %vm6972_vm2, %v5107_v41 }
 0x129   :  { %v277_v47 = vpop.f32.mrf.mxu2 }
 0x12a   :  { %v321_v48 = vadd.f32 %v305_v46, %v277_v47 }
 0x12c   :  { %v330_v49 = vsel %vm329_vm3, %v321_v48, -inf }
 0x12d   :  { %331 = vmax.xlane.f32.xlu0 %v330_v49 }
 0x131   :  { %v279_v52 = vpop.f32.mrf.mxu2 }
 0x132   :  { %v322_v53 = vadd.f32 %v306_v51, %v279_v52 }
 0x134   :  { %v333_v54 = vsel %vm329_vm3, %v322_v53, -inf }
 0x135   :  { %334 = vmax.xlane.f32.xlu0 %v333_v54 }
 0x139   :  { %v282_v55 = vpop.f32.mrf.mxu2 }
 0x13a   :  { %v323_v0 = vadd.f32 %v307_v63, %v282_v55  ;;  %v135_v63 = vld [vmem:[#allocation2 + $0x8] sm:$0xff] }
 0x13c   :  { %v336_v4 = vsel %vm329_vm3, %v323_v0, -inf }
 0x141   :  { %v284_v58 = vpop.f32.mrf.mxu2 }
 0x142   :  { %v324_v60 = vadd.f32 %v308_v57, %v284_v58 }
 0x144   :  { %v339_v61 = vsel %vm329_vm3, %v324_v60, -inf }
 0x145   :  { %340 = vmax.xlane.f32.xlu1 %v339_v61 }
 0x149   :  { %v287_v2 = vpop.f32.mrf.mxu2 }
 0x14a   :  { %v325_v3 = vadd.f32 %v309_v1, %v287_v2  ;;  %v531_v1 = vpack.c.bf16 %v135_v63, %v135_v63 }
 0x14c   :  { %v342_v5 = vsel %vm329_vm3, %v325_v3, -inf }
 0x14d   :  { %337 = vmax.xlane.f32.xlu1 %v336_v4  ;;  %343 = vmax.xlane.f32.xlu0 %v342_v5  ;;  %v136_v5 = vld [vmem:[#allocation2 + $0x10] sm:$0xff] }
 0x151   :  { %v289_v8 = vpop.f32.mrf.mxu2 }
 0x152   :  { %v326_v9 = vadd.f32 %v310_v7, %v289_v8  ;;  %v532_v7 = vpack.c.bf16 %v136_v5, %v136_v5  ;;  %v533_v8 = vpack.c.bf16 %v137_v6, %v137_v6  ;;  %v143_v5 = vld [vmem:[#allocation2 + $0x48] sm:$0xff]  ;;  %v144_v6 = vld [vmem:[#allocation2 + $0x50] sm:$0xff] }
 0x154   :  { %v345_v10 = vsel %vm329_vm3, %v326_v9, -inf  ;;  %v571_v11 = vunpack.c.l.b16 %v533_v8 }
 0x155   :  { %346 = vmax.xlane.f32.xlu2 %v345_v10  ;;  %v570_v10 = vunpack.c.l.b16 %v532_v7 }
 0x159   :  { %v292_v13 = vpop.f32.mrf.mxu2 }
 0x15a   :  { %v5118_v14 = vadd.f32 %v311_v12, %v292_v13  ;;  %v572_v12 = vpack.c.b16 %v571_v11, %v570_v10 }
 0x15c   :  { %v348_v34 = vsel %vm329_vm3, %v5118_v14, -inf }
 0x161   :  { %v294_v17 = vpop.f32.mrf.mxu2 }
 0x162   :  { %v328_v19 = vadd.f32 %v312_v16, %v294_v17 }
 0x164   :  { %v351_v20 = vsel %vm329_vm3, %v328_v19, -inf }
 0x165   :  { %352 = vmax.xlane.f32.xlu0 %v351_v20 }
 0x1a0   :  { %v332_v22 = vpop.xlane.xlu0 %331 }
 0x1a1   :  { %v354_v23 = vsub.f32 %v321_v48, %v332_v22 }
 0x1a3   :  { %v362_v24 = vmul.f32 1.442695, %v354_v23 }
 0x1a5   :  { %4455 = vpow2.f32 %v362_v24 }
 0x1a8   :  { %v335_v25 = vpop.xlane.xlu0 %334 }
 0x1a9   :  { %v355_v27 = vsub.f32 %v322_v53, %v335_v25 }
 0x1ab   :  { %v5121_v28 = vpop.eup %4455  ;;  %v364_v29 = vmul.f32 1.442695, %v355_v27 }
 0x1ac   :  { %v378_v30 = vsel %vm329_vm3, %v5121_v28, 0.0 }
 0x1ad   :  { %4457 = vpow2.f32 %v364_v29  ;;  %379 = vadd.xlane.f32.xlu2 %v378_v30  ;;  %v138_v29 = vld [vmem:[#allocation2 + $0x20] sm:$0xff]  ;;  %v139_v30 = vld [vmem:[#allocation2 + $0x28] sm:$0xff] }
 0x1b3   :  { %v5125_v32 = vpop.eup %4457 }
 0x1b4   :  { %v381_v33 = vsel %vm329_vm3, %v5125_v32, 0.0 }
 0x1b5   :  { %382 = vadd.xlane.f32.xlu1 %v381_v33  ;;  %349 = vmax.xlane.f32.xlu2 %v348_v34  ;;  %v140_v33 = vld [vmem:[#allocation2 + $0x30] sm:$0xff] }
 0x1b8   :  { %v341_v35 = vpop.xlane.xlu1 %340 }
 0x1b9   :  { %v357_v37 = vsub.f32 %v324_v60, %v341_v35 }
 0x1bb   :  { %v368_v38 = vmul.f32 1.442695, %v357_v37  ;;  %v534_v37 = vpack.c.bf16 %v138_v29, %v138_v29 }
 0x1bd   :  { %4459 = vpow2.f32 %v368_v38  ;;  %v535_v38 = vpack.c.bf16 %v139_v30, %v139_v30  ;;  %v148_v30 = vld [vmem:[#allocation2 + $0x70] sm:$0xff] }
 0x1c0   :  { %v338_v39 = vpop.xlane.xlu1 %337  ;;  %v344_v40 = vpop.xlane.xlu0 %343 }
 0x1c1   :  { %v356_v42 = vsub.f32 %v323_v0, %v338_v39  ;;  %v358_v43 = vsub.f32 %v325_v3, %v344_v40  ;;  %v530_v0 = vpack.c.bf16 %v134_v62, %v134_v62  ;;  %v549_v3 = vunpack.c.l.b16 %v531_v1  ;;  %v141_v39 = vld [vmem:[#allocation2 + $0x38] sm:$0xff] }
 0x1c2   :  { %v536_v40 = vpack.c.bf16 %v140_v33, %v140_v33  ;;  %v149_v33 = vld [vmem:[#allocation2 + $0x78] sm:$0xff] }
 0x1c3   :  { %v5131_v44 = vpop.eup %4459  ;;  %v366_v45 = vmul.f32 1.442695, %v356_v42  ;;  %v370_v46 = vmul.f32 1.442695, %v358_v43  ;;  %v548_v2 = vunpack.c.l.b16 %v530_v0  ;;  %v537_v43 = vpack.c.bf16 %v141_v39, %v141_v39 }
 0x1c4   :  { %v387_v47 = vsel %vm329_vm3, %v5131_v44, 0.0  ;;  %v545_v39 = vpack.c.bf16 %v149_v33, %v149_v33 }
 0x1c5   :  { %4461 = vpow2.f32 %v366_v45  ;;  %388 = vadd.xlane.f32.xlu1 %v387_v47  ;;  %v550_v4 = vpack.c.b16 %v549_v3, %v548_v2  ;;  %v593_v47 = vunpack.c.l.b16 %v535_v38  ;;  %v544_v38 = vpack.c.bf16 %v148_v30, %v148_v30 }
 0x1c6   :  { %4463 = vpow2.f32 %v370_v46  ;;  %v592_v46 = vunpack.c.l.b16 %v534_v37 }
 0x1c7   :  { %562 = vmatpush.bf16.msra.mxu3 %v550_v4  ;;  %v142_v4 = vld [vmem:[#allocation2 + $0x40] sm:$0xff] }
 0x1c8   :  { %v347_v48 = vpop.xlane.xlu2 %346  ;;  %v538_v8 = vpack.c.bf16 %v142_v4, %v142_v4 }
 0x1c9   :  { %v359_v49 = vsub.f32 %v326_v9, %v347_v48  ;;  %v614_v48 = vunpack.c.l.b16 %v536_v40 }
 0x1cb   :  { %v5135_v50 = vpop.eup %4461  ;;  %v372_v51 = vmul.f32 1.442695, %v359_v49  ;;  %584 = vmatpush.bf16.msrb.mxu3 %v572_v12 }
 0x1cc   :  { %v5137_v52 = vpop.eup %4463  ;;  %v384_v53 = vsel %vm329_vm3, %v5135_v50, 0.0 }
 0x1cd   :  { %4465 = vpow2.f32 %v372_v51  ;;  %v390_v54 = vsel %vm329_vm3, %v5137_v52, 0.0  ;;  %385 = vadd.xlane.f32.xlu2 %v384_v53  ;;  %v615_v53 = vunpack.c.l.b16 %v537_v43 }
 0x1ce   :  { %391 = vadd.xlane.f32.xlu1 %v390_v54 }
 0x1d3   :  { %v5143_v55 = vpop.eup %4465 }
 0x1d4   :  { %v393_v56 = vsel %vm329_vm3, %v5143_v55, 0.0 }
 0x1d5   :  { %394 = vadd.xlane.f32.xlu0 %v393_v56  ;;  %v594_v56 = vpack.c.b16 %v593_v47, %v592_v46 }
 0x1d7   :  { %606 = vmatpush.bf16.msrb.mxu1 %v594_v56  ;;  %v703_v56 = vunpack.c.l.b16 %v545_v39 }
 0x1d8   :  { %v353_v57 = vpop.xlane.xlu0 %352 }
 0x1d9   :  { %v361_v58 = vsub.f32 %v328_v19, %v353_v57 }
 0x1db   :  { %v376_v59 = vmul.f32 1.442695, %v361_v58 }
 0x1dd   :  { %4467 = vpow2.f32 %v376_v59 }
 0x1e3   :  { %v5147_v60 = vpop.eup %4467 }
 0x1e4   :  { %v399_v61 = vsel %vm329_vm3, %v5147_v60, 0.0 }
 0x1e5   :  { %400 = vadd.xlane.f32.xlu0 %v399_v61  ;;  %v616_v61 = vpack.c.b16 %v615_v53, %v614_v48  ;;  %v702_v53 = vunpack.c.l.b16 %v544_v38 }
 0x220   :  { %v380_v9 = vpop.xlane.xlu2 %379 }
 0x221   :  { %4469 = vrcp.f32 %v380_v9  ;;  %v413_v23 = vand.u32 2147483648, %v380_v9  ;;  %v411_v25 = vand.u32 2147483647, %v380_v9  ;;  %vm407_vm5 = vweird.f32 %v380_v9 }
 0x223   :  { %v414_v35 = vor.u32 1.1754944e-38, %v413_v23  ;;  %vm412_vm7 = vcmp.eq.f32.partialorder %v411_v25, 8.507059e+37 }
 0x227   :  { %v4470_v13 = vpop.eup %4469 }
 0x228   :  { %v403_v15 = vmul.f32 %v4470_v13, %v380_v9  ;;  %v383_v16 = vpop.xlane.xlu1 %382  ;;  %v350_v17 = vpop.xlane.xlu2 %349  ;;  %vm408_vm4 = vweird.f32 %v4470_v13  ;;  %v145_v9 = vld [vmem:[#allocation2 + $0x58] sm:$0xff] }
 0x229   :  { %4471 = vrcp.f32 %v383_v16  ;;  %v360_v19 = vsub.f32 %v5118_v14, %v350_v17  ;;  %vm409_vm6 = vmor %vm407_vm5, %vm408_vm4  ;;  %v428_v63 = vand.u32 2147483648, %v383_v16  ;;  %vm422_vm9 = vweird.f32 %v383_v16 }
 0x22a   :  { %v404_v20 = vsub.f32 1.0, %v403_v15  ;;  %v426_v0 = vand.u32 2147483647, %v383_v16  ;;  %v540_v15 = vpack.c.bf16 %v144_v6, %v144_v6 }
 0x22b   :  { %v374_v22 = vmul.f32 1.442695, %v360_v19  ;;  %v429_v2 = vor.u32 1.1754944e-38, %v428_v63 }
 0x22c   :  { %v405_v24 = vmul.f32 %v4470_v13, %v404_v20  ;;  %vm427_vm11 = vcmp.eq.f32.partialorder %v426_v0, 8.507059e+37  ;;  %v636_v20 = vunpack.c.l.b16 %v538_v8  ;;  %v658_v25 = vunpack.c.l.b16 %v540_v15 }
 0x22d   :  { %4473 = vpow2.f32 %v374_v22 }
 0x22e   :  { %v406_v27 = vadd.f32 %v4470_v13, %v405_v24 }
 0x22f   :  { %v4472_v34 = vpop.eup %4471 }
 0x230   :  { %v418_v14 = vmul.f32 %v4472_v34, %v383_v16  ;;  %v410_v42 = vsel %vm409_vm6, %v4470_v13, %v406_v27  ;;  %vm423_vm8 = vweird.f32 %v4472_v34  ;;  %v539_v13 = vpack.c.bf16 %v143_v5, %v143_v5 }
 0x231   :  { %v415_v45 = vsel %vm412_vm7, %v414_v35, %v410_v42  ;;  %vm424_vm10 = vmor %vm422_vm9, %vm423_vm8  ;;  %v541_v16 = vpack.c.bf16 %v145_v9, %v145_v9 }
 0x232   :  { %v419_v49 = vsub.f32 1.0, %v418_v14  ;;  %v416_v51 = vmul.f32 %v5121_v28, %v415_v45  ;;  %v637_v24 = vunpack.c.l.b16 %v539_v13  ;;  %v147_v45 = vld [vmem:[#allocation2 + $0x68] sm:$0xff] }
 0x233   :  { %v5153_v54 = vpop.eup %4473  ;;  %v659_v27 = vunpack.c.l.b16 %v541_v16 }
 0x234   :  { %v420_v57 = vmul.f32 %v4472_v34, %v419_v49  ;;  %v396_v58 = vsel %vm329_vm3, %v5153_v54, 0.0  ;;  %v522_v59 = vpack.c.bf16 %v416_v51, %v416_v51 }
 0x235   :  { %397 = vadd.xlane.f32.xlu2 %v396_v58  ;;  %v660_v37 = vpack.c.b16 %v659_v27, %v658_v25 }
 0x236   :  { %4233 = vmatmul.msk.bf16.vlgmr.msra.gmra.mxu3 %vm329_vm3, %v522_v59  ;;  %v421_v62 = vadd.f32 %v4472_v34, %v420_v57 }
 0x237   :  { %628 = vmatpush.bf16.msra.mxu3 %v616_v61 }
 0x238   :  { %v389_v28 = vpop.xlane.xlu1 %388  ;;  %v425_v1 = vsel %vm424_vm10, %v4472_v34, %v421_v62  ;;  %v704_v62 = vpack.c.b16 %v703_v56, %v702_v53  ;;  %v4437_v53 = vld [vmem:[#allocation8 + $0x48] sm:$0xff]  ;;  %v4435_v56 = vld [vmem:[#allocation8 + $0x38] sm:$0xff] }
 0x239   :  { %4475 = vrcp.f32 %v389_v28  ;;  %v430_v3 = vsel %vm427_vm11, %v429_v2, %v425_v1  ;;  %v458_v35 = vand.u32 2147483648, %v389_v28  ;;  %vm452_vm13 = vweird.f32 %v389_v28 }
 0x23a   :  { %v431_v12 = vmul.f32 %v5125_v32, %v430_v3  ;;  %v638_v32 = vpack.c.b16 %v637_v24, %v636_v20  ;;  %v456_v14 = vand.u32 2147483647, %v389_v28  ;;  %716 = vmatpush.bf16.msrb.mxu0 %v704_v62 }
 0x23b   :  { %v459_v49 = vor.u32 1.1754944e-38, %v458_v35 }
 0x23c   :  { %v523_v23 = vpack.c.bf16 %v431_v12, %v431_v12  ;;  %650 = vmatpush.bf16.msra.mxu1 %v638_v32  ;;  %vm457_vm15 = vcmp.eq.f32.partialorder %v456_v14, 8.507059e+37 }
 0x23f   :  { %v4476_v7 = vpop.eup %4475 }
 0x240   :  { %v448_v10 = vmul.f32 %v4476_v7, %v389_v28  ;;  %v386_v11 = vpop.xlane.xlu2 %385  ;;  %vm453_vm12 = vweird.f32 %v4476_v7 }
 0x241   :  { %v5159_v17 = vpop.xlane.xlu1 %391  ;;  %4477 = vrcp.f32 %v386_v11  ;;  %vm5166_vm14 = vmor %vm452_vm13, %vm453_vm12  ;;  %v443_v51 = vand.u32 2147483648, %v386_v11  ;;  %v441_v58 = vand.u32 2147483647, %v386_v11  ;;  %vm437_vm4 = vweird.f32 %v386_v11 }
 0x242   :  { %v449_v19 = vsub.f32 1.0, %v448_v10  ;;  %4479 = vrcp.f32 %v5159_v17  ;;  %v473_v12 = vand.u32 2147483648, %v5159_v17  ;;  %vm467_vm9 = vweird.f32 %v5159_v17 }
 0x243   :  { %v444_v0 = vor.u32 1.1754944e-38, %v443_v51  ;;  %vm442_vm6 = vcmp.eq.f32.partialorder %v441_v58, 8.507059e+37  ;;  %v4436_v58 = vld [vmem:[#allocation8 + $0x40] sm:$0xff] }
 0x244   :  { %v450_v22 = vmul.f32 %v4476_v7, %v449_v19  ;;  %v474_v20 = vor.u32 1.1754944e-38, %v473_v12 }
 0x246   :  { %v451_v29 = vadd.f32 %v4476_v7, %v450_v22  ;;  %4234 = vmatmul.msk.bf16.vlgmr.msrb.gmra.mxu3 %vm329_vm3, %v523_v23 }
 0x247   :  { %v4478_v34 = vpop.eup %4477  ;;  %672 = vmatpush.bf16.msrb.mxu3 %v660_v37 }
 0x248   :  { %v5163_v40 = vpop.eup %4479  ;;  %v433_v42 = vmul.f32 %v4478_v34, %v386_v11  ;;  %v395_v43 = vpop.xlane.xlu0 %394  ;;  %v455_v47 = vsel %vm5166_vm14, %v4476_v7, %v451_v29  ;;  %vm438_vm0 = vweird.f32 %v4478_v34 }
 0x249   :  { %v463_v46 = vmul.f32 %v5163_v40, %v5159_v17  ;;  %4481 = vrcp.f32 %v395_v43  ;;  %v460_v61 = vsel %vm457_vm15, %v459_v49, %v455_v47  ;;  %vm439_vm5 = vmor %vm437_vm4, %vm438_vm0  ;;  %vm468_vm7 = vweird.f32 %v5163_v40 }
 0x24a   :  { %v434_v48 = vsub.f32 1.0, %v433_v42  ;;  %v461_v3 = vmul.f32 %v5131_v44, %v460_v61  ;;  %v471_v44 = vand.u32 2147483647, %v5159_v17  ;;  %vm469_vm10 = vmor %vm467_vm9, %vm468_vm7  ;;  %vm482_vm11 = vweird.f32 %v395_v43 }
 0x24b   :  { %v464_v59 = vsub.f32 1.0, %v463_v46  ;;  %v486_v15 = vand.u32 2147483647, %v395_v43  ;;  %v543_v47 = vpack.c.bf16 %v147_v45, %v147_v45 }
 0x24c   :  { %v435_v57 = vmul.f32 %v4478_v34, %v434_v48  ;;  %v525_v10 = vpack.c.bf16 %v461_v3, %v461_v3  ;;  %vm472_vm13 = vcmp.eq.f32.partialorder %v471_v44, 8.507059e+37 }
 0x24d   :  { %v465_v4 = vmul.f32 %v5163_v40, %v464_v59  ;;  %vm487_vm14 = vcmp.eq.f32.partialorder %v486_v15, 8.507059e+37  ;;  %v681_v49 = vunpack.c.l.b16 %v543_v47  ;;  %v4434_v59 = vld [vmem:[#allocation8 + $0x30] sm:$0xff] }
 0x24e   :  { %v436_v63 = vadd.f32 %v4478_v34, %v435_v57 }
 0x24f   :  { %v4482_v28 = vpop.eup %4481  ;;  %v466_v11 = vadd.f32 %v5163_v40, %v465_v4 }
 0x250   :  { %v478_v1 = vmul.f32 %v4482_v28, %v395_v43  ;;  %v440_v2 = vsel %vm439_vm5, %v4478_v34, %v436_v63  ;;  %vm483_vm8 = vweird.f32 %v4482_v28 }
 0x251   :  { %v445_v5 = vsel %vm442_vm6, %v444_v0, %v440_v2  ;;  %v470_v19 = vsel %vm469_vm10, %v5163_v40, %v466_v11  ;;  %vm484_vm12 = vmor %vm482_vm11, %vm483_vm8 }
 0x252   :  { %v479_v6 = vsub.f32 1.0, %v478_v1  ;;  %v446_v7 = vmul.f32 %v5135_v50, %v445_v5  ;;  %v488_v50 = vand.u32 2147483648, %v395_v43  ;;  %v475_v24 = vsel %vm472_vm13, %v474_v20, %v470_v19  ;;  %v146_v43 = vld [vmem:[#allocation2 + $0x60] sm:$0xff] }
 0x253   :  { %v476_v29 = vmul.f32 %v5137_v52, %v475_v24  ;;  %v542_v46 = vpack.c.bf16 %v146_v43, %v146_v43  ;;  %v4439_v24 = vld [vmem:[#allocation8 + $0x58] sm:$0xff] }
 0x254   :  { %v480_v8 = vmul.f32 %v4482_v28, %v479_v6  ;;  %v524_v9 = vpack.c.bf16 %v446_v7, %v446_v7  ;;  %v489_v23 = vor.u32 1.1754944e-38, %v488_v50  ;;  %872 = vmatpush.bf16.msrb.mxu2 %v4439_v24 }
 0x255   :  { %v526_v34 = vpack.c.bf16 %v476_v29, %v476_v29  ;;  %v680_v48 = vunpack.c.l.b16 %v542_v46  ;;  %v5205_v29 = vld [vmem:[#allocation8 + $0x68] sm:$0xff] }
 0x256   :  { %v481_v13 = vadd.f32 %v4482_v28, %v480_v8  ;;  %4235 = vmatmul.msk.bf16.vlgmr.msrb.gmra.mxu1 %vm329_vm3, %v524_v9  ;;  %4236 = vmatmul.msk.bf16.vlgmr.msra.gmra.mxu3 %vm329_vm3, %v525_v10 }
 0x257   :  { %v682_v51 = vpack.c.b16 %v681_v49, %v680_v48  ;;  %756 = vmatpush.bf16.msra.mxu3 %v4437_v53  ;;  %913 = vmatpush.bf16.msra.mxu0 %v5205_v29 }
 0x258   :  { %v401_v16 = vpop.xlane.xlu0 %400  ;;  %v485_v22 = vsel %vm484_vm12, %v4482_v28, %v481_v13 }
 0x259   :  { %4483 = vrcp.f32 %v401_v16  ;;  %v490_v25 = vsel %vm487_vm14, %v489_v23, %v485_v22  ;;  %v518_v33 = vand.u32 2147483648, %v401_v16  ;;  %v516_v38 = vand.u32 2147483647, %v401_v16  ;;  %694 = vmatpush.bf16.msrb.mxu1 %v682_v51 }
 0x25a   :  { %v491_v32 = vmul.f32 %v5143_v55, %v490_v25  ;;  %vm512_vm0 = vweird.f32 %v401_v16 }
 0x25b   :  { %v519_v40 = vor.u32 1.1754944e-38, %v518_v33  ;;  %vm517_vm5 = vcmp.eq.f32.partialorder %v516_v38, 8.507059e+37  ;;  %757 = vmatpush.bf16.msra.mxu3 %v4436_v58 }
 0x25c   :  { %v527_v37 = vpack.c.bf16 %v491_v32, %v491_v32 }
 0x25f   :  { %v4484_v27 = vpop.eup %4483 }
 0x260   :  { %v508_v17 = vmul.f32 %v4484_v27, %v401_v16  ;;  %vm513_vm15 = vweird.f32 %v4484_v27 }
 0x261   :  { %vm514_vm4 = vmor %vm512_vm0, %vm513_vm15 }
 0x262   :  { %v509_v30 = vsub.f32 1.0, %v508_v17 }
 0x264   :  { %v510_v35 = vmul.f32 %v4484_v27, %v509_v30 }
 0x266   :  { %4237 = vmatmul.msk.bf16.vlgmr.msra.gmra.mxu1 %vm329_vm3, %v526_v34  ;;  %4238 = vmatmul.msk.bf16.vlgmr.msrb.gmra.mxu3 %vm329_vm3, %v527_v37  ;;  %v511_v39 = vadd.f32 %v4484_v27, %v510_v35  ;;  %v820_v34 = vperm.slane %v5092_v21, 2 }
 0x267   :  { %797 = vmatpush.bf16.msra.mxu1 %v4435_v56  ;;  %2532 = vmatpush.bf16.msrb.mxu3 %v5205_v29 }
 0x268   :  { %v515_v14 = vsel %vm514_vm4, %v4484_v27, %v511_v39  ;;  %v4438_v27 = vld [vmem:[#allocation8 + $0x50] sm:$0xff] }
 0x269   :  { %v520_v52 = vsel %vm517_vm5, %v519_v40, %v515_v14  ;;  %873 = vmatpush.bf16.msrb.mxu2 %v4438_v27 }
 0x26a   :  { %v521_v55 = vmul.f32 %v5147_v60, %v520_v52 }
 0x26b   :  { %798 = vmatpush.bf16.msra.mxu1 %v4434_v59 }
 0x26c   :  { %v529_v42 = vpack.c.bf16 %v521_v55, %v521_v55 }
 0x26d   :  { %3350 = vmatpush.bf16.msra.mxu2 %v5205_v29 }
 0x26e   :  { %4240 = vmatmul.msk.bf16.vlgmr.msrb.gmra.mxu0 %vm329_vm3, %v529_v42 }
 0x2a8   :  { %v398_v57 = vpop.xlane.xlu2 %397 }
 0x2a9   :  { %4485 = vrcp.f32 %v398_v57  ;;  %v503_v63 = vand.u32 2147483648, %v398_v57  ;;  %v501_v0 = vand.u32 2147483647, %v398_v57  ;;  %vm497_vm7 = vweird.f32 %v398_v57 }
 0x2ab   :  { %v504_v2 = vor.u32 1.1754944e-38, %v503_v63  ;;  %vm502_vm9 = vcmp.eq.f32.partialorder %v501_v0, 8.507059e+37 }
 0x2af   :  { %v4486_v60 = vpop.eup %4485 }
 0x2b0   :  { %v493_v61 = vmul.f32 %v4486_v60, %v398_v57  ;;  %vm498_vm6 = vweird.f32 %v4486_v60 }
 0x2b1   :  { %vm499_vm8 = vmor %vm497_vm7, %vm498_vm6 }
 0x2b2   :  { %v494_v62 = vsub.f32 1.0, %v493_v61 }
 0x2b4   :  { %v495_v28 = vmul.f32 %v4486_v60, %v494_v62 }
 0x2b6   :  { %v496_v1 = vadd.f32 %v4486_v60, %v495_v28 }
 0x2b8   :  { %v500_v3 = vsel %vm499_vm8, %v4486_v60, %v496_v1 }
 0x2b9   :  { %v564_v4 = vpop.f32.mrf.mxu3  ;;  %v505_v5 = vsel %vm502_vm9, %v504_v2, %v500_v3 }
 0x2ba   :  { %v506_v6 = vmul.f32 %v5153_v54, %v505_v5 }
 0x2bc   :  { %v528_v7 = vpack.c.bf16 %v506_v6, %v506_v6 }
 0x2be   :  { %4239 = vmatmul.msk.bf16.vlgmr.msrb.gmra.mxu1 %vm329_vm3, %v528_v7 }
 0x2bf   :  { %2941 = vmatpush.bf16.msrb.mxu1 %v5205_v29 }
 0x2c1   :  { %v566_v8 = vpop.f32.mrf.mxu3 }
 0x2c9   :  { %v586_v9 = vpop.f32.mrf.mxu3 }
 0x2ca   :  { %v722_v10 = vpack.c.bf16 %v586_v9, %v564_v4 }
 0x2cc   :  { %4249 = vmatmul.msk.bf16.vlgmr.msra.gmra.mxu3 %vm6972_vm2, %v722_v10 }
 0x2ce   :  { %4261 = vmatmul.msk.bf16.vlgmr.msra.gmra.mxu1 %vm6972_vm2, %v5095_v26 }
 0x2d1   :  { %v588_v11 = vpop.f32.mrf.mxu3 }
 0x2d3   :  { %v608_v12 = vpop.f32.mrf.mxu1 }
 0x2d9   :  { %v630_v13 = vpop.f32.mrf.mxu3 }
 0x2da   :  { %v723_v44 = vpack.c.bf16 %v630_v13, %v608_v12 }
 0x2db   :  { %v610_v50 = vpop.f32.mrf.mxu1 }
 0x2dc   :  { %4250 = vmatmul.msk.bf16.gmra.mxu3 %vm6972_vm2, %v723_v44  ;;  %v5231_v50 = vperm.slane %v5092_v21, 3 }
 0x2de   :  { %4262 = vmatmul.msk.bf16.gmra.mxu1 %vm6972_vm2, %v5099_v31 }
 0x2e1   :  { %v632_v54 = vpop.f32.mrf.mxu3 }
 0x2e3   :  { %v652_v15 = vpop.f32.mrf.mxu1 }
 0x2e9   :  { %v674_v16 = vpop.f32.mrf.mxu3 }
 0x2ea   :  { %v724_v19 = vpack.c.bf16 %v674_v16, %v652_v15 }
 0x2eb   :  { %v654_v20 = vpop.f32.mrf.mxu1  ;;  %v718_v22 = vpop.f32.mrf.mxu0 }
 0x2ec   :  { %4251 = vmatmul.msk.bf16.gmra.mxu3 %vm6972_vm2, %v724_v19 }
 0x2ee   :  { %4263 = vmatmul.msk.bf16.gmra.mxu1 %vm6972_vm2, %v5103_v36  ;;  %v5209_v36 = vld [vmem:[#allocation8 + $0x60] sm:$0xff] }
 0x2ef   :  { %914 = vmatpush.bf16.msra.mxu0 %v5209_v36  ;;  %2533 = vmatpush.bf16.msrb.mxu3 %v5209_v36 }
 0x2f0   :  { %2942 = vmatpush.bf16.msrb.mxu1 %v5209_v36  ;;  %3351 = vmatpush.bf16.msra.mxu2 %v5209_v36 }
 0x2f1   :  { %v676_v26 = vpop.f32.mrf.mxu3 }
 0x2f2   :  { %4285 = vmatmul.msk.bf16.vlgmr.msra.gmra.mxu0 %vm6972_vm2, %v5088_v18 }
 0x2f3   :  { %v720_v23 = vpop.f32.mrf.mxu0  ;;  %1305 = vmatpush.bf16.msrb.mxu0 %v5205_v29 }
 0x2f7   :  { %1306 = vmatpush.bf16.msrb.mxu0 %v5209_v36 }
 0x2fb   :  { %1714 = vmatpush.bf16.msra.mxu0 %v5205_v29 }
 0x2fe   :  { %4264 = vmatmul.msk.bf16.gmra.mxu1 %vm6972_vm2, %v5107_v41 }
 0x2ff   :  { %1715 = vmatpush.bf16.msra.mxu0 %v5209_v36 }
 0x33b   :  { %v696_v25 = vpop.f32.mrf.mxu1 }
 0x33c   :  { %v725_v31 = vpack.c.bf16 %v718_v22, %v696_v25 }
 0x33e   :  { %4252 = vmatmul.msk.bf16.gmra.mxu3 %vm6972_vm2, %v725_v31 }
 0x343   :  { %v698_v17 = vpop.f32.mrf.mxu1 }
 0x34b   :  { %v800_v41 = vpop.f32.mrf.mxu1 }
 0x34f   :  { %v759_v32 = vpop.f32.mrf.mxu3 }
 0x350   :  { %v801_v33 = vadd.f32 %v800_v41, %v759_v32 }
 0x352   :  { %v821_v37 = vadd.f32 %v820_v34, %v801_v33 }
 0x353   :  { %v802_v30 = vpop.f32.mrf.mxu1 }
 0x354   :  { %v829_v14 = vmax.f32 %v821_v37, 0.0 }
 0x357   :  { %v761_v35 = vpop.f32.mrf.mxu3 }
 0x358   :  { %v803_v38 = vadd.f32 %v802_v30, %v761_v35 }
 0x35a   :  { %v822_v39 = vadd.f32 %v820_v34, %v803_v38 }
 0x35b   :  { %v805_v40 = vpop.f32.mrf.mxu1 }
 0x35c   :  { %v830_v52 = vmax.f32 %v822_v39, 0.0 }
 0x35e   :  { %v837_v18 = vpack.c.bf16 %v830_v52, %v829_v14 }
 0x35f   :  { %v764_v55 = vpop.f32.mrf.mxu3 }
 0x360   :  { %4273 = vmatmul.msk.bf16.vlgmr.msrb.gmra.mxu2 %vm6972_vm2, %v837_v18  ;;  %v806_v43 = vadd.f32 %v805_v40, %v764_v55 }
 0x362   :  { %v823_v46 = vadd.f32 %v820_v34, %v806_v43 }
 0x363   :  { %v807_v42 = vpop.f32.mrf.mxu1 }
 0x364   :  { %v831_v49 = vmax.f32 %v823_v46, 0.0 }
 0x367   :  { %v766_v45 = vpop.f32.mrf.mxu3 }
 0x368   :  { %v808_v47 = vadd.f32 %v807_v42, %v766_v45 }
 0x36a   :  { %v824_v48 = vadd.f32 %v820_v34, %v808_v47 }
 0x36b   :  { %v810_v53 = vpop.f32.mrf.mxu1 }
 0x36c   :  { %v832_v51 = vmax.f32 %v824_v48, 0.0 }
 0x36e   :  { %v838_v56 = vpack.c.bf16 %v832_v51, %v831_v49 }
 0x36f   :  { %v769_v57 = vpop.f32.mrf.mxu3  ;;  %v5227_v5 = vpop.f32.mrf.mxu0 }
 0x370   :  { %4274 = vmatmul.msk.bf16.gmra.mxu2 %vm6972_vm2, %v838_v56  ;;  %v811_v58 = vadd.f32 %v810_v53, %v769_v57  ;;  %v921_v20 = vrot.slane %v5227_v5, 1  ;;  %v922_v31 = vrot.slane %v5227_v5, 2  ;;  %v923_v35 = vrot.slane %v5227_v5, 3 }
 0x371   :  { %v924_v47 = vrot.slane %v5227_v5, 4 }
 0x372   :  { %v825_v61 = vadd.f32 %v820_v34, %v811_v58 }
 0x373   :  { %v812_v59 = vpop.f32.mrf.mxu1 }
 0x374   :  { %v833_v28 = vmax.f32 %v825_v61, 0.0 }
 0x377   :  { %v771_v60 = vpop.f32.mrf.mxu3  ;;  %v918_v13 = vpop.f32.mrf.mxu0 }
 0x378   :  { %v813_v62 = vadd.f32 %v812_v59, %v771_v60 }
 0x37a   :  { %v826_v63 = vadd.f32 %v820_v34, %v813_v62 }
 0x37b   :  { %v815_v2 = vpop.f32.mrf.mxu1 }
 0x37c   :  { %v834_v0 = vmax.f32 %v826_v63, 0.0 }
 0x37e   :  { %v839_v1 = vpack.c.bf16 %v834_v0, %v833_v28 }
 0x380   :  { %4275 = vmatmul.msk.bf16.gmra.mxu2 %vm6972_vm2, %v839_v1 }
 0x383   :  { %v817_v6 = vpop.f32.mrf.mxu1 }
 0x3c1   :  { %v774_v3 = vpop.f32.mrf.mxu3 }
 0x3c2   :  { %v816_v4 = vadd.f32 %v815_v2, %v774_v3 }
 0x3c4   :  { %v827_v8 = vadd.f32 %v820_v34, %v816_v4 }
 0x3c6   :  { %v835_v11 = vmax.f32 %v827_v8, 0.0 }
 0x3c9   :  { %v776_v7 = vpop.f32.mrf.mxu3 }
 0x3ca   :  { %v818_v9 = vadd.f32 %v817_v6, %v776_v7  ;;  %v925_v6 = vrot.slane %v5227_v5, 5 }
 0x3cc   :  { %v828_v10 = vadd.f32 %v820_v34, %v818_v9 }
 0x3ce   :  { %v836_v12 = vmax.f32 %v828_v10, 0.0 }
 0x3d0   :  { %v840_v44 = vpack.c.bf16 %v836_v12, %v835_v11 }
 0x3d2   :  { %4276 = vmatmul.msk.bf16.gmra.mxu2 %vm6972_vm2, %v840_v44 }
 0x3e3   :  { %v875_v54 = vpop.f32.mrf.mxu2 }
 0x3e4   :  { %v5234_v15 = vadd.f32 %v875_v54, %v5231_v50 }
 0x3e6   :  { %v936_v16 = vadd.f32 %v5227_v5, %v5234_v15 }
 0x3e8   :  { %v4286_v19 = vmul.f32 -1.442695, %v936_v16 }
 0x3ea   :  { %4487 = vpow2.f32 %v4286_v19 }
 0x3eb   :  { %v877_v22 = vpop.f32.mrf.mxu2 }
 0x3ec   :  { %v5240_v26 = vadd.f32 %v877_v22, %v5231_v50 }
 0x3ee   :  { %v937_v23 = vadd.f32 %v921_v20, %v5240_v26 }
 0x3f0   :  { %v4488_v24 = vpop.eup %4487  ;;  %v4287_v21 = vmul.f32 -1.442695, %v937_v23 }
 0x3f1   :  { %v968_v25 = vadd.f32 1.0, %v4488_v24 }
 0x3f2   :  { %4489 = vpow2.f32 %v4287_v21 }
 0x3f3   :  { %v880_v27 = vpop.f32.mrf.mxu2  ;;  %4491 = vrcp.f32 %v968_v25  ;;  %v987_v14 = vand.u32 2147483648, %v968_v25  ;;  %v985_v18 = vand.u32 2147483647, %v968_v25  ;;  %vm981_vm10 = vweird.f32 %v968_v25 }
 0x3f4   :  { %v5245_v17 = vadd.f32 %v880_v27, %v5231_v50 }
 0x3f5   :  { %v988_v48 = vor.u32 1.1754944e-38, %v987_v14  ;;  %vm986_vm12 = vcmp.eq.f32.partialorder %v985_v18, 8.507059e+37 }
 0x3f6   :  { %v938_v41 = vadd.f32 %v922_v31, %v5245_v17 }
 0x3f8   :  { %v4490_v32 = vpop.eup %4489  ;;  %v4288_v30 = vmul.f32 -1.442695, %v938_v41 }
 0x3f9   :  { %v4492_v33 = vpop.eup %4491  ;;  %v969_v34 = vadd.f32 1.0, %v4490_v32 }
 0x3fa   :  { %v977_v37 = vmul.f32 %v4492_v33, %v968_v25  ;;  %4493 = vpow2.f32 %v4288_v30  ;;  %vm982_vm3 = vweird.f32 %v4492_v33 }
 0x3fb   :  { %v882_v38 = vpop.f32.mrf.mxu2  ;;  %4495 = vrcp.f32 %v969_v34  ;;  %vm983_vm11 = vmor %vm981_vm10, %vm982_vm3  ;;  %v1000_v61 = vand.u32 2147483647, %v969_v34  ;;  %v1002_v62 = vand.u32 2147483648, %v969_v34  ;;  %vm996_vm14 = vweird.f32 %v969_v34 }
 0x3fc   :  { %v5250_v39 = vadd.f32 %v882_v38, %v5231_v50  ;;  %v978_v40 = vsub.f32 1.0, %v977_v37 }
 0x3fd   :  { %v1003_v7 = vor.u32 1.1754944e-38, %v1002_v62  ;;  %vm1001_vm0 = vcmp.eq.f32.partialorder %v1000_v61, 8.507059e+37 }
 0x3fe   :  { %v979_v52 = vmul.f32 %v4492_v33, %v978_v40  ;;  %v939_v55 = vadd.f32 %v923_v35, %v5250_v39 }
 0x400   :  { %v4494_v42 = vpop.eup %4493  ;;  %v980_v43 = vadd.f32 %v4492_v33, %v979_v52  ;;  %v4289_v45 = vmul.f32 -1.442695, %v939_v55 }
 0x401   :  { %v4496_v46 = vpop.eup %4495  ;;  %v970_v49 = vadd.f32 1.0, %v4494_v42 }
 0x402   :  { %v984_v51 = vsel %vm983_vm11, %v4492_v33, %v980_v43  ;;  %v992_v53 = vmul.f32 %v4496_v46, %v969_v34  ;;  %4497 = vpow2.f32 %v4289_v45  ;;  %vm997_vm13 = vweird.f32 %v4496_v46 }
 0x403   :  { %v885_v56 = vpop.f32.mrf.mxu2  ;;  %v5254_v57 = vsel %vm986_vm12, %v988_v48, %v984_v51  ;;  %4499 = vrcp.f32 %v970_v49  ;;  %vm998_vm15 = vmor %vm996_vm14, %vm997_vm13  ;;  %v1015_v16 = vand.u32 2147483647, %v970_v49  ;;  %v1017_v19 = vand.u32 2147483648, %v970_v49 }
 0x404   :  { %v5257_v58 = vadd.f32 %v885_v56, %v5231_v50  ;;  %v1096_v59 = vmul.f32 2.0, %v5254_v57  ;;  %v993_v60 = vsub.f32 1.0, %v992_v53  ;;  %vm1011_vm5 = vweird.f32 %v970_v49 }
 0x405   :  { %v1018_v27 = vor.u32 1.1754944e-38, %v1017_v19  ;;  %vm1016_vm7 = vcmp.eq.f32.partialorder %v1015_v16, 8.507059e+37  ;;  %v926_v19 = vrot.slane %v5227_v5, 6 }
 0x406   :  { %v4294_v63 = vadd.f32 -1.0, %v1096_v59  ;;  %v994_v28 = vmul.f32 %v4496_v46, %v993_v60  ;;  %v940_v0 = vadd.f32 %v924_v47, %v5257_v58 }
 0x408   :  { %v4498_v1 = vpop.eup %4497  ;;  %1128 = vrot.lane.b32.xlu0 %v4294_v63, %s5028_s28  ;;  %v995_v2 = vadd.f32 %v4496_v46, %v994_v28  ;;  %v4290_v3 = vmul.f32 -1.442695, %v940_v0 }
 0x409   :  { %v4500_v4 = vpop.eup %4499  ;;  %v971_v8 = vadd.f32 1.0, %v4498_v1 }
 0x40a   :  { %v999_v9 = vsel %vm998_vm15, %v4496_v46, %v995_v2  ;;  %v1007_v10 = vmul.f32 %v4500_v4, %v970_v49  ;;  %4501 = vpow2.f32 %v4290_v3  ;;  %vm1012_vm4 = vweird.f32 %v4500_v4 }
 0x40b   :  { %v887_v11 = vpop.f32.mrf.mxu2  ;;  %v5263_v12 = vsel %vm1001_vm0, %v1003_v7, %v999_v9  ;;  %4503 = vrcp.f32 %v971_v8  ;;  %vm1013_vm6 = vmor %vm1011_vm5, %vm1012_vm4  ;;  %v1032_v37 = vand.u32 2147483648, %v971_v8  ;;  %v1030_v14 = vand.u32 2147483647, %v971_v8 }
 0x40c   :  { %v5266_v13 = vadd.f32 %v887_v11, %v5231_v50  ;;  %v1097_v44 = vmul.f32 2.0, %v5263_v12  ;;  %v1008_v54 = vsub.f32 1.0, %v1007_v10  ;;  %vm1026_vm9 = vweird.f32 %v971_v8 }
 0x40d   :  { %v1033_v42 = vor.u32 1.1754944e-38, %v1032_v37  ;;  %vm1031_vm10 = vcmp.eq.f32.partialorder %v1030_v14, 8.507059e+37 }
 0x40e   :  { %v4295_v20 = vadd.f32 -1.0, %v1097_v44  ;;  %v1009_v22 = vmul.f32 %v4500_v4, %v1008_v54  ;;  %v941_v23 = vadd.f32 %v925_v6, %v5266_v13 }
 0x410   :  { %v4502_v24 = vpop.eup %4501  ;;  %1130 = vrot.lane.b32.xlu1 %v4295_v20, %s5028_s28  ;;  %v1010_v21 = vadd.f32 %v4500_v4, %v1009_v22  ;;  %v4291_v25 = vmul.f32 -1.442695, %v941_v23 }
 0x411   :  { %v4504_v31 = vpop.eup %4503  ;;  %v972_v41 = vadd.f32 1.0, %v4502_v24 }
 0x412   :  { %v1014_v32 = vsel %vm1013_vm6, %v4500_v4, %v1010_v21  ;;  %v1022_v30 = vmul.f32 %v4504_v31, %v971_v8  ;;  %4505 = vpow2.f32 %v4291_v25  ;;  %vm1027_vm8 = vweird.f32 %v4504_v31 }
 0x413   :  { %v5271_v33 = vsel %vm1016_vm7, %v1018_v27, %v1014_v32  ;;  %4507 = vrcp.f32 %v972_v41  ;;  %vm1028_vm3 = vmor %vm1026_vm9, %vm1027_vm8  ;;  %v1047_v51 = vand.u32 2147483648, %v972_v41  ;;  %v1045_v59 = vand.u32 2147483647, %v972_v41 }
 0x414   :  { %v1098_v34 = vmul.f32 2.0, %v5271_v33  ;;  %v1023_v35 = vsub.f32 1.0, %v1022_v30  ;;  %vm1041_vm12 = vweird.f32 %v972_v41  ;;  %v927_v21 = vrot.slane %v5227_v5, 7 }
 0x415   :  { %v1048_v62 = vor.u32 1.1754944e-38, %v1047_v51  ;;  %vm1046_vm14 = vcmp.eq.f32.partialorder %v1045_v59, 8.507059e+37 }
 0x416   :  { %v4296_v38 = vadd.f32 -1.0, %v1098_v34  ;;  %v1024_v40 = vmul.f32 %v4504_v31, %v1023_v35 }
 0x418   :  { %v4506_v52 = vpop.eup %4505  ;;  %1132 = vrot.lane.b32.xlu2 %v4296_v38, %s5028_s28  ;;  %v1025_v18 = vadd.f32 %v4504_v31, %v1024_v40 }
 0x419   :  { %v4508_v55 = vpop.eup %4507  ;;  %v973_v43 = vadd.f32 1.0, %v4506_v52 }
 0x41a   :  { %v1029_v45 = vsel %vm1028_vm3, %v4504_v31, %v1025_v18  ;;  %v1037_v46 = vmul.f32 %v4508_v55, %v972_v41  ;;  %vm1042_vm11 = vweird.f32 %v4508_v55 }
 0x41b   :  { %v5275_v47 = vsel %vm1031_vm10, %v1033_v42, %v1029_v45  ;;  %4509 = vrcp.f32 %v973_v43  ;;  %vm1043_vm13 = vmor %vm1041_vm12, %vm1042_vm11  ;;  %v1062_v3 = vand.u32 2147483648, %v973_v43  ;;  %v1060_v7 = vand.u32 2147483647, %v973_v43 }
 0x41c   :  { %v1099_v48 = vmul.f32 2.0, %v5275_v47  ;;  %v1038_v49 = vsub.f32 1.0, %v1037_v46  ;;  %vm1056_vm0 = vweird.f32 %v973_v43 }
 0x41d   :  { %v1063_v9 = vor.u32 1.1754944e-38, %v1062_v3  ;;  %vm1061_vm5 = vcmp.eq.f32.partialorder %v1060_v7, 8.507059e+37 }
 0x41e   :  { %v4297_v53 = vadd.f32 -1.0, %v1099_v48  ;;  %v1039_v56 = vmul.f32 %v4508_v55, %v1038_v49 }
 0x420   :  { %1134 = vrot.lane.b32.xlu2 %v4297_v53, %s5028_s28  ;;  %v1040_v60 = vadd.f32 %v4508_v55, %v1039_v56 }
 0x421   :  { %v4510_v61 = vpop.eup %4509 }
 0x422   :  { %v1044_v63 = vsel %vm1043_vm13, %v4508_v55, %v1040_v60  ;;  %v1052_v28 = vmul.f32 %v4510_v61, %v973_v43  ;;  %vm1057_vm15 = vweird.f32 %v4510_v61  ;;  %vm6979_vm13 = vcmask 1041409  }
 0x423   :  { %v5279_v0 = vsel %vm1046_vm14, %v1048_v62, %v1044_v63  ;;  %vm1058_vm4 = vmor %vm1056_vm0, %vm1057_vm15  ;;  %vm6978_vm14 = vcmask 1042434   ;;  %vm6977_vm15 = vcmask 1043459   ;;  %vm6976_vm0 = vcmask 1044484  }
 0x424   :  { %v1100_v1 = vmul.f32 2.0, %v5279_v0  ;;  %v1053_v2 = vsub.f32 1.0, %v1052_v28 }
 0x426   :  { %v4298_v4 = vadd.f32 -1.0, %v1100_v1  ;;  %v1054_v6 = vmul.f32 %v4510_v61, %v1053_v2 }
 0x428   :  { %1136 = vrot.lane.b32.xlu1 %v4298_v4, %s5028_s28  ;;  %v1055_v8 = vadd.f32 %v4510_v61, %v1054_v6 }
 0x42a   :  { %v1059_v10 = vsel %vm1058_vm4, %v4510_v61, %v1055_v8  ;;  %vm6975_vm4 = vcmask 1045509  }
 0x42b   :  { %v5283_v11 = vsel %vm1061_vm5, %v1063_v9, %v1059_v10  ;;  %vm6974_vm5 = vcmask 1046534  }
 0x42c   :  { %v1101_v44 = vmul.f32 2.0, %v5283_v11 }
 0x42e   :  { %v4299_v54 = vadd.f32 -1.0, %v1101_v44 }
 0x430   :  { %1138 = vrot.lane.b32.xlu0 %v4299_v54, %s5028_s28 }
 0x455   :  { %v890_v16 = vpop.f32.mrf.mxu2 }
 0x456   :  { %v5289_v20 = vadd.f32 %v890_v16, %v5231_v50 }
 0x458   :  { %v942_v22 = vadd.f32 %v926_v19, %v5289_v20 }
 0x45a   :  { %v4292_v23 = vmul.f32 -1.442695, %v942_v22  ;;  %v1114_v22 = vmul.f32 0.0, %v5271_v33 }
 0x45c   :  { %4511 = vpow2.f32 %v4292_v23 }
 0x45d   :  { %v892_v24 = vpop.f32.mrf.mxu2 }
 0x45e   :  { %v5294_v25 = vadd.f32 %v892_v24, %v5231_v50 }
 0x460   :  { %v943_v31 = vadd.f32 %v927_v21, %v5294_v25 }
 0x462   :  { %v4512_v27 = vpop.eup %4511  ;;  %v4293_v41 = vmul.f32 -1.442695, %v943_v31 }
 0x463   :  { %v974_v32 = vadd.f32 1.0, %v4512_v27 }
 0x464   :  { %4513 = vpow2.f32 %v4293_v41  ;;  %v1113_v41 = vmul.f32 0.0, %v5263_v12 }
 0x465   :  { %4515 = vrcp.f32 %v974_v32  ;;  %v1077_v40 = vand.u32 2147483648, %v974_v32  ;;  %v1075_v5 = vand.u32 2147483647, %v974_v32  ;;  %vm1071_vm7 = vweird.f32 %v974_v32 }
 0x467   :  { %v1078_v18 = vor.u32 1.1754944e-38, %v1077_v40  ;;  %vm1076_vm9 = vcmp.eq.f32.partialorder %v1075_v5, 8.507059e+37  ;;  %v1115_v5 = vmul.f32 0.0, %v5275_v47 }
 0x46a   :  { %v4514_v30 = vpop.eup %4513 }
 0x46b   :  { %v4516_v34 = vpop.eup %4515  ;;  %v975_v35 = vadd.f32 1.0, %v4514_v30 }
 0x46c   :  { %v1067_v37 = vmul.f32 %v4516_v34, %v974_v32  ;;  %vm1072_vm6 = vweird.f32 %v4516_v34  ;;  %v1116_v32 = vmul.f32 0.0, %v5279_v0 }
 0x46d   :  { %4517 = vrcp.f32 %v975_v35  ;;  %vm1073_vm8 = vmor %vm1071_vm7, %vm1072_vm6  ;;  %v1092_v48 = vand.u32 2147483648, %v975_v35  ;;  %v1090_v53 = vand.u32 2147483647, %v975_v35  ;;  %vm1086_vm10 = vweird.f32 %v975_v35 }
 0x46e   :  { %v1068_v38 = vsub.f32 1.0, %v1067_v37  ;;  %vm6973_vm6 = vcmask 1047559  }
 0x46f   :  { %v1093_v59 = vor.u32 1.1754944e-38, %v1092_v48  ;;  %vm1091_vm12 = vcmp.eq.f32.partialorder %v1090_v53, 8.507059e+37 }
 0x470   :  { %v1069_v14 = vmul.f32 %v4516_v34, %v1068_v38  ;;  %v1112_v38 = vmul.f32 0.0, %v5254_v57 }
 0x472   :  { %v1070_v52 = vadd.f32 %v4516_v34, %v1069_v14  ;;  %v1133_v61 = vpop.permute.xlu2 %1132 }
 0x473   :  { %v4518_v50 = vpop.eup %4517  ;;  %v1154_v28 = vmul.f32 %v1133_v61, %v5271_v33 }
 0x474   :  { %v1074_v55 = vsel %vm1073_vm8, %v4516_v34, %v1070_v52  ;;  %v1082_v42 = vmul.f32 %v4518_v50, %v975_v35  ;;  %vm1087_vm3 = vweird.f32 %v4518_v50 }
 0x475   :  { %v5297_v43 = vsel %vm1076_vm9, %v1078_v18, %v1074_v55  ;;  %vm1088_vm11 = vmor %vm1086_vm10, %vm1087_vm3 }
 0x476   :  { %v1102_v45 = vmul.f32 2.0, %v5297_v43  ;;  %v1083_v46 = vsub.f32 1.0, %v1082_v42  ;;  %v1118_v53 = vmul.f32 0.0, %v5297_v43 }
 0x478   :  { %v4300_v49 = vadd.f32 -1.0, %v1102_v45  ;;  %v1084_v51 = vmul.f32 %v4518_v50, %v1083_v46  ;;  %v1117_v46 = vmul.f32 0.0, %v5283_v11 }
 0x47a   :  { %1140 = vrot.lane.b32.xlu2 %v4300_v49, %s5028_s28  ;;  %v1085_v56 = vadd.f32 %v4518_v50, %v1084_v51  ;;  %v1129_v4 = vpop.permute.xlu0 %1128  ;;  %v1135_v7 = vpop.permute.xlu2 %1134 }
 0x47b   :  { %v1152_v6 = vmul.f32 %v1129_v4, %v5254_v57  ;;  %v1155_v8 = vmul.f32 %v1135_v7, %v5275_v47 }
 0x47c   :  { %v1089_v60 = vsel %vm1088_vm11, %v4518_v50, %v1085_v56 }
 0x47d   :  { %v5301_v62 = vsel %vm1091_vm12, %v1093_v59, %v1089_v60 }
 0x47e   :  { %v1103_v63 = vmul.f32 2.0, %v5301_v62  ;;  %v1119_v60 = vmul.f32 0.0, %v5301_v62 }
 0x480   :  { %v4301_v1 = vadd.f32 -1.0, %v1103_v63 }
 0x482   :  { %1172 = vrot.lane.b32.xlu2 %v1154_v28, %s5035_s2  ;;  %1142 = vrot.lane.b32.xlu1 %v4301_v1, %s5028_s28  ;;  %v1131_v2 = vpop.permute.xlu1 %1130 }
 0x483   :  { %v1153_v3 = vmul.f32 %v1131_v2, %v5263_v12 }
 0x485   :  { %1170 = vrot.lane.b32.xlu0 %v1153_v3, %s5035_s2 }
 0x48a   :  { %1168 = vrot.lane.b32.xlu1 %v1152_v6, %s5035_s2 }
 0x48d   :  { %1174 = vrot.lane.b32.xlu0 %v1155_v8, %s5035_s2 }
 0x49a   :  { %v1137_v9 = vpop.permute.xlu1 %1136 }
 0x49b   :  { %v1156_v10 = vmul.f32 %v1137_v9, %v5279_v0 }
 0x49d   :  { %1176 = vrot.lane.b32.xlu2 %v1156_v10, %s5035_s2 }
 0x4a2   :  { %v1139_v44 = vpop.permute.xlu0 %1138 }
 0x4a3   :  { %v1157_v54 = vmul.f32 %v1139_v44, %v5283_v11 }
 0x4a5   :  { %1178 = vrot.lane.b32.xlu1 %v1157_v54, %s5035_s2 }
 0x4d4   :  { %v1141_v16 = vpop.permute.xlu2 %1140 }
 0x4d5   :  { %v1158_v19 = vmul.f32 %v1141_v16, %v5297_v43 }
 0x4d7   :  { %1180 = vrot.lane.b32.xlu0 %v1158_v19, %s5035_s2 }
 0x4dc   :  { %v1173_v23 = vpop.permute.xlu2 %1172 }
 0x4dd   :  { %v5320_v24 = vadd.f32 %v1173_v23, %v1114_v22 }
 0x4df   :  { %4519 = vtanh.f32 %v5320_v24 }
 0x4e5   :  { %v4520_v21 = vpop.eup %4519 }
 0x4e6   :  { %1220 = vrot.lane.b32.xlu0 %v4520_v21, %s5028_s28 }
 0x4f4   :  { %v1143_v31 = vpop.permute.xlu1 %1142 }
 0x4f5   :  { %v1159_v27 = vmul.f32 %v1143_v31, %v5301_v62 }
 0x4f7   :  { %v1171_v30 = vpop.permute.xlu0 %1170  ;;  %v1177_v34 = vpop.permute.xlu2 %1176  ;;  %1182 = vrot.lane.b32.xlu2 %v1159_v27, %s5035_s2 }
 0x4f8   :  { %v5328_v35 = vadd.f32 %v1171_v30, %v1113_v41  ;;  %v5330_v37 = vadd.f32 %v1177_v34, %v1116_v32 }
 0x4fa   :  { %4521 = vtanh.f32 %v5328_v35 }
 0x4fb   :  { %4523 = vtanh.f32 %v5330_v37 }
 0x4fc   :  { %v1169_v40 = vpop.permute.xlu1 %1168 }
 0x4fd   :  { %v5335_v14 = vadd.f32 %v1169_v40, %v1112_v38 }
 0x4ff   :  { %4525 = vtanh.f32 %v5335_v14  ;;  %v1175_v52 = vpop.permute.xlu0 %1174 }
 0x500   :  { %v4522_v50 = vpop.eup %4521  ;;  %v5339_v18 = vadd.f32 %v1175_v52, %v1115_v5 }
 0x501   :  { %v4524_v55 = vpop.eup %4523  ;;  %1218 = vrot.lane.b32.xlu1 %v4522_v50, %s5028_s28 }
 0x502   :  { %4527 = vtanh.f32 %v5339_v18  ;;  %1224 = vrot.lane.b32.xlu0 %v4524_v55, %s5028_s28 }
 0x505   :  { %v4526_v42 = vpop.eup %4525 }
 0x506   :  { %1216 = vrot.lane.b32.xlu2 %v4526_v42, %s5028_s28 }
 0x508   :  { %v4528_v45 = vpop.eup %4527 }
 0x509   :  { %1222 = vrot.lane.b32.xlu1 %v4528_v45, %s5028_s28 }
 0x517   :  { %v1179_v48 = vpop.permute.xlu1 %1178 }
 0x518   :  { %v5347_v49 = vadd.f32 %v1179_v48, %v1117_v46 }
 0x51a   :  { %4529 = vtanh.f32 %v5347_v49 }
 0x520   :  { %v4530_v51 = vpop.eup %4529 }
 0x521   :  { %1226 = vrot.lane.b32.xlu2 %v4530_v51, %s5028_s28 }
 0x549   :  { %v1181_v56 = vpop.permute.xlu0 %1180 }
 0x54a   :  { %v5352_v59 = vadd.f32 %v1181_v56, %v1118_v53 }
 0x54c   :  { %4531 = vtanh.f32 %v5352_v59 }
 0x551   :  { %v1183_v61 = vpop.permute.xlu2 %1182 }
 0x552   :  { %v4532_v63 = vpop.eup %4531  ;;  %v5356_v28 = vadd.f32 %v1183_v61, %v1119_v60 }
 0x553   :  { %1228 = vrot.lane.b32.xlu1 %v4532_v63, %s5028_s28 }
 0x554   :  { %4533 = vtanh.f32 %v5356_v28 }
 0x558   :  { %v1221_v3 = vpop.permute.xlu0 %1220 }
 0x559   :  { %v1242_v10 = vmul.f32 %v1221_v3, %v5271_v33 }
 0x55a   :  { %v4534_v1 = vpop.eup %4533 }
 0x55b   :  { %1230 = vrot.lane.b32.xlu0 %v4534_v1, %s5028_s28  ;;  %v1250_v22 = vpack.c.bf16 %v1242_v10, %v1242_v10 }
 0x560   :  { %v1217_v6 = vpop.permute.xlu2 %1216 }
 0x561   :  { %v1240_v44 = vmul.f32 %v1217_v6, %v5254_v57 }
 0x563   :  { %v1248_v31 = vpack.c.bf16 %v1240_v44, %v1240_v44 }
 0x565   :  { %v1264_v33 = vunpack.c.l.b16 %v1248_v31 }
 0x573   :  { %v1219_v2 = vpop.permute.xlu1 %1218 }
 0x574   :  { %v1241_v4 = vmul.f32 %v1219_v2, %v5263_v12  ;;  %v1225_v54 = vpop.permute.xlu0 %1224 }
 0x575   :  { %v1244_v23 = vmul.f32 %v1225_v54, %v5279_v0 }
 0x576   :  { %v1249_v8 = vpack.c.bf16 %v1241_v4, %v1241_v4 }
 0x577   :  { %v1252_v34 = vpack.c.bf16 %v1244_v23, %v1244_v23 }
 0x578   :  { %v1265_v16 = vunpack.c.l.b16 %v1249_v8 }
 0x579   :  { %v1268_v52 = vunpack.c.l.b16 %v1252_v34 }
 0x57a   :  { %v1272_v41 = vrot.slane %v1265_v16, 7 }
 0x57b   :  { %v1223_v7 = vpop.permute.xlu1 %1222  ;;  %v1227_v21 = vpop.permute.xlu2 %1226  ;;  %v1281_v46 = vrot.slane %v1268_v52, 4 }
 0x57c   :  { %v1243_v9 = vmul.f32 %v1223_v7, %v5275_v47  ;;  %v1245_v12 = vmul.f32 %v1227_v21, %v5283_v11  ;;  %v1266_v47 = vunpack.c.l.b16 %v1250_v22  ;;  %v1274_v38 = vsel %vm6979_vm13, %v1272_v41, %v1264_v33 }
 0x57e   :  { %v1251_v19 = vpack.c.bf16 %v1243_v9, %v1243_v9  ;;  %v1253_v40 = vpack.c.bf16 %v1245_v12, %v1245_v12  ;;  %v1275_v0 = vrot.slane %v1266_v47, 6 }
 0x580   :  { %v1267_v32 = vunpack.c.l.b16 %v1251_v19  ;;  %v1277_v50 = vsel %vm6978_vm14, %v1275_v0, %v1274_v38  ;;  %v1269_v42 = vunpack.c.l.b16 %v1253_v40 }
 0x582   :  { %v1278_v5 = vrot.slane %v1267_v32, 5  ;;  %v1284_v56 = vrot.slane %v1269_v42, 3 }
 0x5c5   :  { %v1229_v27 = vpop.permute.xlu1 %1228 }
 0x5c6   :  { %v1246_v30 = vmul.f32 %v1229_v27, %v5297_v43  ;;  %v1280_v43 = vsel %vm6977_vm15, %v1278_v5, %v1277_v50 }
 0x5c7   :  { %v1283_v51 = vsel %vm6976_vm0, %v1281_v46, %v1280_v43 }
 0x5c8   :  { %v1254_v57 = vpack.c.bf16 %v1246_v30, %v1246_v30  ;;  %v1286_v63 = vsel %vm6975_vm4, %v1284_v56, %v1283_v51 }
 0x5ca   :  { %v1270_v55 = vunpack.c.l.b16 %v1254_v57 }
 0x5cc   :  { %v1287_v53 = vrot.slane %v1270_v55, 2 }
 0x5cd   :  { %v1231_v11 = vpop.permute.xlu0 %1230 }
 0x5ce   :  { %v1247_v45 = vmul.f32 %v1231_v11, %v5301_v62  ;;  %v1289_v1 = vsel %vm6974_vm5, %v1287_v53, %v1286_v63 }
 0x5d0   :  { %v1255_v48 = vpack.c.bf16 %v1247_v45, %v1247_v45 }
 0x5d2   :  { %v1271_v60 = vunpack.c.l.b16 %v1255_v48 }
 0x5d4   :  { %v1290_v61 = vrot.slane %v1271_v60, 1 }
 0x5d6   :  { %v1292_v2 = vsel %vm6973_vm6, %v1290_v61, %v1289_v1 }
 0x5d7   :  { %v1293_v3 = vpack.c.b16 %v1292_v2, %v1292_v2 }
 0x5d9   :  { %1294 = vrot.lane.b32.xlu2 %v1293_v3, %s5035_s2 }
 0x633   :  { %v1295_v62 = vpop.permute.xlu2 %1294 }
 0x634   :  { %4302 = vmatmul.msk.bf16.vlgmr.msrb.gmra.mxu0 %vm6972_vm2, %v1295_v62 }
 0x635   :  { %2123 = vmatpush.bf16.msrb.mxu0 %v5205_v29 }
 0x639   :  { %2124 = vmatpush.bf16.msrb.mxu0 %v5209_v36 }
 0x6b1   :  { %v1308_v4 = vpop.f32.mrf.mxu0 }
 0x6b2   :  { %v1313_v6 = vrot.slane %v1308_v4, 7  ;;  %v1314_v7 = vrot.slane %v1308_v4, 1  ;;  %v1316_v8 = vrot.slane %v1308_v4, 3  ;;  %v1315_v9 = vrot.slane %v1308_v4, 2 }
 0x6b3   :  { %v1317_v10 = vrot.slane %v1308_v4, 4  ;;  %v1329_v44 = vadd.f32 %v1308_v4, %v5240_v26  ;;  %v1319_v29 = vrot.slane %v1308_v4, 6  ;;  %v1318_v12 = vrot.slane %v1308_v4, 5 }
 0x6b4   :  { %v1328_v54 = vadd.f32 %v1313_v6, %v5234_v15  ;;  %v1330_v16 = vadd.f32 %v1314_v7, %v5245_v17  ;;  %v1332_v19 = vadd.f32 %v1316_v8, %v5257_v58  ;;  %v1331_v31 = vadd.f32 %v1315_v9, %v5250_v39 }
 0x6b5   :  { %v1333_v22 = vadd.f32 %v1317_v10, %v5266_v13  ;;  %v4304_v23 = vmul.f32 -1.442695, %v1329_v44  ;;  %v1335_v30 = vadd.f32 %v1319_v29, %v5294_v25  ;;  %v1334_v33 = vadd.f32 %v1318_v12, %v5289_v20 }
 0x6b6   :  { %v4303_v21 = vmul.f32 -1.442695, %v1328_v54  ;;  %v4305_v36 = vmul.f32 -1.442695, %v1330_v16  ;;  %v4307_v27 = vmul.f32 -1.442695, %v1332_v19 }
 0x6b7   :  { %4535 = vpow2.f32 %v4304_v23  ;;  %v4308_v41 = vmul.f32 -1.442695, %v1333_v22  ;;  %v4306_v47 = vmul.f32 -1.442695, %v1331_v31  ;;  %v4310_v38 = vmul.f32 -1.442695, %v1335_v30 }
 0x6b8   :  { %4537 = vpow2.f32 %v4303_v21  ;;  %v4309_v50 = vmul.f32 -1.442695, %v1334_v33 }
 0x6b9   :  { %4539 = vpow2.f32 %v4305_v36  ;;  %v1310_v32 = vpop.f32.mrf.mxu0 }
 0x6ba   :  { %4541 = vpow2.f32 %v4307_v27 }
 0x6bb   :  { %4543 = vpow2.f32 %v4308_v41 }
 0x6bc   :  { %4545 = vpow2.f32 %v4306_v47 }
 0x6bd   :  { %v4536_v34 = vpop.eup %4535 }
 0x6be   :  { %v4538_v57 = vpop.eup %4537  ;;  %v5388_v40 = vadd.f32 1.0, %v4536_v34 }
 0x6bf   :  { %v4540_v5 = vpop.eup %4539  ;;  %v5390_v0 = vadd.f32 1.0, %v4538_v57 }
 0x6c0   :  { %4547 = vrcp.f32 %v5388_v40  ;;  %v4542_v52 = vpop.eup %4541  ;;  %v5393_v55 = vadd.f32 1.0, %v4540_v5  ;;  %v1392_v43 = vand.u32 2147483647, %v5388_v40  ;;  %v1394_v45 = vand.u32 2147483648, %v5388_v40 }
 0x6c1   :  { %4549 = vrcp.f32 %v5390_v0  ;;  %v4544_v11 = vpop.eup %4543  ;;  %v5396_v42 = vadd.f32 1.0, %v4542_v52  ;;  %v1379_v46 = vand.u32 2147483648, %v5390_v0  ;;  %v1377_v51 = vand.u32 2147483647, %v5390_v0 }
 0x6c2   :  { %4551 = vpow2.f32 %v4310_v38  ;;  %v1409_v48 = vand.u32 2147483648, %v5393_v55  ;;  %v5404_v53 = vadd.f32 1.0, %v4544_v11  ;;  %v4546_v56 = vpop.eup %4545  ;;  %vm1388_vm7 = vweird.f32 %v5388_v40 }
 0x6c3   :  { %4553 = vrcp.f32 %v5393_v55  ;;  %v1407_v61 = vand.u32 2147483647, %v5393_v55  ;;  %vm1373_vm8 = vweird.f32 %v5390_v0  ;;  %vm5412_vm9 = vcmp.eq.f32.partialorder %v1392_v43, 8.507059e+37 }
 0x6c4   :  { %4555 = vrcp.f32 %v5396_v42  ;;  %v1395_v3 = vor.u32 1.1754944e-38, %v1394_v45  ;;  %v1380_v62 = vor.u32 1.1754944e-38, %v1379_v46  ;;  %vm1403_vm3 = vweird.f32 %v5393_v55 }
 0x6c5   :  { %4557 = vpow2.f32 %v4309_v50  ;;  %v1410_v6 = vor.u32 1.1754944e-38, %v1409_v48  ;;  %vm5418_vm10 = vcmp.eq.f32.partialorder %v1377_v51, 8.507059e+37  ;;  %v1454_v9 = vand.u32 2147483648, %v5404_v53 }
 0x6c6   :  { %v4548_v60 = vpop.eup %4547  ;;  %4559 = vrcp.f32 %v5404_v53  ;;  %v1437_v10 = vand.u32 2147483647, %v5396_v42  ;;  %v1452_v16 = vand.u32 2147483647, %v5404_v53  ;;  %v1439_v19 = vand.u32 2147483648, %v5396_v42 }
 0x6c7   :  { %v4550_v63 = vpop.eup %4549  ;;  %v1384_v1 = vmul.f32 %v4548_v60, %v5388_v40  ;;  %v5426_v22 = vadd.f32 1.0, %v4546_v56  ;;  %vm1389_vm11 = vweird.f32 %v4548_v60  ;;  %vm5429_vm12 = vcmp.eq.f32.partialorder %v1407_v61, 8.507059e+37 }
 0x6c8   :  { %v4552_v4 = vpop.eup %4551  ;;  %v1369_v7 = vmul.f32 %v4550_v63, %v5390_v0  ;;  %vm1433_vm1 = vweird.f32 %v5396_v42  ;;  %vm1374_vm6 = vweird.f32 %v4550_v63  ;;  %v1455_v34 = vor.u32 1.1754944e-38, %v1454_v9  ;;  %vm1390_vm0 = vmor %vm1388_vm7, %vm1389_vm11 }
 0x6c9   :  { %v4554_v44 = vpop.eup %4553  ;;  %v1385_v54 = vsub.f32 1.0, %v1384_v1  ;;  %4561 = vrcp.f32 %v5426_v22  ;;  %v5437_v12 = vadd.f32 1.0, %v4552_v4  ;;  %vm5439_vm5 = vcmp.eq.f32.partialorder %v1437_v10, 8.507059e+37  ;;  %vm1375_vm13 = vmor %vm1373_vm8, %vm1374_vm6 }
 0x6ca   :  { %v4556_v23 = vpop.eup %4555  ;;  %v1399_v29 = vmul.f32 %v4554_v44, %v5393_v55  ;;  %v1370_v36 = vsub.f32 1.0, %v1369_v7  ;;  %vm5444_vm4 = vcmp.eq.f32.partialorder %v1452_v16, 8.507059e+37  ;;  %v1440_v50 = vor.u32 1.1754944e-38, %v1439_v19 }
 0x6cb   :  { %v4558_v31 = vpop.eup %4557  ;;  %v1386_v27 = vmul.f32 %v4548_v60, %v1385_v54  ;;  %v1429_v41 = vmul.f32 %v4556_v23, %v5396_v42  ;;  %vm1404_vm15 = vweird.f32 %v4554_v44  ;;  %vm1434_vm14 = vweird.f32 %v4556_v23 }
 0x6cc   :  { %v4560_v32 = vpop.eup %4559  ;;  %v1400_v30 = vsub.f32 1.0, %v1399_v29  ;;  %v1371_v47 = vmul.f32 %v4550_v63, %v1370_v36  ;;  %4563 = vrcp.f32 %v5437_v12  ;;  %v5474_v55 = vadd.f32 1.0, %v4558_v31 }
 0x6cd   :  { %v1387_v57 = vadd.f32 %v4548_v60, %v1386_v27  ;;  %v1444_v38 = vmul.f32 %v4560_v32, %v5404_v53  ;;  %v1430_v52 = vsub.f32 1.0, %v1429_v41  ;;  %vm1449_vm2 = vweird.f32 %v4560_v32 }
 0x6ce   :  { %v1401_v11 = vmul.f32 %v4554_v44, %v1400_v30  ;;  %v1372_v43 = vadd.f32 %v4550_v63, %v1371_v47  ;;  %v1422_v16 = vand.u32 2147483647, %v5426_v22  ;;  %4565 = vrcp.f32 %v5474_v55 }
 0x6cf   :  { %v1391_v45 = vsel %vm1390_vm0, %v4548_v60, %v1387_v57  ;;  %v1445_v46 = vsub.f32 1.0, %v1444_v38  ;;  %v1431_v48 = vmul.f32 %v4556_v23, %v1430_v52  ;;  %v4562_v40 = vpop.eup %4561  ;;  %vm1405_vm0 = vmor %vm1403_vm3, %vm1404_vm15  ;;  %v1482_v38 = vand.u32 2147483647, %v5437_v12 }
 0x6d0   :  { %v5456_v51 = vsel %vm5412_vm9, %v1395_v3, %v1391_v45  ;;  %v1402_v56 = vadd.f32 %v4554_v44, %v1401_v11  ;;  %v1376_v61 = vsel %vm1375_vm13, %v4550_v63, %v1372_v43  ;;  %vm5469_vm13 = vmor %vm1433_vm1, %vm1434_vm14  ;;  %v1414_v3 = vmul.f32 %v4562_v40, %v5426_v22 }
 0x6d1   :  { %v1489_v1 = vmul.f32 2.0, %v5456_v51  ;;  %v5463_v0 = vsel %vm5418_vm10, %v1380_v62, %v1376_v61  ;;  %v1446_v60 = vmul.f32 %v4560_v32, %v1445_v46  ;;  %v1432_v4 = vadd.f32 %v4556_v23, %v1431_v48 }
 0x6d2   :  { %v1406_v7 = vsel %vm1405_vm0, %v4554_v44, %v1402_v56  ;;  %v1488_v2 = vmul.f32 2.0, %v5463_v0  ;;  %vm6994_vm1 = vweird.f32 %v5404_v53  ;;  %v1415_v54 = vsub.f32 1.0, %v1414_v3  ;;  %v4564_v19 = vpop.eup %4563 }
 0x6d3   :  { %v4312_v9 = vadd.f32 -1.0, %v1489_v1  ;;  %v5478_v62 = vsel %vm5429_vm12, %v1410_v6, %v1406_v7  ;;  %v1447_v8 = vadd.f32 %v4560_v32, %v1446_v60  ;;  %v1436_v10 = vsel %vm5469_vm13, %v4556_v23, %v1432_v4  ;;  %vm1450_vm14 = vmor %vm6994_vm1, %vm1449_vm2 }
 0x6d4   :  { %v1490_v44 = vmul.f32 2.0, %v5478_v62  ;;  %v4311_v42 = vadd.f32 -1.0, %v1488_v2  ;;  %v5490_v6 = vsel %vm5439_vm5, %v1440_v50, %v1436_v10  ;;  %vm1419_vm15 = vweird.f32 %v4562_v40  ;;  %v4566_v43 = vpop.eup %4565 }
 0x6d5   :  { %1546 = vrot.lane.b32.xlu2 %v4312_v9, %s5028_s28  ;;  %v1451_v29 = vsel %vm1450_vm14, %v4560_v32, %v1447_v8  ;;  %v1424_v23 = vand.u32 2147483648, %v5426_v22  ;;  %v1416_v36 = vmul.f32 %v4562_v40, %v1415_v54  ;;  %v1474_v31 = vmul.f32 %v4564_v19, %v5437_v12 }
 0x6d6   :  { %v4313_v21 = vadd.f32 -1.0, %v1490_v44  ;;  %1544 = vrot.lane.b32.xlu1 %v4311_v42, %s5028_s28  ;;  %v5496_v53 = vsel %vm5444_vm4, %v1455_v34, %v1451_v29  ;;  %vm1418_vm2 = vweird.f32 %v5426_v22  ;;  %v1492_v30 = vmul.f32 2.0, %v5490_v6 }
 0x6d7   :  { %v1493_v27 = vmul.f32 2.0, %v5496_v53  ;;  %v1417_v41 = vadd.f32 %v4562_v40, %v1416_v36  ;;  %v1475_v32 = vsub.f32 1.0, %v1474_v31  ;;  %vm1420_vm5 = vmor %vm1418_vm2, %vm1419_vm15  ;;  %vm1423_vm6 = vcmp.eq.f32.partialorder %v1422_v16, 8.507059e+37 }
 0x6d8   :  { %1548 = vrot.lane.b32.xlu0 %v4313_v21, %s5028_s28  ;;  %v1425_v47 = vor.u32 1.1754944e-38, %v1424_v23  ;;  %v1484_v34 = vand.u32 2147483648, %v5437_v12  ;;  %vm1479_vm4 = vweird.f32 %v4564_v19  ;;  %vm1478_vm7 = vweird.f32 %v5437_v12 }
 0x6d9   :  { %v1421_v33 = vsel %vm1420_vm5, %v4562_v40, %v1417_v41  ;;  %v1476_v57 = vmul.f32 %v4564_v19, %v1475_v32  ;;  %v4316_v5 = vadd.f32 -1.0, %v1493_v27  ;;  %vm1480_vm8 = vmor %vm1478_vm7, %vm1479_vm4  ;;  %v4315_v45 = vadd.f32 -1.0, %v1492_v30 }
 0x6da   :  { %v5506_v52 = vsel %vm1423_vm6, %v1425_v47, %v1421_v33  ;;  %v1485_v11 = vor.u32 1.1754944e-38, %v1484_v34  ;;  %vm1483_vm9 = vcmp.eq.f32.partialorder %v1482_v38, 8.507059e+37  ;;  %v1459_v61 = vmul.f32 %v4566_v43, %v5474_v55 }
 0x6db   :  { %v1491_v22 = vmul.f32 2.0, %v5506_v52  ;;  %v1477_v50 = vadd.f32 %v4564_v19, %v1476_v57  ;;  %v1469_v1 = vand.u32 2147483648, %v5474_v55  ;;  %vm1464_vm3 = vweird.f32 %v4566_v43 }
 0x6dc   :  { %v1460_v40 = vsub.f32 1.0, %v1459_v61  ;;  %v1467_v4 = vand.u32 2147483647, %v5474_v55  ;;  %vm1463_vm10 = vweird.f32 %v5474_v55  ;;  %v1513_v34 = vrot.slane %v5328_v35, 7 }
 0x6dd   :  { %1554 = vrot.lane.b32.xlu2 %v4316_v5, %s5028_s28  ;;  %v4314_v46 = vadd.f32 -1.0, %v1491_v22  ;;  %v1481_v48 = vsel %vm1480_vm8, %v4564_v19, %v1477_v50  ;;  %vm1465_vm11 = vmor %vm1463_vm10, %vm1464_vm3  ;;  %v1470_v63 = vor.u32 1.1754944e-38, %v1469_v1  ;;  %v1512_v33 = vrot.slane %v5335_v14, 7 }
 0x6de   :  { %v5511_v56 = vsel %vm1483_vm9, %v1485_v11, %v1481_v48  ;;  %v1461_v60 = vmul.f32 %v4566_v43, %v1460_v40  ;;  %vm1468_vm12 = vcmp.eq.f32.partialorder %v1467_v4, 8.507059e+37  ;;  %v1529_v57 = vmul.f32 %v1513_v34, %v5456_v51 }
 0x6df   :  { %1550 = vrot.lane.b32.xlu1 %v4314_v46, %s5028_s28  ;;  %v1495_v12 = vmul.f32 2.0, %v5511_v56  ;;  %v1528_v5 = vmul.f32 %v1512_v33, %v5463_v0  ;;  %v1515_v14 = vrot.slane %v5339_v18, 7  ;;  %vm6995_vm0 = vcmask 1041409  }
 0x6e0   :  { %1552 = vrot.lane.b32.xlu0 %v4315_v45, %s5028_s28  ;;  %v1462_v7 = vadd.f32 %v4566_v43, %v1461_v60  ;;  %v1518_v60 = vrot.slane %v5352_v59, 7  ;;  %v1516_v59 = vrot.slane %v5330_v37, 7  ;;  %vm6996_vm13 = vcmask 1042434  }
 0x6e1   :  { %v4318_v2 = vadd.f32 -1.0, %v1495_v12  ;;  %v1531_v40 = vmul.f32 %v1515_v14, %v5506_v52  ;;  %vm6997_vm1 = vcmask 1043459   ;;  %vm6998_vm14 = vcmask 1044484  }
 0x6e2   :  { %v1466_v3 = vsel %vm1465_vm11, %v4566_v43, %v1462_v7  ;;  %v1517_v43 = vrot.slane %v5347_v49, 7  ;;  %v1514_v7 = vrot.slane %v5320_v24, 7  ;;  %vm6999_vm15 = vcmask 1045509  }
 0x6e3   :  { %v5521_v9 = vsel %vm1468_vm12, %v1470_v63, %v1466_v3  ;;  %vm7000_vm2 = vcmask 1046534   ;;  %vm7001_vm5 = vcmask 1047559   ;;  %vm7002_vm6 = vcmask 261120  }
 0x6e4   :  { %v1494_v8 = vmul.f32 2.0, %v5521_v9  ;;  %v1533_v35 = vmul.f32 %v1517_v43, %v5496_v53  ;;  %v1534_v4 = vmul.f32 %v1518_v60, %v5521_v9  ;;  %v1530_v3 = vmul.f32 %v1514_v7, %v5478_v62 }
 0x6e6   :  { %v4317_v10 = vadd.f32 -1.0, %v1494_v8 }
 0x6e8   :  { %1558 = vrot.lane.b32.xlu0 %v4318_v2, %s5028_s28  ;;  %1556 = vrot.lane.b32.xlu1 %v4317_v10, %s5028_s28 }
 0x72f   :  { %v1547_v44 = vpop.permute.xlu2 %1546 }
 0x730   :  { %v1569_v42 = vmul.f32 %v1547_v44, %v5456_v51 }
 0x732   :  { %1586 = vrot.lane.b32.xlu0 %v1569_v42, %s5035_s2  ;;  %v1532_v42 = vmul.f32 %v1516_v59, %v5490_v6 }
 0x737   :  { %v1555_v55 = vpop.permute.xlu2 %1554 }
 0x738   :  { %v1573_v54 = vmul.f32 %v1555_v55, %v5496_v53 }
 0x73a   :  { %1594 = vrot.lane.b32.xlu0 %v1573_v54, %s5035_s2 }
 0x748   :  { %v1545_v16 = vpop.permute.xlu1 %1544 }
 0x749   :  { %v1568_v19 = vmul.f32 %v1545_v16, %v5463_v0  ;;  %v1519_v16 = vrot.slane %v5356_v28, 7 }
 0x74a   :  { %v1549_v29 = vpop.permute.xlu0 %1548 }
 0x74b   :  { %v1570_v23 = vmul.f32 %v1549_v29, %v5478_v62  ;;  %1584 = vrot.lane.b32.xlu2 %v1568_v19, %s5035_s2  ;;  %v1535_v19 = vmul.f32 %v1519_v16, %v5511_v56 }
 0x74d   :  { %1588 = vrot.lane.b32.xlu1 %v1570_v23, %s5035_s2 }
 0x751   :  { %v1551_v36 = vpop.permute.xlu1 %1550 }
 0x752   :  { %v1553_v21 = vpop.permute.xlu0 %1552  ;;  %v1571_v27 = vmul.f32 %v1551_v36, %v5506_v52 }
 0x753   :  { %v1572_v31 = vmul.f32 %v1553_v21, %v5490_v6 }
 0x754   :  { %1590 = vrot.lane.b32.xlu2 %v1571_v27, %s5035_s2 }
 0x755   :  { %1592 = vrot.lane.b32.xlu1 %v1572_v31, %s5035_s2 }
 0x75a   :  { %v1559_v41 = vpop.permute.xlu0 %1558  ;;  %v1557_v30 = vpop.permute.xlu1 %1556 }
 0x75b   :  { %v1575_v32 = vmul.f32 %v1559_v41, %v5511_v56  ;;  %v1574_v47 = vmul.f32 %v1557_v30, %v5521_v9 }
 0x75d   :  { %1598 = vrot.lane.b32.xlu1 %v1575_v32, %s5035_s2  ;;  %1596 = vrot.lane.b32.xlu2 %v1574_v47, %s5035_s2 }
 0x7a4   :  { %v1587_v38 = vpop.permute.xlu0 %1586 }
 0x7a5   :  { %v5545_v22 = vadd.f32 %v1587_v38, %v1529_v57  ;;  %v1585_v50 = vpop.permute.xlu2 %1584 }
 0x7a6   :  { %v5547_v11 = vadd.f32 %v1585_v50, %v1528_v5 }
 0x7a7   :  { %4567 = vtanh.f32 %v5545_v22 }
 0x7a8   :  { %4569 = vtanh.f32 %v5547_v11 }
 0x7ac   :  { %v1595_v45 = vpop.permute.xlu0 %1594 }
 0x7ad   :  { %v4568_v46 = vpop.eup %4567  ;;  %v5554_v48 = vadd.f32 %v1595_v45, %v1533_v35 }
 0x7ae   :  { %v4570_v61 = vpop.eup %4569  ;;  %1634 = vrot.lane.b32.xlu1 %v4568_v46, %s5028_s28  ;;  %v1591_v12 = vpop.permute.xlu2 %1590 }
 0x7af   :  { %4571 = vtanh.f32 %v5554_v48  ;;  %1632 = vrot.lane.b32.xlu0 %v4570_v61, %s5028_s28  ;;  %v5560_v1 = vadd.f32 %v1591_v12, %v1531_v40 }
 0x7b1   :  { %4573 = vtanh.f32 %v5560_v1 }
 0x7b5   :  { %v4572_v49 = vpop.eup %4571 }
 0x7b6   :  { %1642 = vrot.lane.b32.xlu1 %v4572_v49, %s5028_s28 }
 0x7b7   :  { %v4574_v18 = vpop.eup %4573  ;;  %v1597_v2 = vpop.permute.xlu2 %1596 }
 0x7b8   :  { %1638 = vrot.lane.b32.xlu0 %v4574_v18, %s5028_s28  ;;  %v5568_v63 = vadd.f32 %v1597_v2, %v1534_v4 }
 0x7ba   :  { %4575 = vtanh.f32 %v5568_v63 }
 0x7bf   :  { %v1589_v8 = vpop.permute.xlu1 %1588 }
 0x7c0   :  { %v5572_v10 = vadd.f32 %v1589_v8, %v1530_v3  ;;  %v4576_v44 = vpop.eup %4575 }
 0x7c1   :  { %1644 = vrot.lane.b32.xlu0 %v4576_v44, %s5028_s28 }
 0x7c2   :  { %4577 = vtanh.f32 %v5572_v10 }
 0x7c7   :  { %v1593_v24 = vpop.permute.xlu1 %1592 }
 0x7c8   :  { %v4578_v55 = vpop.eup %4577  ;;  %v5578_v54 = vadd.f32 %v1593_v24, %v1532_v42 }
 0x7c9   :  { %1636 = vrot.lane.b32.xlu2 %v4578_v55, %s5028_s28 }
 0x7ca   :  { %4579 = vtanh.f32 %v5578_v54 }
 0x7cf   :  { %v1599_v29 = vpop.permute.xlu1 %1598 }
 0x7d0   :  { %v4580_v23 = vpop.eup %4579  ;;  %v5584_v37 = vadd.f32 %v1599_v29, %v1535_v19 }
 0x7d1   :  { %1640 = vrot.lane.b32.xlu2 %v4580_v23, %s5028_s28 }
 0x7d2   :  { %4581 = vtanh.f32 %v5584_v37 }
 0x7d8   :  { %v4582_v21 = vpop.eup %4581 }
 0x7d9   :  { %1646 = vrot.lane.b32.xlu2 %v4582_v21, %s5028_s28 }
 0x820   :  { %v1635_v27 = vpop.permute.xlu1 %1634 }
 0x821   :  { %v1633_v36 = vpop.permute.xlu0 %1632  ;;  %v1657_v34 = vmul.f32 %v1635_v27, %v5456_v51 }
 0x822   :  { %v1656_v41 = vmul.f32 %v1633_v36, %v5463_v0  ;;  %v4871_v36 = vld [vmem:[#allocation8 + $0x68] sm:$0xff] }
 0x823   :  { %v1637_v31 = vpop.permute.xlu2 %1636  ;;  %v1665_v35 = vpack.c.bf16 %v1657_v34, %v1657_v34 }
 0x824   :  { %v1658_v28 = vmul.f32 %v1637_v31, %v5478_v62  ;;  %v1664_v32 = vpack.c.bf16 %v1656_v41, %v1656_v41  ;;  %v4872_v31 = vld [vmem:[#allocation8 + $0x60] sm:$0xff] }
 0x825   :  { %v1681_v40 = vunpack.c.l.b16 %v1665_v35 }
 0x826   :  { %v1666_v57 = vpack.c.bf16 %v1658_v28, %v1658_v28  ;;  %v1680_v5 = vunpack.c.l.b16 %v1664_v32 }
 0x828   :  { %v1643_v43 = vpop.permute.xlu1 %1642  ;;  %v1682_v14 = vunpack.c.l.b16 %v1666_v57  ;;  %v1688_v46 = vrot.slane %v1680_v5, 1 }
 0x829   :  { %v1661_v0 = vmul.f32 %v1643_v43, %v5496_v53 }
 0x82a   :  { %v1639_v30 = vpop.permute.xlu0 %1638  ;;  %v1690_v51 = vrot.slane %v1682_v14, 7 }
 0x82b   :  { %v1641_v47 = vpop.permute.xlu2 %1640  ;;  %v1659_v33 = vmul.f32 %v1639_v30, %v5506_v52  ;;  %v1689_v52 = vsel %vm6995_vm0, %v1681_v40, %v1688_v46  ;;  %v1669_v18 = vpack.c.bf16 %v1661_v0, %v1661_v0 }
 0x82c   :  { %v1660_v38 = vmul.f32 %v1641_v47, %v5490_v6  ;;  %v1691_v7 = vsel %vm6996_vm13, %v1690_v51, %v1689_v52 }
 0x82d   :  { %v1667_v50 = vpack.c.bf16 %v1659_v33, %v1659_v33  ;;  %v1685_v8 = vunpack.c.l.b16 %v1669_v18 }
 0x82e   :  { %v1668_v45 = vpack.c.bf16 %v1660_v38, %v1660_v38 }
 0x82f   :  { %v1683_v62 = vunpack.c.l.b16 %v1667_v50  ;;  %v1696_v24 = vrot.slane %v1685_v8, 4 }
 0x830   :  { %v1684_v49 = vunpack.c.l.b16 %v1668_v45 }
 0x831   :  { %v1692_v6 = vrot.slane %v1683_v62, 6 }
 0x832   :  { %v1694_v2 = vrot.slane %v1684_v49, 5 }
 0x833   :  { %v1647_v61 = vpop.permute.xlu2 %1646  ;;  %v1645_v4 = vpop.permute.xlu0 %1644  ;;  %v1693_v53 = vsel %vm6997_vm1, %v1692_v6, %v1691_v7 }
 0x834   :  { %v1663_v12 = vmul.f32 %v1647_v61, %v5511_v56  ;;  %v1662_v3 = vmul.f32 %v1645_v4, %v5521_v9  ;;  %v1695_v56 = vsel %vm6998_vm14, %v1694_v2, %v1693_v53 }
 0x835   :  { %v1697_v19 = vsel %vm6999_vm15, %v1696_v24, %v1695_v56 }
 0x836   :  { %v1671_v60 = vpack.c.bf16 %v1663_v12, %v1663_v12  ;;  %v1670_v44 = vpack.c.bf16 %v1662_v3, %v1662_v3 }
 0x838   :  { %v1687_v59 = vunpack.c.l.b16 %v1671_v60  ;;  %v1686_v42 = vunpack.c.l.b16 %v1670_v44 }
 0x83a   :  { %v1700_v55 = vrot.slane %v1687_v59, 2  ;;  %v1698_v16 = vrot.slane %v1686_v42, 3 }
 0x83c   :  { %v1699_v29 = vsel %vm7000_vm2, %v1698_v16, %v1697_v19 }
 0x83d   :  { %v1701_v23 = vsel %vm7001_vm5, %v1700_v55, %v1699_v29 }
 0x83e   :  { %v1702_v21 = vpack.c.b16 %v1701_v23, %v1701_v23 }
 0x840   :  { %1703 = vrot.lane.b32.xlu1 %v1702_v21, %s5035_s2 }
 0x8b2   :  { %v1704_v9 = vpop.permute.xlu1 %1703 }
 0x8b3   :  { %4319 = vmatmul.msk.bf16.vlgmr.msra.gmra.mxu0 %vm7002_vm6, %v1704_v9 }
 0x8b4   :  { %3759 = vmatpush.bf16.msra.mxu0 %v4871_v36 }
 0x8b8   :  { %3760 = vmatpush.bf16.msra.mxu0 %v4872_v31 }
 0x930   :  { %v1717_v27 = vpop.f32.mrf.mxu0 }
 0x931   :  { %v1722_v41 = vrot.slane %v1717_v27, 6  ;;  %v1723_v28 = vrot.slane %v1717_v27, 7  ;;  %v1724_v32 = vrot.slane %v1717_v27, 1  ;;  %v1725_v30 = vrot.slane %v1717_v27, 2 }
 0x932   :  { %v1726_v47 = vrot.slane %v1717_v27, 3  ;;  %v1727_v34 = vrot.slane %v1717_v27, 4  ;;  %v1739_v33 = vadd.f32 %v1717_v27, %v5245_v17  ;;  %v1728_v43 = vrot.slane %v1717_v27, 5 }
 0x933   :  { %v1737_v57 = vadd.f32 %v1722_v41, %v5234_v15  ;;  %v1738_v38 = vadd.f32 %v1723_v28, %v5240_v26  ;;  %v1740_v5 = vadd.f32 %v1724_v32, %v5250_v39  ;;  %v1741_v50 = vadd.f32 %v1725_v30, %v5257_v58 }
 0x934   :  { %v1742_v35 = vadd.f32 %v1726_v47, %v5266_v13  ;;  %v4322_v14 = vmul.f32 -1.442695, %v1739_v33  ;;  %v1743_v62 = vadd.f32 %v1727_v34, %v5289_v20  ;;  %v1744_v51 = vadd.f32 %v1728_v43, %v5294_v25 }
 0x935   :  { %v4320_v45 = vmul.f32 -1.442695, %v1737_v57  ;;  %v4321_v46 = vmul.f32 -1.442695, %v1738_v38  ;;  %v4323_v0 = vmul.f32 -1.442695, %v1740_v5 }
 0x936   :  { %4583 = vpow2.f32 %v4322_v14  ;;  %v4324_v61 = vmul.f32 -1.442695, %v1741_v50  ;;  %v4325_v40 = vmul.f32 -1.442695, %v1742_v35  ;;  %v4326_v49 = vmul.f32 -1.442695, %v1743_v62 }
 0x937   :  { %4585 = vpow2.f32 %v4320_v45  ;;  %v4327_v6 = vmul.f32 -1.442695, %v1744_v51 }
 0x938   :  { %4587 = vpow2.f32 %v4321_v46  ;;  %v1719_v12 = vpop.f32.mrf.mxu0 }
 0x939   :  { %4589 = vpow2.f32 %v4323_v0 }
 0x93a   :  { %4591 = vpow2.f32 %v4324_v61 }
 0x93b   :  { %4593 = vpow2.f32 %v4325_v40 }
 0x93c   :  { %v4584_v52 = vpop.eup %4583  ;;  %4595 = vpow2.f32 %v4326_v49 }
 0x93d   :  { %v4586_v18 = vpop.eup %4585  ;;  %v5614_v60 = vadd.f32 1.0, %v4584_v52 }
 0x93e   :  { %v4588_v4 = vpop.eup %4587  ;;  %v5616_v7 = vadd.f32 1.0, %v4586_v18 }
 0x93f   :  { %v4590_v2 = vpop.eup %4589  ;;  %4597 = vrcp.f32 %v5614_v60  ;;  %v5621_v8 = vadd.f32 1.0, %v4588_v4  ;;  %v1816_v44 = vand.u32 2147483647, %v5614_v60  ;;  %v1818_v56 = vand.u32 2147483648, %v5614_v60 }
 0x940   :  { %v5619_v3 = vadd.f32 1.0, %v4590_v2  ;;  %4599 = vrcp.f32 %v5616_v7  ;;  %v4592_v53 = vpop.eup %4591  ;;  %vm1812_vm4 = vweird.f32 %v5614_v60  ;;  %v1786_v55 = vand.u32 2147483647, %v5616_v7 }
 0x941   :  { %4601 = vpow2.f32 %v4327_v6  ;;  %v4594_v59 = vpop.eup %4593  ;;  %v1788_v16 = vand.u32 2147483648, %v5616_v7  ;;  %v1803_v23 = vand.u32 2147483648, %v5621_v8  ;;  %vm1782_vm7 = vweird.f32 %v5616_v7 }
 0x942   :  { %4603 = vrcp.f32 %v5619_v3  ;;  %v1833_v42 = vand.u32 2147483648, %v5619_v3  ;;  %v4596_v24 = vpop.eup %4595  ;;  %v1831_v29 = vand.u32 2147483647, %v5619_v3  ;;  %v5635_v21 = vadd.f32 1.0, %v4594_v59 }
 0x943   :  { %4605 = vrcp.f32 %v5621_v8  ;;  %v5637_v9 = vadd.f32 1.0, %v4592_v53  ;;  %vm5642_vm8 = vcmp.eq.f32.partialorder %v1816_v44, 8.507059e+37  ;;  %v1819_v41 = vor.u32 1.1754944e-38, %v1818_v56 }
 0x944   :  { %v1801_v28 = vand.u32 2147483647, %v5621_v8  ;;  %vm1827_vm9 = vweird.f32 %v5619_v3  ;;  %v1834_v30 = vor.u32 1.1754944e-38, %v1833_v42  ;;  %4607 = vrcp.f32 %v5635_v21 }
 0x945   :  { %v4598_v19 = vpop.eup %4597  ;;  %vm1797_vm3 = vweird.f32 %v5621_v8  ;;  %vm5652_vm10 = vcmp.eq.f32.partialorder %v1786_v55, 8.507059e+37  ;;  %v1789_v38 = vor.u32 1.1754944e-38, %v1788_v16  ;;  %4609 = vrcp.f32 %v5637_v9 }
 0x946   :  { %v5639_v36 = vpop.eup %4599  ;;  %v1808_v31 = vmul.f32 %v4598_v19, %v5614_v60  ;;  %v5657_v5 = vadd.f32 1.0, %v4596_v24  ;;  %vm1813_vm11 = vweird.f32 %v4598_v19  ;;  %vm5660_vm12 = vcmp.eq.f32.partialorder %v1831_v29, 8.507059e+37 }
 0x947   :  { %v4602_v32 = vpop.eup %4601  ;;  %v1778_v47 = vmul.f32 %v5639_v36, %v5616_v7  ;;  %v1804_v14 = vor.u32 1.1754944e-38, %v1803_v23  ;;  %vm5665_vm0 = vcmp.eq.f32.partialorder %v1801_v28, 8.507059e+37  ;;  %v1861_v61 = vand.u32 2147483647, %v5635_v21  ;;  %vm1814_vm15 = vmor %vm1812_vm4, %vm1813_vm11 }
 0x948   :  { %v4604_v34 = vpop.eup %4603  ;;  %v1809_v33 = vsub.f32 1.0, %v1808_v31  ;;  %v5670_v40 = vadd.f32 1.0, %v4602_v32  ;;  %vm1783_vm13 = vweird.f32 %v5639_v36  ;;  %v1863_v49 = vand.u32 2147483648, %v5635_v21 }
 0x949   :  { %v4606_v50 = vpop.eup %4605  ;;  %v1823_v43 = vmul.f32 %v4604_v34, %v5619_v3  ;;  %v1779_v45 = vsub.f32 1.0, %v1778_v47  ;;  %vm1828_vm1 = vweird.f32 %v4604_v34  ;;  %vm1857_vm14 = vweird.f32 %v5635_v21  ;;  %vm5686_vm6 = vmor %vm1782_vm7, %vm1783_vm13 }
 0x94a   :  { %v1810_v46 = vmul.f32 %v4598_v19, %v1809_v33  ;;  %v1793_v0 = vmul.f32 %v4606_v50, %v5621_v8  ;;  %4611 = vrcp.f32 %v5657_v5  ;;  %v4608_v6 = vpop.eup %4607  ;;  %vm1798_vm2 = vweird.f32 %v4606_v50  ;;  %vm1829_vm7 = vmor %vm1827_vm9, %vm1828_vm1 }
 0x94b   :  { %v1824_v12 = vsub.f32 1.0, %v1823_v43  ;;  %v1780_v51 = vmul.f32 %v5639_v36, %v1779_v45  ;;  %vm1842_vm5 = vweird.f32 %v5637_v9  ;;  %v4610_v53 = vpop.eup %4609  ;;  %v1853_v60 = vmul.f32 %v4608_v6, %v5635_v21 }
 0x94c   :  { %v1811_v52 = vadd.f32 %v4598_v19, %v1810_v46  ;;  %v1794_v18 = vsub.f32 1.0, %v1793_v0  ;;  %vm5691_vm4 = vcmp.eq.f32.partialorder %v1861_v61, 8.507059e+37  ;;  %v1846_v24 = vand.u32 2147483647, %v5637_v9 }
 0x94d   :  { %v1825_v4 = vmul.f32 %v4604_v34, %v1824_v12  ;;  %v1781_v2 = vadd.f32 %v5639_v36, %v1780_v51  ;;  %v1854_v31 = vsub.f32 1.0, %v1853_v60  ;;  %v1848_v28 = vand.u32 2147483648, %v5637_v9 }
 0x94e   :  { %v1815_v59 = vsel %vm1814_vm15, %v4598_v19, %v1811_v52  ;;  %v1795_v44 = vmul.f32 %v4606_v50, %v1794_v18  ;;  %v1838_v19 = vmul.f32 %v4610_v53, %v5637_v9  ;;  %vm1858_vm11 = vweird.f32 %v4608_v6 }
 0x94f   :  { %v5698_v55 = vsel %vm5642_vm8, %v1819_v41, %v1815_v59  ;;  %v1826_v16 = vadd.f32 %v4604_v34, %v1825_v4  ;;  %v1785_v7 = vsel %vm5686_vm6, %v5639_v36, %v1781_v2  ;;  %vm1799_vm8 = vmor %vm1797_vm3, %vm1798_vm2  ;;  %v1855_v43 = vmul.f32 %v4608_v6, %v1854_v31 }
 0x950   :  { %v1899_v29 = vmul.f32 2.0, %v5698_v55  ;;  %v1796_v23 = vadd.f32 %v4606_v50, %v1795_v44  ;;  %v5714_v36 = vsel %vm5652_vm10, %v1789_v38, %v1785_v7  ;;  %v1839_v41 = vsub.f32 1.0, %v1838_v19  ;;  %v4612_v32 = vpop.eup %4611  ;;  %vm1859_vm3 = vmor %vm1857_vm14, %vm1858_vm11 }
 0x951   :  { %v1830_v27 = vsel %vm1829_vm7, %v4604_v34, %v1826_v16  ;;  %vm1843_vm9 = vweird.f32 %v4610_v53  ;;  %v1856_v38 = vadd.f32 %v4608_v6, %v1855_v43  ;;  %v1864_v46 = vor.u32 1.1754944e-38, %v1863_v49 }
 0x952   :  { %v4330_v47 = vadd.f32 -1.0, %v1899_v29  ;;  %v5718_v3 = vsel %vm5660_vm12, %v1834_v30, %v1830_v27  ;;  %v1800_v33 = vsel %vm1799_vm8, %v4606_v50, %v1796_v23  ;;  %v1840_v45 = vmul.f32 %v4610_v53, %v1839_v41  ;;  %vm1844_vm12 = vmor %vm1842_vm5, %vm1843_vm9 }
 0x953   :  { %v1900_v34 = vmul.f32 2.0, %v5718_v3  ;;  %v5723_v8 = vsel %vm5665_vm0, %v1804_v14, %v1800_v33  ;;  %v1868_v35 = vmul.f32 %v4612_v32, %v5657_v5  ;;  %v1897_v50 = vmul.f32 2.0, %v5714_v36 }
 0x954   :  { %1957 = vrot.lane.b32.xlu0 %v4330_v47, %s5028_s28  ;;  %v1898_v57 = vmul.f32 2.0, %v5723_v8  ;;  %v1841_v0 = vadd.f32 %v4610_v53, %v1840_v45  ;;  %vm1847_vm10 = vcmp.eq.f32.partialorder %v1846_v24, 8.507059e+37  ;;  %v1860_v62 = vsel %vm1859_vm3, %v4608_v6, %v1856_v38 }
 0x955   :  { %v4331_v30 = vadd.f32 -1.0, %v1900_v34  ;;  %v1849_v61 = vor.u32 1.1754944e-38, %v1848_v28  ;;  %v1869_v12 = vsub.f32 1.0, %v1868_v35  ;;  %v5737_v51 = vsel %vm5691_vm4, %v1864_v46, %v1860_v62 }
 0x956   :  { %v4329_v14 = vadd.f32 -1.0, %v1898_v57  ;;  %v1845_v49 = vsel %vm1844_vm12, %v4610_v53, %v1841_v0  ;;  %v1878_v52 = vand.u32 2147483648, %v5657_v5  ;;  %4613 = vrcp.f32 %v5670_v40 }
 0x957   :  { %1959 = vrot.lane.b32.xlu1 %v4331_v30, %s5028_s28  ;;  %v5742_v21 = vsel %vm1847_vm10, %v1849_v61, %v1845_v49  ;;  %v1870_v18 = vmul.f32 %v4612_v32, %v1869_v12  ;;  %vm1873_vm0 = vweird.f32 %v4612_v32  ;;  %v1876_v9 = vand.u32 2147483647, %v5657_v5 }
 0x958   :  { %1955 = vrot.lane.b32.xlu2 %v4329_v14, %s5028_s28  ;;  %v1902_v6 = vmul.f32 2.0, %v5737_v51  ;;  %v4328_v4 = vadd.f32 -1.0, %v1897_v50  ;;  %v1901_v2 = vmul.f32 2.0, %v5742_v21  ;;  %vm1872_vm13 = vweird.f32 %v5657_v5 }
 0x959   :  { %v1871_v59 = vadd.f32 %v4612_v32, %v1870_v18  ;;  %vm1874_vm1 = vmor %vm1872_vm13, %vm1873_vm0  ;;  %v1879_v53 = vor.u32 1.1754944e-38, %v1878_v52  ;;  %vm1877_vm14 = vcmp.eq.f32.partialorder %v1876_v9, 8.507059e+37  ;;  %v1893_v19 = vand.u32 2147483648, %v5670_v40 }
 0x95a   :  { %v4333_v60 = vadd.f32 -1.0, %v1902_v6  ;;  %v4332_v24 = vadd.f32 -1.0, %v1901_v2  ;;  %v1891_v31 = vand.u32 2147483647, %v5670_v40  ;;  %vm1887_vm2 = vweird.f32 %v5670_v40 }
 0x95b   :  { %v1875_v44 = vsel %vm1874_vm1, %v4612_v32, %v1871_v59  ;;  %v1894_v27 = vor.u32 1.1754944e-38, %v1893_v19  ;;  %v1924_v52 = vrot.slane %v5560_v1, 7  ;;  %v1922_v18 = vrot.slane %v5545_v22, 7 }
 0x95c   :  { %1953 = vrot.lane.b32.xlu0 %v4328_v4, %s5028_s28  ;;  %v4614_v56 = vpop.eup %4613  ;;  %v5749_v42 = vsel %vm1877_vm14, %v1879_v53, %v1875_v44  ;;  %vm1892_vm6 = vcmp.eq.f32.partialorder %v1891_v31, 8.507059e+37  ;;  %v1926_v44 = vrot.slane %v5554_v48, 7  ;;  %v1925_v1 = vrot.slane %v5578_v54, 7 }
 0x95d   :  { %v1903_v16 = vmul.f32 2.0, %v5749_v42  ;;  %v1883_v7 = vmul.f32 %v4614_v56, %v5670_v40  ;;  %vm1888_vm15 = vweird.f32 %v4614_v56  ;;  %v1940_v9 = vmul.f32 %v1924_v52, %v5718_v3 }
 0x95e   :  { %vm1889_vm5 = vmor %vm1887_vm2, %vm1888_vm15  ;;  %v1938_v4 = vmul.f32 %v1922_v18, %v5723_v8  ;;  %v1942_v22 = vmul.f32 %v1926_v44, %v5737_v51  ;;  %vm7015_vm4 = vcmask 1041409   ;;  %vm7016_vm7 = vcmask 1042434  }
 0x95f   :  { %1963 = vrot.lane.b32.xlu1 %v4333_v60, %s5028_s28  ;;  %v1884_v5 = vsub.f32 1.0, %v1883_v7  ;;  %v4334_v29 = vadd.f32 -1.0, %v1903_v16  ;;  %v1941_v60 = vmul.f32 %v1925_v1, %v5742_v21  ;;  %vm7017_vm8 = vcmask 1043459  }
 0x960   :  { %1961 = vrot.lane.b32.xlu2 %v4332_v24, %s5028_s28  ;;  %vm7018_vm11 = vcmask 1044484   ;;  %vm7019_vm9 = vcmask 1045509   ;;  %vm7020_vm3 = vcmask 1046534   ;;  %vm7021_vm10 = vcmask 1047559  }
 0x961   :  { %v1885_v23 = vmul.f32 %v4614_v56, %v1884_v5  ;;  %vm7022_vm12 = vcmask 261120  }
 0x963   :  { %v1886_v28 = vadd.f32 %v4614_v56, %v1885_v23  ;;  %v1928_v23 = vrot.slane %v5584_v37, 7 }
 0x964   :  { %1965 = vrot.lane.b32.xlu0 %v4334_v29, %s5028_s28  ;;  %v1923_v29 = vrot.slane %v5572_v10, 7  ;;  %v1921_v10 = vrot.slane %v5547_v11, 7 }
 0x965   :  { %v1890_v41 = vsel %vm1889_vm5, %v4614_v56, %v1886_v28 }
 0x966   :  { %v5759_v32 = vsel %vm1892_vm6, %v1894_v27, %v1890_v41  ;;  %v1939_v28 = vmul.f32 %v1923_v29, %v5698_v55  ;;  %v1937_v37 = vmul.f32 %v1921_v10, %v5714_v36 }
 0x967   :  { %v1904_v47 = vmul.f32 2.0, %v5759_v32  ;;  %v1944_v31 = vmul.f32 %v1928_v23, %v5759_v32 }
 0x969   :  { %v4335_v33 = vadd.f32 -1.0, %v1904_v47 }
 0x96b   :  { %1967 = vrot.lane.b32.xlu2 %v4335_v33, %s5028_s28 }
 0x9b2   :  { %v1956_v43 = vpop.permute.xlu2 %1955 }
 0x9b3   :  { %v1978_v34 = vmul.f32 %v1956_v43, %v5723_v8 }
 0x9b5   :  { %1995 = vrot.lane.b32.xlu0 %v1978_v34, %s5035_s2 }
 0x9ba   :  { %v1962_v45 = vpop.permute.xlu2 %1961 }
 0x9bb   :  { %v1981_v57 = vmul.f32 %v1962_v45, %v5742_v21 }
 0x9bd   :  { %2001 = vrot.lane.b32.xlu0 %v1981_v57, %s5035_s2 }
 0x9c5   :  { %v1968_v40 = vpop.permute.xlu2 %1967 }
 0x9c6   :  { %v1958_v38 = vpop.permute.xlu0 %1957  ;;  %v1984_v46 = vmul.f32 %v1968_v40, %v5759_v32  ;;  %v1927_v40 = vrot.slane %v5568_v63, 7 }
 0x9c7   :  { %v1979_v35 = vmul.f32 %v1958_v38, %v5698_v55 }
 0x9c8   :  { %2007 = vrot.lane.b32.xlu0 %v1984_v46, %s5035_s2  ;;  %v1943_v38 = vmul.f32 %v1927_v40, %v5749_v42 }
 0x9c9   :  { %v1960_v30 = vpop.permute.xlu1 %1959  ;;  %1997 = vrot.lane.b32.xlu1 %v1979_v35, %s5035_s2 }
 0x9ca   :  { %v1980_v50 = vmul.f32 %v1960_v30, %v5718_v3 }
 0x9cc   :  { %1999 = vrot.lane.b32.xlu2 %v1980_v50, %s5035_s2 }
 0x9ce   :  { %v1954_v0 = vpop.permute.xlu0 %1953 }
 0x9cf   :  { %v1977_v14 = vmul.f32 %v1954_v0, %v5714_v36 }
 0x9d1   :  { %v1964_v62 = vpop.permute.xlu1 %1963  ;;  %1993 = vrot.lane.b32.xlu1 %v1977_v14, %s5035_s2 }
 0x9d2   :  { %v1982_v61 = vmul.f32 %v1964_v62, %v5737_v51 }
 0x9d4   :  { %2003 = vrot.lane.b32.xlu2 %v1982_v61, %s5035_s2 }
 0x9d6   :  { %v1966_v12 = vpop.permute.xlu0 %1965 }
 0x9d7   :  { %v1983_v49 = vmul.f32 %v1966_v12, %v5749_v42 }
 0x9d9   :  { %2005 = vrot.lane.b32.xlu1 %v1983_v49, %s5035_s2 }
 0xa26   :  { %v2000_v6 = vpop.permute.xlu2 %1999 }
 0xa27   :  { %v5783_v2 = vadd.f32 %v2000_v6, %v1940_v9  ;;  %v1996_v59 = vpop.permute.xlu0 %1995 }
 0xa28   :  { %v5785_v53 = vadd.f32 %v1996_v59, %v1938_v4 }
 0xa29   :  { %4615 = vtanh.f32 %v5783_v2 }
 0xa2a   :  { %4617 = vtanh.f32 %v5785_v53 }
 0xa2e   :  { %v2004_v56 = vpop.permute.xlu2 %2003 }
 0xa2f   :  { %v4616_v24 = vpop.eup %4615  ;;  %v5793_v16 = vadd.f32 %v2004_v56, %v1942_v22  ;;  %v2002_v7 = vpop.permute.xlu0 %2001 }
 0xa30   :  { %v4618_v5 = vpop.eup %4617  ;;  %v5795_v19 = vadd.f32 %v2002_v7, %v1941_v60  ;;  %2047 = vrot.lane.b32.xlu0 %v4616_v24, %s5028_s28 }
 0xa31   :  { %4619 = vtanh.f32 %v5793_v16  ;;  %2043 = vrot.lane.b32.xlu1 %v4618_v5, %s5028_s28 }
 0xa32   :  { %4621 = vtanh.f32 %v5795_v19 }
 0xa37   :  { %v4620_v48 = vpop.eup %4619 }
 0xa38   :  { %v4622_v54 = vpop.eup %4621  ;;  %2051 = vrot.lane.b32.xlu0 %v4620_v48, %s5028_s28 }
 0xa39   :  { %2049 = vrot.lane.b32.xlu1 %v4622_v54, %s5028_s28 }
 0xa3a   :  { %v2008_v27 = vpop.permute.xlu0 %2007 }
 0xa3b   :  { %v1998_v41 = vpop.permute.xlu1 %1997  ;;  %v5807_v47 = vadd.f32 %v2008_v27, %v1944_v31 }
 0xa3c   :  { %v5809_v33 = vadd.f32 %v1998_v41, %v1939_v28 }
 0xa3d   :  { %4623 = vtanh.f32 %v5807_v47 }
 0xa3e   :  { %4625 = vtanh.f32 %v5809_v33 }
 0xa43   :  { %v1994_v43 = vpop.permute.xlu1 %1993  ;;  %v4624_v34 = vpop.eup %4623 }
 0xa44   :  { %v5815_v45 = vadd.f32 %v1994_v43, %v1937_v37  ;;  %v4626_v57 = vpop.eup %4625  ;;  %2055 = vrot.lane.b32.xlu1 %v4624_v34, %s5028_s28 }
 0xa45   :  { %2045 = vrot.lane.b32.xlu2 %v4626_v57, %s5028_s28 }
 0xa46   :  { %4627 = vtanh.f32 %v5815_v45 }
 0xa4b   :  { %v2006_v46 = vpop.permute.xlu1 %2005 }
 0xa4c   :  { %v4628_v35 = vpop.eup %4627  ;;  %v5822_v11 = vadd.f32 %v2006_v46, %v1943_v38 }
 0xa4d   :  { %2041 = vrot.lane.b32.xlu2 %v4628_v35, %s5028_s28 }
 0xa4e   :  { %4629 = vtanh.f32 %v5822_v11 }
 0xa54   :  { %v4630_v30 = vpop.eup %4629 }
 0xa55   :  { %2053 = vrot.lane.b32.xlu2 %v4630_v30, %s5028_s28 }
 0xa9f   :  { %v2046_v50 = vpop.permute.xlu2 %2045 }
 0xaa0   :  { %v2067_v49 = vmul.f32 %v2046_v50, %v5698_v55 }
 0xaa2   :  { %v2048_v0 = vpop.permute.xlu0 %2047  ;;  %v2075_v1 = vpack.c.bf16 %v2067_v49, %v2067_v49 }
 0xaa3   :  { %v2044_v14 = vpop.permute.xlu1 %2043  ;;  %v2068_v63 = vmul.f32 %v2048_v0, %v5718_v3 }
 0xaa4   :  { %v2066_v62 = vmul.f32 %v2044_v14, %v5723_v8  ;;  %v2091_v5 = vunpack.c.l.b16 %v2075_v1 }
 0xaa5   :  { %v2076_v59 = vpack.c.bf16 %v2068_v63, %v2068_v63 }
 0xaa6   :  { %v2074_v61 = vpack.c.bf16 %v2066_v62, %v2066_v62 }
 0xaa7   :  { %v2042_v12 = vpop.permute.xlu2 %2041  ;;  %v2092_v3 = vunpack.c.l.b16 %v2076_v59 }
 0xaa8   :  { %v2065_v52 = vmul.f32 %v2042_v12, %v5714_v36  ;;  %v2090_v18 = vunpack.c.l.b16 %v2074_v61 }
 0xaaa   :  { %v2073_v9 = vpack.c.bf16 %v2065_v52, %v2065_v52  ;;  %v2052_v4 = vpop.permute.xlu0 %2051  ;;  %v2098_v60 = vrot.slane %v2090_v18, 1 }
 0xaab   :  { %v2050_v6 = vpop.permute.xlu1 %2049  ;;  %v2070_v8 = vmul.f32 %v2052_v4, %v5737_v51 }
 0xaac   :  { %v2069_v44 = vmul.f32 %v2050_v6, %v5742_v21  ;;  %v2089_v22 = vunpack.c.l.b16 %v2073_v9  ;;  %v2101_v21 = vrot.slane %v2092_v3, 7 }
 0xaad   :  { %v2078_v54 = vpack.c.bf16 %v2070_v8, %v2070_v8 }
 0xaae   :  { %v2077_v56 = vpack.c.bf16 %v2069_v44, %v2069_v44  ;;  %v2097_v24 = vrot.slane %v2089_v22, 2 }
 0xaaf   :  { %v2054_v7 = vpop.permute.xlu2 %2053  ;;  %v2094_v51 = vunpack.c.l.b16 %v2078_v54 }
 0xab0   :  { %v2099_v55 = vsel %vm7015_vm4, %v2098_v60, %v2097_v24  ;;  %v2093_v36 = vunpack.c.l.b16 %v2077_v56  ;;  %v2071_v48 = vmul.f32 %v2054_v7, %v5749_v42 }
 0xab1   :  { %v2100_v29 = vsel %vm7016_vm7, %v2091_v5, %v2099_v55  ;;  %v2105_v34 = vrot.slane %v2094_v51, 5 }
 0xab2   :  { %v2079_v23 = vpack.c.bf16 %v2071_v48, %v2071_v48  ;;  %v2103_v31 = vrot.slane %v2093_v36, 6  ;;  %v2102_v27 = vsel %vm7017_vm8, %v2101_v21, %v2100_v29 }
 0xab4   :  { %v2095_v28 = vunpack.c.l.b16 %v2079_v23  ;;  %v2104_v37 = vsel %vm7018_vm11, %v2103_v31, %v2102_v27 }
 0xab5   :  { %v2106_v42 = vsel %vm7019_vm9, %v2105_v34, %v2104_v37 }
 0xab6   :  { %v2056_v41 = vpop.permute.xlu1 %2055  ;;  %v2107_v43 = vrot.slane %v2095_v28, 4 }
 0xab7   :  { %v2072_v10 = vmul.f32 %v2056_v41, %v5759_v32 }
 0xab8   :  { %v2108_v38 = vsel %vm7020_vm3, %v2107_v43, %v2106_v42 }
 0xab9   :  { %v2080_v57 = vpack.c.bf16 %v2072_v10, %v2072_v10 }
 0xabb   :  { %v2096_v40 = vunpack.c.l.b16 %v2080_v57 }
 0xabd   :  { %v2109_v46 = vrot.slane %v2096_v40, 3 }
 0xabf   :  { %v2110_v35 = vsel %vm7021_vm10, %v2109_v46, %v2108_v38 }
 0xac0   :  { %v2111_v30 = vpack.c.b16 %v2110_v35, %v2110_v35 }
 0xac2   :  { %2112 = vrot.lane.b32.xlu0 %v2111_v30, %s5035_s2 }
 0xb34   :  { %v2113_v50 = vpop.permute.xlu0 %2112 }
 0xb35   :  { %4336 = vmatmul.msk.bf16.vlgmr.msrb.gmra.mxu0 %vm7022_vm12, %v2113_v50 }
 0xbb2   :  { %v2126_v32 = vpop.f32.mrf.mxu0 }
 0xbb3   :  { %v2131_v0 = vrot.slane %v2126_v32, 5  ;;  %v2132_v14 = vrot.slane %v2126_v32, 6  ;;  %v2133_v62 = vrot.slane %v2126_v32, 7  ;;  %v2134_v61 = vrot.slane %v2126_v32, 1 }
 0xbb4   :  { %v2135_v63 = vrot.slane %v2126_v32, 2  ;;  %v2136_v12 = vrot.slane %v2126_v32, 3  ;;  %v2137_v49 = vrot.slane %v2126_v32, 4  ;;  %v2149_v52 = vadd.f32 %v2126_v32, %v5250_v39 }
 0xbb5   :  { %v2146_v18 = vadd.f32 %v2131_v0, %v5234_v15  ;;  %v2147_v9 = vadd.f32 %v2132_v14, %v5240_v26  ;;  %v2148_v6 = vadd.f32 %v2133_v62, %v5245_v17  ;;  %v2150_v4 = vadd.f32 %v2134_v61, %v5257_v58 }
 0xbb6   :  { %v2151_v59 = vadd.f32 %v2135_v63, %v5266_v13  ;;  %v4340_v44 = vmul.f32 -1.442695, %v2149_v52  ;;  %v2152_v1 = vadd.f32 %v2136_v12, %v5289_v20  ;;  %v2153_v60 = vadd.f32 %v2137_v49, %v5294_v25 }
 0xbb7   :  { %v4337_v22 = vmul.f32 -1.442695, %v2146_v18  ;;  %v4338_v56 = vmul.f32 -1.442695, %v2147_v9  ;;  %v4339_v8 = vmul.f32 -1.442695, %v2148_v6 }
 0xbb8   :  { %4631 = vpow2.f32 %v4340_v44  ;;  %v4341_v24 = vmul.f32 -1.442695, %v2150_v4  ;;  %v4342_v3 = vmul.f32 -1.442695, %v2151_v59  ;;  %v4343_v5 = vmul.f32 -1.442695, %v2152_v1 }
 0xbb9   :  { %4633 = vpow2.f32 %v4337_v22  ;;  %v4344_v55 = vmul.f32 -1.442695, %v2153_v60 }
 0xbba   :  { %4635 = vpow2.f32 %v4338_v56  ;;  %v2128_v7 = vpop.f32.mrf.mxu0 }
 0xbbb   :  { %4637 = vpow2.f32 %v4339_v8 }
 0xbbc   :  { %4639 = vpow2.f32 %v4341_v24 }
 0xbbd   :  { %4641 = vpow2.f32 %v4342_v3 }
 0xbbe   :  { %v4632_v36 = vpop.eup %4631  ;;  %4643 = vpow2.f32 %v4343_v5 }
 0xbbf   :  { %v4634_v48 = vpop.eup %4633  ;;  %v5852_v54 = vadd.f32 1.0, %v4632_v36  ;;  %4645 = vpow2.f32 %v4344_v55 }
 0xbc0   :  { %v4636_v29 = vpop.eup %4635  ;;  %v5854_v23 = vadd.f32 1.0, %v4634_v48 }
 0xbc1   :  { %v4638_v21 = vpop.eup %4637  ;;  %4647 = vrcp.f32 %v5852_v54  ;;  %v5860_v27 = vadd.f32 1.0, %v4636_v29  ;;  %v2240_v41 = vand.u32 2147483647, %v5852_v54  ;;  %v2242_v10 = vand.u32 2147483648, %v5852_v54 }
 0xbc2   :  { %v5857_v31 = vadd.f32 1.0, %v4638_v21  ;;  %4649 = vrcp.f32 %v5854_v23  ;;  %v4640_v28 = vpop.eup %4639  ;;  %v2195_v34 = vand.u32 2147483647, %v5854_v23  ;;  %v2197_v57 = vand.u32 2147483648, %v5854_v23 }
 0xbc3   :  { %v4642_v51 = vpop.eup %4641  ;;  %vm2236_vm0 = vweird.f32 %v5852_v54  ;;  %vm2191_vm13 = vweird.f32 %v5854_v23  ;;  %v2212_v46 = vand.u32 2147483648, %v5860_v27  ;;  %v5875_v30 = vadd.f32 1.0, %v4640_v28 }
 0xbc4   :  { %4651 = vrcp.f32 %v5857_v31  ;;  %v4644_v37 = vpop.eup %4643  ;;  %v2227_v43 = vand.u32 2147483648, %v5857_v31  ;;  %v2225_v38 = vand.u32 2147483647, %v5857_v31  ;;  %v5873_v35 = vadd.f32 1.0, %v4642_v51 }
 0xbc5   :  { %4653 = vrcp.f32 %v5860_v27  ;;  %v4646_v42 = vpop.eup %4645  ;;  %vm5878_vm1 = vcmp.eq.f32.partialorder %v2240_v41, 8.507059e+37  ;;  %v2243_v14 = vor.u32 1.1754944e-38, %v2242_v10  ;;  %v2210_v62 = vand.u32 2147483647, %v5860_v27 }
 0xbc6   :  { %vm2221_vm14 = vweird.f32 %v5857_v31  ;;  %v2228_v61 = vor.u32 1.1754944e-38, %v2227_v43  ;;  %vm5885_vm15 = vcmp.eq.f32.partialorder %v2195_v34, 8.507059e+37  ;;  %v2198_v49 = vor.u32 1.1754944e-38, %v2197_v57 }
 0xbc7   :  { %v4648_v40 = vpop.eup %4647  ;;  %4655 = vrcp.f32 %v5873_v35  ;;  %vm2206_vm2 = vweird.f32 %v5860_v27  ;;  %v5892_v9 = vadd.f32 1.0, %v4646_v42  ;;  %v5894_v6 = vadd.f32 1.0, %v4644_v37 }
 0xbc8   :  { %v4650_v50 = vpop.eup %4649  ;;  %v2232_v32 = vmul.f32 %v4648_v40, %v5852_v54  ;;  %4657 = vrcp.f32 %v5875_v30  ;;  %vm2237_vm5 = vweird.f32 %v4648_v40  ;;  %vm5897_vm6 = vcmp.eq.f32.partialorder %v2225_v38, 8.507059e+37 }
 0xbc9   :  { %v2187_v63 = vmul.f32 %v4650_v50, %v5854_v23  ;;  %v2213_v22 = vor.u32 1.1754944e-38, %v2212_v46  ;;  %vm2192_vm4 = vweird.f32 %v4650_v50  ;;  %vm5902_vm7 = vcmp.eq.f32.partialorder %v2210_v62, 8.507059e+37  ;;  %vm2238_vm3 = vmor %vm2236_vm0, %vm2237_vm5 }
 0xbca   :  { %v4652_v52 = vpop.eup %4651  ;;  %v2233_v18 = vsub.f32 1.0, %v2232_v32  ;;  %v2270_v24 = vand.u32 2147483647, %v5873_v35  ;;  %v2272_v5 = vand.u32 2147483648, %v5873_v35  ;;  %vm2266_vm9 = vweird.f32 %v5873_v35  ;;  %vm2193_vm10 = vmor %vm2191_vm13, %vm2192_vm4 }
 0xbcb   :  { %v4654_v4 = vpop.eup %4653  ;;  %v2217_v59 = vmul.f32 %v4652_v52, %v5857_v31  ;;  %v2188_v1 = vsub.f32 1.0, %v2187_v63  ;;  %vm2222_vm8 = vweird.f32 %v4652_v52  ;;  %4659 = vrcp.f32 %v5892_v9 }
 0xbcc   :  { %v2234_v56 = vmul.f32 %v4648_v40, %v2233_v18  ;;  %v2202_v8 = vmul.f32 %v4654_v4, %v5860_v27  ;;  %vm2207_vm11 = vweird.f32 %v4654_v4  ;;  %v2255_v28 = vand.u32 2147483647, %v5875_v30  ;;  %vm2223_vm0 = vmor %vm2221_vm14, %vm2222_vm8 }
 0xbcd   :  { %v2218_v3 = vsub.f32 1.0, %v2217_v59  ;;  %v2189_v7 = vmul.f32 %v4650_v50, %v2188_v1  ;;  %v4656_v48 = vpop.eup %4655  ;;  %v2257_v51 = vand.u32 2147483648, %v5875_v30  ;;  %vm2208_vm13 = vmor %vm2206_vm2, %vm2207_vm11  ;;  %vm2271_vm14 = vcmp.eq.f32.partialorder %v2270_v24, 8.507059e+37 }
 0xbce   :  { %v2235_v55 = vadd.f32 %v4648_v40, %v2234_v56  ;;  %v2203_v36 = vsub.f32 1.0, %v2202_v8  ;;  %v4658_v41 = vpop.eup %4657  ;;  %v2262_v43 = vmul.f32 %v4656_v48, %v5873_v35  ;;  %vm2267_vm12 = vweird.f32 %v4656_v48 }
 0xbcf   :  { %v2219_v29 = vmul.f32 %v4652_v52, %v2218_v3  ;;  %v2190_v21 = vadd.f32 %v4650_v50, %v2189_v7  ;;  %v2247_v42 = vmul.f32 %v4658_v41, %v5875_v30  ;;  %vm2268_vm2 = vmor %vm2266_vm9, %vm2267_vm12  ;;  %vm2256_vm5 = vcmp.eq.f32.partialorder %v2255_v28, 8.507059e+37 }
 0xbd0   :  { %v2239_v10 = vsel %vm2238_vm3, %v4648_v40, %v2235_v55  ;;  %v2204_v37 = vmul.f32 %v4654_v4, %v2203_v36  ;;  %v2263_v46 = vsub.f32 1.0, %v2262_v43  ;;  %v2258_v8 = vor.u32 1.1754944e-38, %v2257_v51 }
 0xbd1   :  { %v5921_v54 = vsel %vm5878_vm1, %v2243_v14, %v2239_v10  ;;  %v2220_v34 = vadd.f32 %v4652_v52, %v2219_v29  ;;  %v2194_v57 = vsel %vm2193_vm10, %v4650_v50, %v2190_v21  ;;  %v2248_v50 = vsub.f32 1.0, %v2247_v42  ;;  %v4660_v14 = vpop.eup %4659 }
 0xbd2   :  { %v2309_v38 = vmul.f32 2.0, %v5921_v54  ;;  %v5930_v23 = vsel %vm5885_vm15, %v2198_v49, %v2194_v57  ;;  %v2205_v40 = vadd.f32 %v4654_v4, %v2204_v37  ;;  %vm2252_vm1 = vweird.f32 %v4658_v41 }
 0xbd3   :  { %v2224_v32 = vsel %vm2223_vm0, %v4652_v52, %v2220_v34  ;;  %v2306_v0 = vmul.f32 2.0, %v5930_v23  ;;  %v2264_v12 = vmul.f32 %v4656_v48, %v2263_v46  ;;  %v2249_v59 = vmul.f32 %v4658_v41, %v2248_v50 }
 0xbd4   :  { %v4348_v62 = vadd.f32 -1.0, %v2309_v38  ;;  %v5938_v31 = vsel %vm5897_vm6, %v2228_v61, %v2224_v32  ;;  %v2209_v63 = vsel %vm2208_vm13, %v4654_v4, %v2205_v40  ;;  %vm2251_vm15 = vweird.f32 %v5875_v30 }
 0xbd5   :  { %v2308_v49 = vmul.f32 2.0, %v5938_v31  ;;  %v4345_v18 = vadd.f32 -1.0, %v2306_v0  ;;  %v5943_v52 = vsel %vm5902_vm7, %v2213_v22, %v2209_v63  ;;  %v2265_v27 = vadd.f32 %v4656_v48, %v2264_v12  ;;  %vm2253_vm6 = vmor %vm2251_vm15, %vm2252_vm1 }
 0xbd6   :  { %2368 = vrot.lane.b32.xlu1 %v4348_v62, %s5028_s28  ;;  %v2292_v44 = vmul.f32 %v4660_v14, %v5892_v9  ;;  %v2273_v4 = vor.u32 1.1754944e-38, %v2272_v5  ;;  %v2250_v1 = vadd.f32 %v4658_v41, %v2249_v59  ;;  %v2307_v22 = vmul.f32 2.0, %v5943_v52 }
 0xbd7   :  { %v4347_v61 = vadd.f32 -1.0, %v2308_v49  ;;  %2362 = vrot.lane.b32.xlu2 %v4345_v18, %s5028_s28  ;;  %v2269_v56 = vsel %vm2268_vm2, %v4656_v48, %v2265_v27  ;;  %v2302_v3 = vand.u32 2147483648, %v5892_v9  ;;  %4661 = vrcp.f32 %v5894_v6 }
 0xbd8   :  { %v2293_v60 = vsub.f32 1.0, %v2292_v44  ;;  %v5955_v30 = vsel %vm2271_vm14, %v2273_v4, %v2269_v56  ;;  %v2254_v24 = vsel %vm2253_vm6, %v4658_v41, %v2250_v1  ;;  %vm2297_vm4 = vweird.f32 %v4660_v14 }
 0xbd9   :  { %2366 = vrot.lane.b32.xlu0 %v4347_v61, %s5028_s28  ;;  %v5959_v35 = vsel %vm2256_vm5, %v2258_v8, %v2254_v24  ;;  %v2300_v5 = vand.u32 2147483647, %v5892_v9  ;;  %v2311_v55 = vmul.f32 2.0, %v5955_v30  ;;  %v4346_v48 = vadd.f32 -1.0, %v2307_v22 }
 0xbda   :  { %v2294_v7 = vmul.f32 %v4660_v14, %v2293_v60  ;;  %v2310_v36 = vmul.f32 2.0, %v5959_v35  ;;  %vm2296_vm7 = vweird.f32 %v5892_v9  ;;  %v2303_v28 = vor.u32 1.1754944e-38, %v2302_v3 }
 0xbdb   :  { %vm2298_vm8 = vmor %vm2296_vm7, %vm2297_vm4  ;;  %vm2301_vm11 = vcmp.eq.f32.partialorder %v2300_v5, 8.507059e+37  ;;  %v4350_v10 = vadd.f32 -1.0, %v2311_v55  ;;  %v2287_v57 = vand.u32 2147483648, %v5894_v6  ;;  %v2285_v40 = vand.u32 2147483647, %v5894_v6 }
 0xbdc   :  { %v2295_v29 = vadd.f32 %v4660_v14, %v2294_v7  ;;  %v4349_v21 = vadd.f32 -1.0, %v2310_v36  ;;  %vm2281_vm3 = vweird.f32 %v5894_v6  ;;  %v2333_v3 = vrot.slane %v5783_v2, 7 }
 0xbdd   :  { %v4662_v41 = vpop.eup %4661  ;;  %v2288_v32 = vor.u32 1.1754944e-38, %v2287_v57  ;;  %vm2286_vm12 = vcmp.eq.f32.partialorder %v2285_v40, 8.507059e+37  ;;  %v2330_v7 = vrot.slane %v5815_v45, 7  ;;  %v2334_v2 = vrot.slane %v5795_v19, 7 }
 0xbde   :  { %2364 = vrot.lane.b32.xlu1 %v4346_v48, %s5028_s28  ;;  %v2299_v51 = vsel %vm2298_vm8, %v4660_v14, %v2295_v29  ;;  %v2277_v34 = vmul.f32 %v4662_v41, %v5894_v6  ;;  %vm2282_vm9 = vweird.f32 %v4662_v41  ;;  %v2349_v5 = vmul.f32 %v2333_v3, %v5921_v54 }
 0xbdf   :  { %2370 = vrot.lane.b32.xlu2 %v4349_v21, %s5028_s28  ;;  %v5967_v37 = vsel %vm2301_vm11, %v2303_v28, %v2299_v51  ;;  %vm2283_vm10 = vmor %vm2281_vm3, %vm2282_vm9  ;;  %v2346_v36 = vmul.f32 %v2330_v7, %v5930_v23  ;;  %v2331_v28 = vrot.slane %v5785_v53, 7  ;;  %v2337_v53 = vrot.slane %v5807_v47, 7 }
 0xbe0   :  { %v2313_v43 = vmul.f32 2.0, %v5967_v37  ;;  %v2278_v9 = vsub.f32 1.0, %v2277_v34  ;;  %vm7031_vm0 = vcmask 1041409   ;;  %vm7032_vm13 = vcmask 1042434  }
 0xbe1   :  { %2372 = vrot.lane.b32.xlu0 %v4350_v10, %s5028_s28  ;;  %v2347_v45 = vmul.f32 %v2331_v28, %v5943_v52  ;;  %v2353_v19 = vmul.f32 %v2337_v53, %v5967_v37  ;;  %vm7033_vm1 = vcmask 1043459   ;;  %vm7034_vm14 = vcmask 1044484  }
 0xbe2   :  { %v4352_v42 = vadd.f32 -1.0, %v2313_v43  ;;  %v2279_v38 = vmul.f32 %v4662_v41, %v2278_v9  ;;  %vm7035_vm15 = vcmask 1045509   ;;  %vm7036_vm2 = vcmask 1046534  }
 0xbe3   :  { %vm7037_vm5 = vcmask 1047559   ;;  %vm7038_vm6 = vcmask 261120  }
 0xbe4   :  { %v2280_v46 = vadd.f32 %v4662_v41, %v2279_v38 }
 0xbe6   :  { %2376 = vrot.lane.b32.xlu1 %v4352_v42, %s5028_s28  ;;  %v2284_v0 = vsel %vm2283_vm10, %v4662_v41, %v2280_v46  ;;  %v2350_v41 = vmul.f32 %v2334_v2, %v5959_v35 }
 0xbe7   :  { %v5976_v50 = vsel %vm2286_vm12, %v2288_v32, %v2284_v0  ;;  %v2336_v32 = vrot.slane %v5822_v11, 7  ;;  %v2335_v11 = vrot.slane %v5793_v16, 7 }
 0xbe8   :  { %v2312_v14 = vmul.f32 2.0, %v5976_v50 }
 0xbe9   :  { %v2352_v0 = vmul.f32 %v2336_v32, %v5976_v50 }
 0xbea   :  { %v4351_v62 = vadd.f32 -1.0, %v2312_v14  ;;  %v2332_v14 = vrot.slane %v5809_v33, 7  ;;  %v2351_v33 = vmul.f32 %v2335_v11, %v5955_v30 }
 0xbec   :  { %2374 = vrot.lane.b32.xlu2 %v4351_v62, %s5028_s28 }
 0xc31   :  { %v2363_v63 = vpop.permute.xlu2 %2362 }
 0xc32   :  { %v2386_v12 = vmul.f32 %v2363_v63, %v5930_v23 }
 0xc34   :  { %2402 = vrot.lane.b32.xlu0 %v2386_v12, %s5035_s2  ;;  %v2348_v12 = vmul.f32 %v2332_v14, %v5938_v31 }
 0xc39   :  { %v2371_v49 = vpop.permute.xlu2 %2370 }
 0xc3a   :  { %v2390_v18 = vmul.f32 %v2371_v49, %v5959_v35 }
 0xc3c   :  { %2410 = vrot.lane.b32.xlu0 %v2390_v18, %s5035_s2 }
 0xc46   :  { %v2375_v6 = vpop.permute.xlu2 %2374 }
 0xc47   :  { %v2392_v27 = vmul.f32 %v2375_v6, %v5976_v50 }
 0xc48   :  { %v2369_v59 = vpop.permute.xlu1 %2368 }
 0xc49   :  { %v2389_v44 = vmul.f32 %v2369_v59, %v5921_v54  ;;  %2414 = vrot.lane.b32.xlu0 %v2392_v27, %s5035_s2 }
 0xc4b   :  { %v2367_v61 = vpop.permute.xlu0 %2366  ;;  %2408 = vrot.lane.b32.xlu2 %v2389_v44, %s5035_s2 }
 0xc4c   :  { %v2388_v4 = vmul.f32 %v2367_v61, %v5938_v31 }
 0xc4e   :  { %2406 = vrot.lane.b32.xlu1 %v2388_v4, %s5035_s2 }
 0xc50   :  { %v2365_v1 = vpop.permute.xlu1 %2364 }
 0xc51   :  { %v2387_v22 = vmul.f32 %v2365_v1, %v5943_v52 }
 0xc53   :  { %v2373_v56 = vpop.permute.xlu0 %2372  ;;  %2404 = vrot.lane.b32.xlu2 %v2387_v22, %s5035_s2 }
 0xc54   :  { %v2391_v8 = vmul.f32 %v2373_v56, %v5955_v30 }
 0xc56   :  { %2412 = vrot.lane.b32.xlu1 %v2391_v8, %s5035_s2 }
 0xc58   :  { %v2377_v60 = vpop.permute.xlu1 %2376 }
 0xc59   :  { %v2393_v24 = vmul.f32 %v2377_v60, %v5967_v37 }
 0xc5b   :  { %2416 = vrot.lane.b32.xlu2 %v2393_v24, %s5035_s2 }
 0xca5   :  { %v2409_v55 = vpop.permute.xlu2 %2408 }
 0xca6   :  { %v6000_v48 = vadd.f32 %v2409_v55, %v2349_v5  ;;  %v2403_v29 = vpop.permute.xlu0 %2402 }
 0xca7   :  { %v6002_v21 = vadd.f32 %v2403_v29, %v2346_v36 }
 0xca8   :  { %4663 = vtanh.f32 %v6000_v48 }
 0xca9   :  { %4665 = vtanh.f32 %v6002_v21 }
 0xcad   :  { %v2405_v51 = vpop.permute.xlu2 %2404 }
 0xcae   :  { %v4664_v10 = vpop.eup %4663  ;;  %v6010_v43 = vadd.f32 %v2405_v51, %v2347_v45  ;;  %v2411_v34 = vpop.permute.xlu0 %2410 }
 0xcaf   :  { %v4666_v9 = vpop.eup %4665  ;;  %v6012_v57 = vadd.f32 %v2411_v34, %v2350_v41  ;;  %2456 = vrot.lane.b32.xlu0 %v4664_v10, %s5028_s28 }
 0xcb0   :  { %4667 = vtanh.f32 %v6010_v43  ;;  %2450 = vrot.lane.b32.xlu1 %v4666_v9, %s5028_s28 }
 0xcb1   :  { %4669 = vtanh.f32 %v6012_v57 }
 0xcb5   :  { %v2417_v42 = vpop.permute.xlu2 %2416 }
 0xcb6   :  { %v4668_v38 = vpop.eup %4667  ;;  %v6020_v40 = vadd.f32 %v2417_v42, %v2353_v19 }
 0xcb7   :  { %v4670_v46 = vpop.eup %4669  ;;  %2452 = vrot.lane.b32.xlu0 %v4668_v38, %s5028_s28 }
 0xcb8   :  { %4671 = vtanh.f32 %v6020_v40  ;;  %2458 = vrot.lane.b32.xlu1 %v4670_v46, %s5028_s28 }
 0xcbb   :  { %v2415_v47 = vpop.permute.xlu0 %2414 }
 0xcbc   :  { %v6028_v63 = vadd.f32 %v2415_v47, %v2352_v0 }
 0xcbe   :  { %v4672_v62 = vpop.eup %4671  ;;  %4673 = vtanh.f32 %v6028_v63 }
 0xcbf   :  { %2464 = vrot.lane.b32.xlu0 %v4672_v62, %s5028_s28 }
 0xcc0   :  { %v2407_v49 = vpop.permute.xlu1 %2406 }
 0xcc1   :  { %v6033_v18 = vadd.f32 %v2407_v49, %v2348_v12 }
 0xcc3   :  { %4675 = vtanh.f32 %v6033_v18 }
 0xcc4   :  { %v4674_v6 = vpop.eup %4673 }
 0xcc5   :  { %2462 = vrot.lane.b32.xlu1 %v4674_v6, %s5028_s28 }
 0xcc8   :  { %v2413_v59 = vpop.permute.xlu1 %2412 }
 0xcc9   :  { %v4676_v27 = vpop.eup %4675  ;;  %v6039_v44 = vadd.f32 %v2413_v59, %v2351_v33 }
 0xcca   :  { %2454 = vrot.lane.b32.xlu2 %v4676_v27, %s5028_s28 }
 0xccb   :  { %4677 = vtanh.f32 %v6039_v44 }
 0xcd1   :  { %v4678_v61 = vpop.eup %4677 }
 0xcd2   :  { %2460 = vrot.lane.b32.xlu2 %v4678_v61, %s5028_s28 }
 0xd21   :  { %v2457_v4 = vpop.permute.xlu0 %2456 }
 0xd22   :  { %v2451_v1 = vpop.permute.xlu1 %2450  ;;  %v2477_v2 = vmul.f32 %v2457_v4, %v5921_v54 }
 0xd23   :  { %v2474_v16 = vmul.f32 %v2451_v1, %v5930_v23 }
 0xd24   :  { %v2455_v22 = vpop.permute.xlu2 %2454  ;;  %v2485_v34 = vpack.c.bf16 %v2477_v2, %v2477_v2 }
 0xd25   :  { %v2476_v8 = vmul.f32 %v2455_v22, %v5938_v31  ;;  %v2482_v24 = vpack.c.bf16 %v2474_v16, %v2474_v16 }
 0xd26   :  { %v2501_v38 = vunpack.c.l.b16 %v2485_v34 }
 0xd27   :  { %v2484_v5 = vpack.c.bf16 %v2476_v8, %v2476_v8  ;;  %v2498_v29 = vunpack.c.l.b16 %v2482_v24 }
 0xd29   :  { %v2453_v56 = vpop.permute.xlu0 %2452  ;;  %v2500_v51 = vunpack.c.l.b16 %v2484_v5  ;;  %v2506_v10 = vrot.slane %v2498_v29, 3 }
 0xd2a   :  { %v2475_v60 = vmul.f32 %v2453_v56, %v5943_v52  ;;  %v2459_v3 = vpop.permute.xlu1 %2458 }
 0xd2b   :  { %v2478_v36 = vmul.f32 %v2459_v3, %v5959_v35  ;;  %v2509_v53 = vrot.slane %v2500_v51, 1 }
 0xd2c   :  { %v2483_v7 = vpack.c.bf16 %v2475_v60, %v2475_v60  ;;  %v2461_v28 = vpop.permute.xlu2 %2460 }
 0xd2d   :  { %v2486_v41 = vpack.c.bf16 %v2478_v36, %v2478_v36  ;;  %v2479_v31 = vmul.f32 %v2461_v28, %v5955_v30 }
 0xd2e   :  { %v2499_v55 = vunpack.c.l.b16 %v2483_v7 }
 0xd2f   :  { %v2502_v19 = vunpack.c.l.b16 %v2486_v41  ;;  %v2487_v42 = vpack.c.bf16 %v2479_v31, %v2479_v31 }
 0xd30   :  { %v2507_v45 = vrot.slane %v2499_v55, 2 }
 0xd31   :  { %v2465_v23 = vpop.permute.xlu0 %2464  ;;  %v2512_v32 = vrot.slane %v2502_v19, 7  ;;  %v2503_v47 = vunpack.c.l.b16 %v2487_v42 }
 0xd32   :  { %v2508_v52 = vsel %vm7031_vm0, %v2507_v45, %v2506_v10  ;;  %v2481_v9 = vmul.f32 %v2465_v23, %v5967_v37 }
 0xd33   :  { %v2510_v35 = vsel %vm7032_vm13, %v2509_v53, %v2508_v52  ;;  %v2514_v37 = vrot.slane %v2503_v47, 6 }
 0xd34   :  { %v2489_v46 = vpack.c.bf16 %v2481_v9, %v2481_v9  ;;  %v2511_v14 = vsel %vm7033_vm1, %v2501_v38, %v2510_v35 }
 0xd35   :  { %v2513_v12 = vsel %vm7034_vm14, %v2512_v32, %v2511_v14 }
 0xd36   :  { %v2505_v62 = vunpack.c.l.b16 %v2489_v46  ;;  %v2515_v6 = vsel %vm7035_vm15, %v2514_v37, %v2513_v12 }
 0xd37   :  { %v2463_v54 = vpop.permute.xlu1 %2462 }
 0xd38   :  { %v2480_v0 = vmul.f32 %v2463_v54, %v5976_v50  ;;  %v2518_v33 = vrot.slane %v2505_v62, 4 }
 0xd3a   :  { %v2488_v30 = vpack.c.bf16 %v2480_v0, %v2480_v0 }
 0xd3c   :  { %v2504_v49 = vunpack.c.l.b16 %v2488_v30 }
 0xd3e   :  { %v2516_v11 = vrot.slane %v2504_v49, 5 }
 0xd40   :  { %v2517_v59 = vsel %vm7036_vm2, %v2516_v11, %v2515_v6 }
 0xd41   :  { %v2519_v27 = vsel %vm7037_vm5, %v2518_v33, %v2517_v59 }
 0xd42   :  { %v2520_v61 = vpack.c.b16 %v2519_v27, %v2519_v27 }
 0xd44   :  { %2521 = vrot.lane.b32.xlu2 %v2520_v61, %s5035_s2 }
 0xd9e   :  { %v2522_v50 = vpop.permute.xlu2 %2521 }
 0xd9f   :  { %4353 = vmatmul.msk.bf16.vlgmr.msrb.gmra.mxu3 %vm7038_vm6, %v2522_v50 }
 0xe22   :  { %v2535_v4 = vpop.f32.mrf.mxu3 }
 0xe23   :  { %v2540_v1 = vrot.slane %v2535_v4, 4  ;;  %v2541_v22 = vrot.slane %v2535_v4, 5  ;;  %v2542_v16 = vrot.slane %v2535_v4, 6  ;;  %v2543_v56 = vrot.slane %v2535_v4, 7 }
 0xe24   :  { %v2544_v8 = vrot.slane %v2535_v4, 1  ;;  %v2546_v60 = vrot.slane %v2535_v4, 3  ;;  %v2559_v24 = vadd.f32 %v2535_v4, %v5257_v58  ;;  %v2545_v41 = vrot.slane %v2535_v4, 2 }
 0xe25   :  { %v2555_v3 = vadd.f32 %v2540_v1, %v5234_v15  ;;  %v2556_v7 = vadd.f32 %v2541_v22, %v5240_v26  ;;  %v2557_v5 = vadd.f32 %v2542_v16, %v5245_v17  ;;  %v2558_v29 = vadd.f32 %v2543_v56, %v5250_v39 }
 0xe26   :  { %v2560_v55 = vadd.f32 %v2544_v8, %v5266_v13  ;;  %v4358_v36 = vmul.f32 -1.442695, %v2559_v24  ;;  %v2562_v51 = vadd.f32 %v2546_v60, %v5294_v25  ;;  %v2561_v52 = vadd.f32 %v2545_v41, %v5289_v20 }
 0xe27   :  { %v4354_v28 = vmul.f32 -1.442695, %v2555_v3  ;;  %v4355_v2 = vmul.f32 -1.442695, %v2556_v7  ;;  %v4356_v45 = vmul.f32 -1.442695, %v2557_v5 }
 0xe28   :  { %4679 = vpow2.f32 %v4358_v36  ;;  %v4359_v23 = vmul.f32 -1.442695, %v2560_v55  ;;  %v4357_v31 = vmul.f32 -1.442695, %v2558_v29  ;;  %v4361_v34 = vmul.f32 -1.442695, %v2562_v51 }
 0xe29   :  { %4681 = vpow2.f32 %v4354_v28  ;;  %v4360_v46 = vmul.f32 -1.442695, %v2561_v52 }
 0xe2a   :  { %4683 = vpow2.f32 %v4355_v2  ;;  %v2537_v10 = vpop.f32.mrf.mxu3 }
 0xe2b   :  { %4685 = vpow2.f32 %v4356_v45 }
 0xe2c   :  { %4687 = vpow2.f32 %v4359_v23 }
 0xe2d   :  { %4689 = vpow2.f32 %v4357_v31 }
 0xe2e   :  { %v4680_v9 = vpop.eup %4679  ;;  %4691 = vpow2.f32 %v4361_v34 }
 0xe2f   :  { %v4682_v53 = vpop.eup %4681  ;;  %v6069_v19 = vadd.f32 1.0, %v4680_v9 }
 0xe30   :  { %v4684_v42 = vpop.eup %4683  ;;  %v6071_v35 = vadd.f32 1.0, %v4682_v53 }
 0xe31   :  { %v4686_v38 = vpop.eup %4685  ;;  %v6073_v54 = vadd.f32 1.0, %v4684_v42  ;;  %4693 = vrcp.f32 %v6069_v19  ;;  %v2664_v33 = vand.u32 2147483647, %v6069_v19  ;;  %v2666_v5 = vand.u32 2147483648, %v6069_v19 }
 0xe32   :  { %v6076_v32 = vadd.f32 1.0, %v4686_v38  ;;  %4695 = vrcp.f32 %v6071_v35  ;;  %v4688_v0 = vpop.eup %4687  ;;  %v2604_v62 = vand.u32 2147483647, %v6071_v35  ;;  %v2606_v37 = vand.u32 2147483648, %v6071_v35 }
 0xe33   :  { %4697 = vrcp.f32 %v6073_v54  ;;  %v2621_v14 = vand.u32 2147483648, %v6073_v54  ;;  %v4690_v47 = vpop.eup %4689  ;;  %v2619_v49 = vand.u32 2147483647, %v6073_v54  ;;  %vm2600_vm4 = vweird.f32 %v6071_v35 }
 0xe34   :  { %4699 = vrcp.f32 %v6076_v32  ;;  %v2636_v30 = vand.u32 2147483648, %v6076_v32  ;;  %v4692_v12 = vpop.eup %4691  ;;  %v2634_v6 = vand.u32 2147483647, %v6076_v32  ;;  %v6091_v59 = vadd.f32 1.0, %v4688_v0 }
 0xe35   :  { %4701 = vpow2.f32 %v4360_v46  ;;  %vm2615_vm7 = vweird.f32 %v6073_v54  ;;  %v2622_v61 = vor.u32 1.1754944e-38, %v2621_v14  ;;  %v6096_v4 = vadd.f32 1.0, %v4690_v47 }
 0xe36   :  { %vm2630_vm8 = vweird.f32 %v6076_v32  ;;  %v2637_v22 = vor.u32 1.1754944e-38, %v2636_v30  ;;  %vm6100_vm11 = vcmp.eq.f32.partialorder %v2604_v62, 8.507059e+37  ;;  %4703 = vrcp.f32 %v6091_v59 }
 0xe37   :  { %v6086_v11 = vpop.eup %4693  ;;  %vm6106_vm9 = vcmp.eq.f32.partialorder %v2619_v49, 8.507059e+37  ;;  %v2607_v3 = vor.u32 1.1754944e-38, %v2606_v37  ;;  %vm6112_vm3 = vcmp.eq.f32.partialorder %v2634_v6, 8.507059e+37  ;;  %vm2660_vm10 = vweird.f32 %v6069_v19 }
 0xe38   :  { %v4696_v27 = vpop.eup %4695  ;;  %v2656_v50 = vmul.f32 %v6086_v11, %v6069_v19  ;;  %vm2661_vm12 = vweird.f32 %v6086_v11  ;;  %v6118_v2 = vadd.f32 1.0, %v4692_v12  ;;  %v2679_v51 = vand.u32 2147483647, %v6091_v59 }
 0xe39   :  { %v4698_v1 = vpop.eup %4697  ;;  %v2596_v16 = vmul.f32 %v4696_v27, %v6071_v35  ;;  %vm2601_vm0 = vweird.f32 %v4696_v27  ;;  %4705 = vrcp.f32 %v6096_v4  ;;  %v2681_v31 = vand.u32 2147483648, %v6091_v59 }
 0xe3a   :  { %v4700_v8 = vpop.eup %4699  ;;  %v2611_v60 = vmul.f32 %v4698_v1, %v6073_v54  ;;  %v2657_v7 = vsub.f32 1.0, %v2656_v50  ;;  %vm2616_vm13 = vweird.f32 %v4698_v1  ;;  %v2667_v52 = vor.u32 1.1754944e-38, %v2666_v5  ;;  %vm2602_vm15 = vmor %vm2600_vm4, %vm2601_vm0 }
 0xe3b   :  { %v4702_v55 = vpop.eup %4701  ;;  %v2626_v36 = vmul.f32 %v4700_v8, %v6076_v32  ;;  %v2597_v28 = vsub.f32 1.0, %v2596_v16  ;;  %vm2631_vm1 = vweird.f32 %v4700_v8  ;;  %vm6126_vm14 = vcmp.eq.f32.partialorder %v2664_v33, 8.507059e+37  ;;  %vm2617_vm6 = vmor %vm2615_vm7, %vm2616_vm13 }
 0xe3c   :  { %v2612_v45 = vsub.f32 1.0, %v2611_v60  ;;  %v2658_v10 = vmul.f32 %v6086_v11, %v2657_v7  ;;  %v6124_v9 = vadd.f32 1.0, %v4702_v55  ;;  %v4704_v53 = vpop.eup %4703  ;;  %4707 = vrcp.f32 %v6118_v2  ;;  %vm2632_vm4 = vmor %vm2630_vm8, %vm2631_vm1 }
 0xe3d   :  { %v2627_v41 = vsub.f32 1.0, %v2626_v36  ;;  %v2598_v23 = vmul.f32 %v4696_v27, %v2597_v28  ;;  %v2671_v14 = vmul.f32 %v4704_v53, %v6091_v59  ;;  %vm2675_vm2 = vweird.f32 %v6091_v59  ;;  %vm6167_vm7 = vmor %vm2660_vm10, %vm2661_vm12 }
 0xe3e   :  { %v2613_v34 = vmul.f32 %v4698_v1, %v2612_v45  ;;  %vm6136_vm5 = vcmp.eq.f32.partialorder %v2679_v51, 8.507059e+37  ;;  %v2659_v12 = vadd.f32 %v6086_v11, %v2658_v10  ;;  %v2682_v49 = vor.u32 1.1754944e-38, %v2681_v31 }
 0xe3f   :  { %v2628_v42 = vmul.f32 %v4700_v8, %v2627_v41  ;;  %v2599_v38 = vadd.f32 %v4696_v27, %v2598_v23  ;;  %v4706_v37 = vpop.eup %4705  ;;  %v2672_v33 = vsub.f32 1.0, %v2671_v14  ;;  %v2651_v50 = vand.u32 2147483648, %v6096_v4 }
 0xe40   :  { %v2614_v0 = vadd.f32 %v4698_v1, %v2613_v34  ;;  %v2641_v60 = vmul.f32 %v4706_v37, %v6096_v4  ;;  %vm2676_vm8 = vweird.f32 %v4704_v53  ;;  %v2649_v28 = vand.u32 2147483647, %v6096_v4 }
 0xe41   :  { %v2629_v30 = vadd.f32 %v4700_v8, %v2628_v42  ;;  %v2603_v62 = vsel %vm2602_vm15, %v4696_v27, %v2599_v38  ;;  %4709 = vrcp.f32 %v6124_v9  ;;  %v2652_v23 = vor.u32 1.1754944e-38, %v2651_v50 }
 0xe42   :  { %v2618_v35 = vsel %vm2617_vm6, %v4698_v1, %v2614_v0  ;;  %v6149_v6 = vsel %vm6100_vm11, %v2607_v3, %v2603_v62  ;;  %v2642_v7 = vsub.f32 1.0, %v2641_v60  ;;  %vm2645_vm11 = vweird.f32 %v6096_v4 }
 0xe43   :  { %v2633_v16 = vsel %vm2632_vm4, %v4700_v8, %v2629_v30  ;;  %v6154_v54 = vsel %vm6106_vm9, %v2622_v61, %v2618_v35  ;;  %v2715_v27 = vmul.f32 2.0, %v6149_v6  ;;  %v2673_v61 = vmul.f32 %v4704_v53, %v2672_v33  ;;  %v4708_v8 = vpop.eup %4707  ;;  %vm2677_vm9 = vmor %vm2675_vm2, %vm2676_vm8 }
 0xe44   :  { %v6160_v32 = vsel %vm6112_vm3, %v2637_v22, %v2633_v16  ;;  %v2716_v1 = vmul.f32 2.0, %v6154_v54  ;;  %v2663_v22 = vsel %vm6167_vm7, %v6086_v11, %v2659_v12  ;;  %v2701_v19 = vmul.f32 %v4708_v8, %v6118_v2 }
 0xe45   :  { %v2717_v24 = vmul.f32 2.0, %v6160_v32  ;;  %v4362_v3 = vadd.f32 -1.0, %v2715_v27  ;;  %v2674_v55 = vadd.f32 %v4704_v53, %v2673_v61  ;;  %v2643_v29 = vmul.f32 %v4706_v37, %v2642_v7 }
 0xe46   :  { %v4363_v5 = vadd.f32 -1.0, %v2716_v1  ;;  %vm2646_vm3 = vweird.f32 %v4706_v37  ;;  %v6184_v11 = vsel %vm6126_vm14, %v2667_v52, %v2663_v22  ;;  %v2702_v51 = vsub.f32 1.0, %v2701_v19 }
 0xe47   :  { %v4364_v36 = vadd.f32 -1.0, %v2717_v24  ;;  %2771 = vrot.lane.b32.xlu1 %v4362_v3, %s5028_s28  ;;  %v2678_v45 = vsel %vm2677_vm9, %v4704_v53, %v2674_v55  ;;  %v2644_v41 = vadd.f32 %v4706_v37, %v2643_v29  ;;  %v2711_v10 = vand.u32 2147483648, %v6118_v2  ;;  %vm2647_vm10 = vmor %vm2645_vm11, %vm2646_vm3  ;;  %v4710_v47 = vpop.eup %4709 }
 0xe48   :  { %2773 = vrot.lane.b32.xlu0 %v4363_v5, %s5028_s28  ;;  %v6190_v59 = vsel %vm6136_vm5, %v2682_v49, %v2678_v45  ;;  %v2703_v34 = vmul.f32 %v4708_v8, %v2702_v51  ;;  %vm2706_vm12 = vweird.f32 %v4708_v8  ;;  %v2709_v52 = vand.u32 2147483647, %v6118_v2 }
 0xe49   :  { %2775 = vrot.lane.b32.xlu2 %v4364_v36, %s5028_s28  ;;  %v2720_v31 = vmul.f32 2.0, %v6190_v59  ;;  %v2719_v53 = vmul.f32 2.0, %v6184_v11  ;;  %v2648_v42 = vsel %vm2647_vm10, %v4706_v37, %v2644_v41  ;;  %vm2650_vm0 = vcmp.eq.f32.partialorder %v2649_v28, 8.507059e+37 }
 0xe4a   :  { %v6198_v38 = vsel %vm2650_vm0, %v2652_v23, %v2648_v42  ;;  %v2704_v46 = vadd.f32 %v4708_v8, %v2703_v34  ;;  %vm2705_vm13 = vweird.f32 %v6118_v2  ;;  %v2712_v14 = vor.u32 1.1754944e-38, %v2711_v10 }
 0xe4b   :  { %v2718_v0 = vmul.f32 2.0, %v6198_v38  ;;  %vm2707_vm1 = vmor %vm2705_vm13, %vm2706_vm12  ;;  %v4367_v4 = vadd.f32 -1.0, %v2720_v31  ;;  %vm2710_vm14 = vcmp.eq.f32.partialorder %v2709_v52, 8.507059e+37  ;;  %v4366_v62 = vadd.f32 -1.0, %v2719_v53 }
 0xe4c   :  { %v2708_v30 = vsel %vm2707_vm1, %v4708_v8, %v2704_v46  ;;  %v2686_v37 = vmul.f32 %v4710_v47, %v6124_v9  ;;  %v2696_v33 = vand.u32 2147483648, %v6124_v9  ;;  %vm2691_vm15 = vweird.f32 %v4710_v47 }
 0xe4d   :  { %v4365_v12 = vadd.f32 -1.0, %v2718_v0  ;;  %v6202_v49 = vsel %vm2710_vm14, %v2712_v14, %v2708_v30  ;;  %v2694_v16 = vand.u32 2147483647, %v6124_v9  ;;  %vm2690_vm2 = vweird.f32 %v6124_v9 }
 0xe4e   :  { %v2687_v2 = vsub.f32 1.0, %v2686_v37  ;;  %v2722_v35 = vmul.f32 2.0, %v6202_v49  ;;  %vm2692_vm5 = vmor %vm2690_vm2, %vm2691_vm15  ;;  %v2697_v1 = vor.u32 1.1754944e-38, %v2696_v33  ;;  %v2739_v34 = vrot.slane %v6002_v21, 7 }
 0xe4f   :  { %2777 = vrot.lane.b32.xlu1 %v4365_v12, %s5028_s28  ;;  %vm2695_vm6 = vcmp.eq.f32.partialorder %v2694_v16, 8.507059e+37  ;;  %v2741_v52 = vrot.slane %v6033_v18, 7  ;;  %v2743_v21 = vrot.slane %v6012_v57, 7  ;;  %v2745_v57 = vrot.slane %v6028_v63, 7 }
 0xe50   :  { %2781 = vrot.lane.b32.xlu0 %v4367_v4, %s5028_s28  ;;  %v2688_v50 = vmul.f32 %v4710_v47, %v2687_v2  ;;  %v4369_v60 = vadd.f32 -1.0, %v2722_v35  ;;  %v2755_v53 = vmul.f32 %v2739_v34, %v6149_v6  ;;  %v2742_v4 = vrot.slane %v6000_v48, 7 }
 0xe51   :  { %2779 = vrot.lane.b32.xlu2 %v4366_v62, %s5028_s28  ;;  %v2757_v46 = vmul.f32 %v2741_v52, %v6160_v32  ;;  %v2759_v18 = vmul.f32 %v2743_v21, %v6184_v11  ;;  %v2744_v63 = vrot.slane %v6039_v44, 7  ;;  %vm7051_vm4 = vcmask 1041409  }
 0xe52   :  { %v2689_v27 = vadd.f32 %v4710_v47, %v2688_v50  ;;  %v2758_v62 = vmul.f32 %v2742_v4, %v6198_v38  ;;  %vm7052_vm7 = vcmask 1042434   ;;  %vm7053_vm8 = vcmask 1043459  }
 0xe53   :  { %vm7054_vm11 = vcmask 1044484   ;;  %vm7055_vm9 = vcmask 1045509   ;;  %vm7056_vm3 = vcmask 1046534   ;;  %vm7057_vm10 = vcmask 1047559  }
 0xe54   :  { %v2693_v56 = vsel %vm2692_vm5, %v4710_v47, %v2689_v27  ;;  %v2740_v27 = vrot.slane %v6010_v43, 7  ;;  %vm7058_vm12 = vcmask 261120  }
 0xe55   :  { %v6213_v61 = vsel %vm2695_vm6, %v2697_v1, %v2693_v56 }
 0xe56   :  { %v2721_v8 = vmul.f32 2.0, %v6213_v61  ;;  %v2761_v16 = vmul.f32 %v2745_v57, %v6213_v61  ;;  %v2756_v56 = vmul.f32 %v2740_v27, %v6154_v54 }
 0xe58   :  { %2785 = vrot.lane.b32.xlu0 %v4369_v60, %s5028_s28  ;;  %v4368_v24 = vadd.f32 -1.0, %v2721_v8 }
 0xe5a   :  { %2783 = vrot.lane.b32.xlu1 %v4368_v24, %s5028_s28 }
 0xea3   :  { %v2776_v3 = vpop.permute.xlu2 %2775 }
 0xea4   :  { %v2797_v22 = vmul.f32 %v2776_v3, %v6160_v32 }
 0xea6   :  { %2815 = vrot.lane.b32.xlu0 %v2797_v22, %s5035_s2  ;;  %v2760_v22 = vmul.f32 %v2744_v63, %v6190_v59 }
 0xeab   :  { %v2780_v9 = vpop.permute.xlu2 %2779 }
 0xeac   :  { %v2799_v7 = vmul.f32 %v2780_v9, %v6184_v11 }
 0xeae   :  { %2819 = vrot.lane.b32.xlu0 %v2799_v7, %s5035_s2 }
 0xeb9   :  { %v2772_v5 = vpop.permute.xlu1 %2771 }
 0xeba   :  { %v2774_v55 = vpop.permute.xlu0 %2773  ;;  %v2795_v19 = vmul.f32 %v2772_v5, %v6149_v6  ;;  %v2746_v5 = vrot.slane %v6020_v40, 7 }
 0xebb   :  { %v2796_v36 = vmul.f32 %v2774_v55, %v6154_v54 }
 0xebc   :  { %2811 = vrot.lane.b32.xlu2 %v2795_v19, %s5035_s2  ;;  %v2762_v55 = vmul.f32 %v2746_v5, %v6202_v49 }
 0xebd   :  { %2813 = vrot.lane.b32.xlu1 %v2796_v36, %s5035_s2 }
 0xec1   :  { %v2778_v45 = vpop.permute.xlu1 %2777 }
 0xec2   :  { %v2782_v29 = vpop.permute.xlu0 %2781  ;;  %v2798_v51 = vmul.f32 %v2778_v45, %v6198_v38 }
 0xec3   :  { %v2800_v28 = vmul.f32 %v2782_v29, %v6190_v59 }
 0xec4   :  { %2817 = vrot.lane.b32.xlu2 %v2798_v51, %s5035_s2 }
 0xec5   :  { %2821 = vrot.lane.b32.xlu1 %v2800_v28, %s5035_s2 }
 0xeca   :  { %v2786_v41 = vpop.permute.xlu0 %2785 }
 0xecb   :  { %v2802_v23 = vmul.f32 %v2786_v41, %v6202_v49 }
 0xecc   :  { %v2784_v10 = vpop.permute.xlu1 %2783 }
 0xecd   :  { %2825 = vrot.lane.b32.xlu1 %v2802_v23, %s5035_s2  ;;  %v2801_v31 = vmul.f32 %v2784_v10, %v6213_v61 }
 0xecf   :  { %2823 = vrot.lane.b32.xlu2 %v2801_v31, %s5035_s2 }
 0xf16   :  { %v2812_v42 = vpop.permute.xlu2 %2811 }
 0xf17   :  { %v6237_v0 = vadd.f32 %v2812_v42, %v2755_v53 }
 0xf18   :  { %v2816_v14 = vpop.permute.xlu0 %2815 }
 0xf19   :  { %v6239_v47 = vadd.f32 %v2816_v14, %v2757_v46  ;;  %4711 = vtanh.f32 %v6237_v0 }
 0xf1b   :  { %4713 = vtanh.f32 %v6239_v47 }
 0xf1e   :  { %v2818_v37 = vpop.permute.xlu2 %2817 }
 0xf1f   :  { %v4712_v30 = vpop.eup %4711  ;;  %v6250_v33 = vadd.f32 %v2818_v37, %v2758_v62 }
 0xf20   :  { %v2820_v12 = vpop.permute.xlu0 %2819  ;;  %2859 = vrot.lane.b32.xlu0 %v4712_v30, %s5028_s28 }
 0xf21   :  { %v4714_v2 = vpop.eup %4713  ;;  %v6248_v35 = vadd.f32 %v2820_v12, %v2759_v18 }
 0xf22   :  { %2863 = vrot.lane.b32.xlu1 %v4714_v2, %s5028_s28 }
 0xf23   :  { %4715 = vtanh.f32 %v6248_v35 }
 0xf24   :  { %4717 = vtanh.f32 %v6250_v33 }
 0xf29   :  { %v4716_v48 = vpop.eup %4715  ;;  %v2824_v60 = vpop.permute.xlu2 %2823 }
 0xf2a   :  { %v4718_v50 = vpop.eup %4717  ;;  %2867 = vrot.lane.b32.xlu1 %v4716_v48, %s5028_s28  ;;  %v6260_v1 = vadd.f32 %v2824_v60, %v2761_v16 }
 0xf2b   :  { %2865 = vrot.lane.b32.xlu0 %v4718_v50, %s5028_s28 }
 0xf2c   :  { %4719 = vtanh.f32 %v6260_v1 }
 0xf2f   :  { %v2814_v8 = vpop.permute.xlu1 %2813 }
 0xf30   :  { %v6264_v24 = vadd.f32 %v2814_v8, %v2756_v56 }
 0xf32   :  { %4721 = vtanh.f32 %v6264_v24  ;;  %v4720_v3 = vpop.eup %4719 }
 0xf33   :  { %2871 = vrot.lane.b32.xlu0 %v4720_v3, %s5028_s28 }
 0xf37   :  { %v2822_v43 = vpop.permute.xlu1 %2821 }
 0xf38   :  { %v4722_v9 = vpop.eup %4721  ;;  %v6270_v7 = vadd.f32 %v2822_v43, %v2760_v22 }
 0xf39   :  { %2861 = vrot.lane.b32.xlu2 %v4722_v9, %s5028_s28 }
 0xf3a   :  { %4723 = vtanh.f32 %v6270_v7 }
 0xf3f   :  { %v2826_v19 = vpop.permute.xlu1 %2825 }
 0xf40   :  { %v4724_v36 = vpop.eup %4723  ;;  %v6276_v44 = vadd.f32 %v2826_v19, %v2762_v55 }
 0xf41   :  { %2869 = vrot.lane.b32.xlu2 %v4724_v36, %s5028_s28 }
 0xf42   :  { %4725 = vtanh.f32 %v6276_v44 }
 0xf48   :  { %v4726_v29 = vpop.eup %4725 }
 0xf49   :  { %2873 = vrot.lane.b32.xlu2 %v4726_v29, %s5028_s28 }
 0xf92   :  { %v2860_v28 = vpop.permute.xlu0 %2859 }
 0xf93   :  { %v2862_v45 = vpop.permute.xlu2 %2861  ;;  %v2883_v51 = vmul.f32 %v2860_v28, %v6149_v6 }
 0xf94   :  { %v2884_v41 = vmul.f32 %v2862_v45, %v6154_v54  ;;  %v2864_v40 = vpop.permute.xlu1 %2863 }
 0xf95   :  { %v2885_v23 = vmul.f32 %v2864_v40, %v6160_v32  ;;  %v2891_v10 = vpack.c.bf16 %v2883_v51, %v2883_v51 }
 0xf96   :  { %v2892_v31 = vpack.c.bf16 %v2884_v41, %v2884_v41 }
 0xf97   :  { %v2893_v52 = vpack.c.bf16 %v2885_v23, %v2885_v23  ;;  %v2907_v42 = vunpack.c.l.b16 %v2891_v10 }
 0xf98   :  { %v2908_v46 = vunpack.c.l.b16 %v2892_v31 }
 0xf99   :  { %v2909_v30 = vunpack.c.l.b16 %v2893_v52  ;;  %v2915_v18 = vrot.slane %v2907_v42, 4 }
 0xf9a   :  { %v2916_v62 = vrot.slane %v2908_v46, 3 }
 0xf9b   :  { %v2870_v34 = vpop.permute.xlu2 %2869  ;;  %v2918_v2 = vrot.slane %v2909_v30, 2 }
 0xf9c   :  { %v2868_v21 = vpop.permute.xlu1 %2867  ;;  %v2888_v54 = vmul.f32 %v2870_v34, %v6190_v59  ;;  %v2917_v48 = vsel %vm7051_vm4, %v2916_v62, %v2915_v18 }
 0xf9d   :  { %v2866_v53 = vpop.permute.xlu0 %2865  ;;  %v2887_v12 = vmul.f32 %v2868_v21, %v6184_v11  ;;  %v2919_v60 = vsel %vm7052_vm7, %v2918_v2, %v2917_v48 }
 0xf9e   :  { %v2886_v14 = vmul.f32 %v2866_v53, %v6198_v38  ;;  %v2896_v50 = vpack.c.bf16 %v2888_v54, %v2888_v54 }
 0xf9f   :  { %v2895_v38 = vpack.c.bf16 %v2887_v12, %v2887_v12 }
 0xfa0   :  { %v2894_v4 = vpack.c.bf16 %v2886_v14, %v2886_v14  ;;  %v2912_v59 = vunpack.c.l.b16 %v2896_v50 }
 0xfa1   :  { %v2911_v11 = vunpack.c.l.b16 %v2895_v38 }
 0xfa2   :  { %v2910_v6 = vunpack.c.l.b16 %v2894_v4  ;;  %v2923_v43 = vrot.slane %v2912_v59, 7 }
 0xfa3   :  { %v2874_v32 = vpop.permute.xlu2 %2873 }
 0xfa4   :  { %v2890_v37 = vmul.f32 %v2874_v32, %v6202_v49  ;;  %v2920_v57 = vrot.slane %v2910_v6, 1 }
 0xfa5   :  { %v2872_v27 = vpop.permute.xlu0 %2871 }
 0xfa6   :  { %v2898_v16 = vpack.c.bf16 %v2890_v37, %v2890_v37  ;;  %v2889_v56 = vmul.f32 %v2872_v27, %v6213_v61  ;;  %v2921_v8 = vsel %vm7053_vm8, %v2920_v57, %v2919_v60 }
 0xfa7   :  { %v2922_v49 = vsel %vm7054_vm11, %v2911_v11, %v2921_v8 }
 0xfa8   :  { %v2914_v63 = vunpack.c.l.b16 %v2898_v16  ;;  %v2897_v3 = vpack.c.bf16 %v2889_v56, %v2889_v56  ;;  %v2924_v55 = vsel %vm7055_vm9, %v2923_v43, %v2922_v49 }
 0xfaa   :  { %v2913_v22 = vunpack.c.l.b16 %v2897_v3  ;;  %v2927_v9 = vrot.slane %v2914_v63, 5 }
 0xfac   :  { %v2925_v5 = vrot.slane %v2913_v22, 6 }
 0xfae   :  { %v2926_v19 = vsel %vm7056_vm3, %v2925_v5, %v2924_v55 }
 0xfaf   :  { %v2928_v36 = vsel %vm7057_vm10, %v2927_v9, %v2926_v19 }
 0xfb0   :  { %v2929_v29 = vpack.c.b16 %v2928_v36, %v2928_v36 }
 0xfb2   :  { %2930 = vrot.lane.b32.xlu1 %v2929_v29, %s5035_s2 }
0x1024   :  { %v2931_v61 = vpop.permute.xlu1 %2930 }
0x1025   :  { %4370 = vmatmul.msk.bf16.vlgmr.msrb.gmra.mxu1 %vm7058_vm12, %v2931_v61 }
0x10a2   :  { %v2944_v28 = vpop.f32.mrf.mxu1 }
0x10a3   :  { %v2949_v45 = vrot.slane %v2944_v28, 3  ;;  %v2950_v51 = vrot.slane %v2944_v28, 4  ;;  %v2951_v41 = vrot.slane %v2944_v28, 5  ;;  %v2952_v40 = vrot.slane %v2944_v28, 6 }
0x10a4   :  { %v2953_v23 = vrot.slane %v2944_v28, 7  ;;  %v2954_v10 = vrot.slane %v2944_v28, 1  ;;  %v2969_v31 = vadd.f32 %v2944_v28, %v5266_v13  ;;  %v2955_v34 = vrot.slane %v2944_v28, 2 }
0x10a5   :  { %v2964_v52 = vadd.f32 %v2949_v45, %v5234_v15  ;;  %v2965_v53 = vadd.f32 %v2950_v51, %v5240_v26  ;;  %v2966_v42 = vadd.f32 %v2951_v41, %v5245_v17  ;;  %v2967_v21 = vadd.f32 %v2952_v40, %v5250_v39 }
0x10a6   :  { %v2968_v46 = vadd.f32 %v2953_v23, %v5257_v58  ;;  %v2970_v14 = vadd.f32 %v2954_v10, %v5289_v20  ;;  %v4376_v4 = vmul.f32 -1.442695, %v2969_v31  ;;  %v2971_v6 = vadd.f32 %v2955_v34, %v5294_v25 }
0x10a7   :  { %v4371_v30 = vmul.f32 -1.442695, %v2964_v52  ;;  %v4372_v18 = vmul.f32 -1.442695, %v2965_v53  ;;  %v4373_v62 = vmul.f32 -1.442695, %v2966_v42 }
0x10a8   :  { %4727 = vpow2.f32 %v4376_v4  ;;  %v4375_v54 = vmul.f32 -1.442695, %v2968_v46  ;;  %v4377_v12 = vmul.f32 -1.442695, %v2970_v14  ;;  %v4374_v37 = vmul.f32 -1.442695, %v2967_v21 }
0x10a9   :  { %4729 = vpow2.f32 %v4371_v30  ;;  %v4378_v2 = vmul.f32 -1.442695, %v2971_v6 }
0x10aa   :  { %4731 = vpow2.f32 %v4372_v18  ;;  %v2946_v32 = vpop.f32.mrf.mxu1 }
0x10ab   :  { %4733 = vpow2.f32 %v4373_v62 }
0x10ac   :  { %4735 = vpow2.f32 %v4375_v54 }
0x10ad   :  { %4737 = vpow2.f32 %v4377_v12 }
0x10ae   :  { %v4728_v48 = vpop.eup %4727  ;;  %4739 = vpow2.f32 %v4374_v37 }
0x10af   :  { %v4730_v57 = vpop.eup %4729  ;;  %4741 = vpow2.f32 %v4378_v2  ;;  %v6313_v8 = vadd.f32 1.0, %v4728_v48 }
0x10b0   :  { %v4732_v50 = vpop.eup %4731  ;;  %v6306_v16 = vadd.f32 1.0, %v4730_v57 }
0x10b1   :  { %v4734_v38 = vpop.eup %4733  ;;  %v6308_v27 = vadd.f32 1.0, %v4732_v50  ;;  %v3088_v36 = vand.u32 2147483647, %v6313_v8 }
0x10b2   :  { %v6310_v60 = vadd.f32 1.0, %v4734_v38  ;;  %4743 = vrcp.f32 %v6306_v16  ;;  %v4736_v56 = vpop.eup %4735  ;;  %v3013_v3 = vand.u32 2147483647, %v6306_v16  ;;  %v3015_v19 = vand.u32 2147483648, %v6306_v16 }
0x10b3   :  { %4745 = vrcp.f32 %v6308_v27  ;;  %v4738_v59 = vpop.eup %4737  ;;  %v3030_v11 = vand.u32 2147483648, %v6308_v27  ;;  %v3028_v22 = vand.u32 2147483647, %v6308_v27  ;;  %v6323_v9 = vadd.f32 1.0, %v4736_v56 }
0x10b4   :  { %4747 = vrcp.f32 %v6310_v60  ;;  %v4740_v63 = vpop.eup %4739  ;;  %v3045_v49 = vand.u32 2147483648, %v6310_v60  ;;  %v6321_v43 = vadd.f32 1.0, %v4738_v59  ;;  %v3043_v55 = vand.u32 2147483647, %v6310_v60 }
0x10b5   :  { %v4742_v5 = vpop.eup %4741  ;;  %4749 = vrcp.f32 %v6313_v8  ;;  %vm3024_vm0 = vweird.f32 %v6308_v27  ;;  %vm3009_vm13 = vweird.f32 %v6306_v16  ;;  %v6332_v61 = vadd.f32 1.0, %v4740_v63 }
0x10b6   :  { %4751 = vrcp.f32 %v6321_v43  ;;  %vm3039_vm1 = vweird.f32 %v6310_v60  ;;  %v3031_v45 = vor.u32 1.1754944e-38, %v3030_v11  ;;  %vm6336_vm14 = vcmp.eq.f32.partialorder %v3013_v3, 8.507059e+37 }
0x10b7   :  { %4753 = vrcp.f32 %v6323_v9  ;;  %v3046_v23 = vor.u32 1.1754944e-38, %v3045_v49  ;;  %vm6342_vm15 = vcmp.eq.f32.partialorder %v3028_v22, 8.507059e+37  ;;  %v3105_v34 = vand.u32 2147483648, %v6321_v43 }
0x10b8   :  { %v4744_v29 = vpop.eup %4743  ;;  %v6347_v52 = vadd.f32 1.0, %v4742_v5  ;;  %vm6350_vm2 = vcmp.eq.f32.partialorder %v3043_v55, 8.507059e+37  ;;  %v3016_v14 = vor.u32 1.1754944e-38, %v3015_v19  ;;  %v3103_v4 = vand.u32 2147483647, %v6321_v43 }
0x10b9   :  { %v4746_v28 = vpop.eup %4745  ;;  %v3005_v51 = vmul.f32 %v4744_v29, %v6306_v16  ;;  %v3073_v30 = vand.u32 2147483647, %v6323_v9  ;;  %v3075_v18 = vand.u32 2147483648, %v6323_v9  ;;  %4755 = vrcp.f32 %v6332_v61 }
0x10ba   :  { %v4748_v40 = vpop.eup %4747  ;;  %v3020_v10 = vmul.f32 %v4746_v28, %v6308_v27  ;;  %vm3010_vm5 = vweird.f32 %v4744_v29  ;;  %vm3099_vm6 = vweird.f32 %v6321_v43  ;;  %vm3025_vm4 = vweird.f32 %v4746_v28 }
0x10bb   :  { %v3035_v53 = vmul.f32 %v4748_v40, %v6310_v60  ;;  %v3006_v46 = vsub.f32 1.0, %v3005_v51  ;;  %v6358_v62 = vpop.eup %4749  ;;  %v3106_v37 = vor.u32 1.1754944e-38, %v3105_v34  ;;  %vm3069_vm7 = vweird.f32 %v6323_v9  ;;  %vm3011_vm9 = vmor %vm3009_vm13, %vm3010_vm5 }
0x10bc   :  { %v3021_v21 = vsub.f32 1.0, %v3020_v10  ;;  %v4752_v12 = vpop.eup %4751  ;;  %4757 = vrcp.f32 %v6347_v52  ;;  %vm3040_vm8 = vweird.f32 %v4748_v40  ;;  %vm6364_vm11 = vcmp.eq.f32.partialorder %v3103_v4, 8.507059e+37  ;;  %vm3026_vm10 = vmor %vm3024_vm0, %vm3025_vm4 }
0x10bd   :  { %v3036_v6 = vsub.f32 1.0, %v3035_v53  ;;  %v3007_v54 = vmul.f32 %v4744_v29, %v3006_v46  ;;  %v4754_v2 = vpop.eup %4753  ;;  %v3095_v50 = vmul.f32 %v4752_v12, %v6321_v43  ;;  %vm6372_vm3 = vcmp.eq.f32.partialorder %v3073_v30, 8.507059e+37  ;;  %vm3041_vm13 = vmor %vm3039_vm1, %vm3040_vm8 }
0x10be   :  { %v3022_v32 = vmul.f32 %v4746_v28, %v3021_v21  ;;  %v3065_v59 = vmul.f32 %v4754_v2, %v6323_v9  ;;  %v3076_v11 = vor.u32 1.1754944e-38, %v3075_v18  ;;  %v3058_v3 = vand.u32 2147483647, %v6332_v61 }
0x10bf   :  { %v3037_v48 = vmul.f32 %v4748_v40, %v3036_v6  ;;  %v3008_v57 = vadd.f32 %v4744_v29, %v3007_v54  ;;  %v3096_v5 = vsub.f32 1.0, %v3095_v50  ;;  %vm3100_vm12 = vweird.f32 %v4752_v12  ;;  %v4756_v55 = vpop.eup %4755 }
0x10c0   :  { %v3023_v56 = vadd.f32 %v4746_v28, %v3022_v32  ;;  %v3066_v51 = vsub.f32 1.0, %v3065_v59  ;;  %vm3070_vm5 = vweird.f32 %v4754_v2  ;;  %v3050_v46 = vmul.f32 %v4756_v55, %v6332_v61  ;;  %vm3101_vm0 = vmor %vm3099_vm6, %vm3100_vm12 }
0x10c1   :  { %v3038_v49 = vadd.f32 %v4748_v40, %v3037_v48  ;;  %v3012_v22 = vsel %vm3011_vm9, %v4744_v29, %v3008_v57  ;;  %v3097_v34 = vmul.f32 %v4752_v12, %v3096_v5  ;;  %vm3071_vm1 = vmor %vm3069_vm7, %vm3070_vm5  ;;  %v3118_v6 = vand.u32 2147483647, %v6347_v52 }
0x10c2   :  { %v3027_v16 = vsel %vm3026_vm10, %v4746_v28, %v3023_v56  ;;  %v6385_v19 = vsel %vm6336_vm14, %v3016_v14, %v3012_v22  ;;  %v4758_v53 = vpop.eup %4757  ;;  %v3067_v41 = vmul.f32 %v4754_v2, %v3066_v51  ;;  %v3051_v42 = vsub.f32 1.0, %v3050_v46 }
0x10c3   :  { %v3042_v10 = vsel %vm3041_vm13, %v4748_v40, %v3038_v49  ;;  %v6389_v27 = vsel %vm6342_vm15, %v3031_v45, %v3027_v16  ;;  %v3124_v29 = vmul.f32 2.0, %v6385_v19  ;;  %v3098_v4 = vadd.f32 %v4752_v12, %v3097_v34 }
0x10c4   :  { %v6394_v60 = vsel %vm6350_vm2, %v3046_v23, %v3042_v10  ;;  %v3125_v28 = vmul.f32 2.0, %v6389_v27  ;;  %v3060_v45 = vand.u32 2147483648, %v6332_v61  ;;  %v3068_v21 = vadd.f32 %v4754_v2, %v3067_v41 }
0x10c5   :  { %v3126_v14 = vmul.f32 2.0, %v6394_v60  ;;  %v4379_v40 = vadd.f32 -1.0, %v3124_v29  ;;  %v3110_v23 = vmul.f32 %v4758_v53, %v6347_v52  ;;  %v3102_v18 = vsel %vm3101_vm0, %v4752_v12, %v3098_v4 }
0x10c6   :  { %v4380_v31 = vadd.f32 -1.0, %v3125_v28  ;;  %vm3055_vm14 = vweird.f32 %v4756_v55  ;;  %v6412_v43 = vsel %vm6364_vm11, %v3106_v37, %v3102_v18  ;;  %v3072_v54 = vsel %vm3071_vm1, %v4754_v2, %v3068_v21 }
0x10c7   :  { %v4381_v30 = vadd.f32 -1.0, %v3126_v14  ;;  %3180 = vrot.lane.b32.xlu0 %v4379_v40, %s5028_s28  ;;  %v3052_v32 = vmul.f32 %v4756_v55, %v3051_v42  ;;  %v3111_v48 = vsub.f32 1.0, %v3110_v23  ;;  %v6417_v12 = vsel %vm6372_vm3, %v3076_v11, %v3072_v54 }
0x10c8   :  { %3182 = vrot.lane.b32.xlu2 %v4380_v31, %s5028_s28  ;;  %vm3054_vm15 = vweird.f32 %v6332_v61  ;;  %vm3115_vm2 = vweird.f32 %v4758_v53  ;;  %v3120_v9 = vand.u32 2147483648, %v6347_v52  ;;  %v3128_v57 = vmul.f32 2.0, %v6417_v12 }
0x10c9   :  { %3184 = vrot.lane.b32.xlu1 %v4381_v30, %s5028_s28  ;;  %v3053_v50 = vadd.f32 %v4756_v55, %v3052_v32  ;;  %v3112_v38 = vmul.f32 %v4758_v53, %v3111_v48  ;;  %v3080_v37 = vmul.f32 %v6358_v62, %v6313_v8  ;;  %v3130_v2 = vmul.f32 2.0, %v6412_v43  ;;  %vm3056_vm6 = vmor %vm3054_vm15, %vm3055_vm14 }
0x10ca   :  { %vm3059_vm4 = vcmp.eq.f32.partialorder %v3058_v3, 8.507059e+37  ;;  %v3061_v56 = vor.u32 1.1754944e-38, %v3060_v45  ;;  %vm3114_vm7 = vweird.f32 %v6347_v52  ;;  %vm3119_vm8 = vcmp.eq.f32.partialorder %v3118_v6, 8.507059e+37 }
0x10cb   :  { %v3057_v59 = vsel %vm3056_vm6, %v4756_v55, %v3053_v50  ;;  %v3113_v61 = vadd.f32 %v4758_v53, %v3112_v38  ;;  %v3081_v63 = vsub.f32 1.0, %v3080_v37  ;;  %vm3116_vm11 = vmor %vm3114_vm7, %vm3115_vm2  ;;  %v3121_v49 = vor.u32 1.1754944e-38, %v3120_v9 }
0x10cc   :  { %v6427_v11 = vsel %vm3059_vm4, %v3061_v56, %v3057_v59  ;;  %vm3085_vm9 = vweird.f32 %v6358_v62  ;;  %v3090_v22 = vand.u32 2147483648, %v6313_v8  ;;  %v4383_v5 = vadd.f32 -1.0, %v3128_v57 }
0x10cd   :  { %v3127_v16 = vmul.f32 2.0, %v6427_v11  ;;  %v3117_v3 = vsel %vm3116_vm11, %v4758_v53, %v3113_v61  ;;  %v3082_v51 = vmul.f32 %v6358_v62, %v3081_v63  ;;  %v4385_v52 = vadd.f32 -1.0, %v3130_v2 }
0x10ce   :  { %v6434_v55 = vsel %vm3119_vm8, %v3121_v49, %v3117_v3  ;;  %vm3084_vm3 = vweird.f32 %v6313_v8  ;;  %v3091_v34 = vor.u32 1.1754944e-38, %v3090_v22  ;;  %vm3089_vm12 = vcmp.eq.f32.partialorder %v3088_v36, 8.507059e+37 }
0x10cf   :  { %v4382_v10 = vadd.f32 -1.0, %v3127_v16  ;;  %v3083_v29 = vadd.f32 %v6358_v62, %v3082_v51  ;;  %vm3086_vm10 = vmor %vm3084_vm3, %vm3085_vm9  ;;  %v3131_v53 = vmul.f32 2.0, %v6434_v55  ;;  %v3149_v57 = vrot.slane %v6264_v24, 7 }
0x10d0   :  { %3188 = vrot.lane.b32.xlu2 %v4383_v5, %s5028_s28  ;;  %v3150_v50 = vrot.slane %v6239_v47, 7  ;;  %v3152_v63 = vrot.slane %v6248_v35, 7  ;;  %v3154_v24 = vrot.slane %v6260_v1, 7  ;;  %v3155_v35 = vrot.slane %v6276_v44, 7 }
0x10d1   :  { %3192 = vrot.lane.b32.xlu1 %v4385_v52, %s5028_s28  ;;  %3186 = vrot.lane.b32.xlu0 %v4382_v10, %s5028_s28  ;;  %v3087_v28 = vsel %vm3086_vm10, %v6358_v62, %v3083_v29  ;;  %v4386_v14 = vadd.f32 -1.0, %v3131_v53  ;;  %v3165_v38 = vmul.f32 %v3149_v57, %v6389_v27  ;;  %vm7069_vm13 = vcmask 1041409  }
0x10d2   :  { %v6445_v41 = vsel %vm3089_vm12, %v3091_v34, %v3087_v28  ;;  %v3166_v37 = vmul.f32 %v3150_v50, %v6394_v60  ;;  %v3168_v47 = vmul.f32 %v3152_v63, %v6417_v12  ;;  %v3170_v49 = vmul.f32 %v3154_v24, %v6412_v43 }
0x10d3   :  { %v3129_v46 = vmul.f32 2.0, %v6445_v41  ;;  %v3171_v1 = vmul.f32 %v3155_v35, %v6434_v55  ;;  %v3148_v28 = vrot.slane %v6237_v0, 7  ;;  %v3153_v0 = vrot.slane %v6270_v7, 7 }
0x10d4   :  { %vm7070_vm5 = vcmask 1042434   ;;  %vm7071_vm0 = vcmask 1043459   ;;  %vm7072_vm1 = vcmask 1044484   ;;  %vm7073_vm14 = vcmask 1045509  }
0x10d5   :  { %v4384_v40 = vadd.f32 -1.0, %v3129_v46  ;;  %v3164_v46 = vmul.f32 %v3148_v28, %v6385_v19  ;;  %vm7074_vm15 = vcmask 1046534   ;;  %vm7075_vm2 = vcmask 1047559  }
0x10d6   :  { %vm7076_vm6 = vcmask 261120  }
0x10d8   :  { %3194 = vrot.lane.b32.xlu2 %v4386_v14, %s5028_s28 }
0x10d9   :  { %3190 = vrot.lane.b32.xlu0 %v4384_v40, %s5028_s28 }
0x1122   :  { %v3183_v4 = vpop.permute.xlu2 %3182 }
0x1123   :  { %v3205_v45 = vmul.f32 %v3183_v4, %v6389_v27  ;;  %v3151_v4 = vrot.slane %v6250_v33, 7 }
0x1125   :  { %3222 = vrot.lane.b32.xlu0 %v3205_v45, %s5035_s2 }
0x112a   :  { %v3189_v31 = vpop.permute.xlu2 %3188 }
0x112b   :  { %v3208_v62 = vmul.f32 %v3189_v31, %v6417_v12  ;;  %v3167_v31 = vmul.f32 %v3151_v4, %v6427_v11 }
0x112d   :  { %3228 = vrot.lane.b32.xlu0 %v3208_v62, %s5035_s2 }
0x1132   :  { %v3195_v8 = vpop.permute.xlu2 %3194 }
0x1133   :  { %v3211_v36 = vmul.f32 %v3195_v8, %v6434_v55 }
0x1135   :  { %3234 = vrot.lane.b32.xlu0 %v3211_v36, %s5035_s2  ;;  %v3169_v36 = vmul.f32 %v3153_v0, %v6445_v41 }
0x1139   :  { %v3181_v21 = vpop.permute.xlu0 %3180 }
0x113a   :  { %v3204_v42 = vmul.f32 %v3181_v21, %v6385_v19 }
0x113b   :  { %v3185_v23 = vpop.permute.xlu1 %3184 }
0x113c   :  { %v3206_v30 = vmul.f32 %v3185_v23, %v6394_v60  ;;  %3220 = vrot.lane.b32.xlu1 %v3204_v42, %s5035_s2 }
0x113e   :  { %3224 = vrot.lane.b32.xlu2 %v3206_v30, %s5035_s2 }
0x1143   :  { %v3193_v18 = vpop.permute.xlu1 %3192  ;;  %v3187_v54 = vpop.permute.xlu0 %3186 }
0x1144   :  { %v3210_v6 = vmul.f32 %v3193_v18, %v6412_v43  ;;  %v3207_v32 = vmul.f32 %v3187_v54, %v6427_v11 }
0x1146   :  { %3232 = vrot.lane.b32.xlu2 %v3210_v6, %s5035_s2  ;;  %3226 = vrot.lane.b32.xlu1 %v3207_v32, %s5035_s2 }
0x114b   :  { %v3191_v48 = vpop.permute.xlu0 %3190 }
0x114c   :  { %v3209_v9 = vmul.f32 %v3191_v48, %v6445_v41 }
0x114e   :  { %3230 = vrot.lane.b32.xlu1 %v3209_v9, %s5035_s2 }
0x1197   :  { %v3223_v2 = vpop.permute.xlu0 %3222 }
0x1198   :  { %v3225_v56 = vpop.permute.xlu2 %3224  ;;  %v6470_v59 = vadd.f32 %v3223_v2, %v3165_v38 }
0x1199   :  { %v6472_v61 = vadd.f32 %v3225_v56, %v3166_v37 }
0x119a   :  { %4759 = vtanh.f32 %v6470_v59 }
0x119b   :  { %4761 = vtanh.f32 %v6472_v61 }
0x119f   :  { %v3229_v22 = vpop.permute.xlu0 %3228 }
0x11a0   :  { %v4760_v5 = vpop.eup %4759  ;;  %v3233_v16 = vpop.permute.xlu2 %3232  ;;  %v6480_v3 = vadd.f32 %v3229_v22, %v3168_v47 }
0x11a1   :  { %v4762_v51 = vpop.eup %4761  ;;  %v6482_v52 = vadd.f32 %v3233_v16, %v3170_v49  ;;  %3270 = vrot.lane.b32.xlu1 %v4760_v5, %s5028_s28 }
0x11a2   :  { %4763 = vtanh.f32 %v6480_v3  ;;  %3272 = vrot.lane.b32.xlu0 %v4762_v51, %s5028_s28 }
0x11a3   :  { %4765 = vtanh.f32 %v6482_v52 }
0x11a7   :  { %v3235_v10 = vpop.permute.xlu0 %3234 }
0x11a8   :  { %v4764_v29 = vpop.eup %4763  ;;  %v6490_v34 = vadd.f32 %v3235_v10, %v3171_v1 }
0x11a9   :  { %v4766_v53 = vpop.eup %4765  ;;  %3276 = vrot.lane.b32.xlu1 %v4764_v29, %s5028_s28 }
0x11aa   :  { %4767 = vtanh.f32 %v6490_v34  ;;  %3280 = vrot.lane.b32.xlu0 %v4766_v53, %s5028_s28 }
0x11ae   :  { %v3221_v14 = vpop.permute.xlu1 %3220 }
0x11af   :  { %v6497_v40 = vadd.f32 %v3221_v14, %v3164_v46 }
0x11b0   :  { %v4768_v44 = vpop.eup %4767 }
0x11b1   :  { %4769 = vtanh.f32 %v6497_v40  ;;  %3282 = vrot.lane.b32.xlu1 %v4768_v44, %s5028_s28 }
0x11b7   :  { %v4770_v45 = vpop.eup %4769 }
0x11b8   :  { %3268 = vrot.lane.b32.xlu2 %v4770_v45, %s5028_s28  ;;  %v3227_v62 = vpop.permute.xlu1 %3226 }
0x11b9   :  { %v6504_v8 = vadd.f32 %v3227_v62, %v3167_v31 }
0x11bb   :  { %4771 = vtanh.f32 %v6504_v8 }
0x11c0   :  { %v3231_v21 = vpop.permute.xlu1 %3230 }
0x11c1   :  { %v4772_v42 = vpop.eup %4771  ;;  %v6509_v23 = vadd.f32 %v3231_v21, %v3169_v36 }
0x11c2   :  { %3274 = vrot.lane.b32.xlu2 %v4772_v42, %s5028_s28 }
0x11c3   :  { %4773 = vtanh.f32 %v6509_v23 }
0x11c9   :  { %v4774_v33 = vpop.eup %4773 }
0x11ca   :  { %3278 = vrot.lane.b32.xlu2 %v4774_v33, %s5028_s28 }
0x1212   :  { %v3269_v30 = vpop.permute.xlu2 %3268 }
0x1213   :  { %v3271_v18 = vpop.permute.xlu1 %3270  ;;  %v3292_v6 = vmul.f32 %v3269_v30, %v6385_v19 }
0x1214   :  { %v3293_v54 = vmul.f32 %v3271_v18, %v6389_v27  ;;  %v3273_v7 = vpop.permute.xlu0 %3272 }
0x1215   :  { %v3294_v32 = vmul.f32 %v3273_v7, %v6394_v60  ;;  %v3300_v48 = vpack.c.bf16 %v3292_v6, %v3292_v6 }
0x1216   :  { %v3301_v9 = vpack.c.bf16 %v3293_v54, %v3293_v54 }
0x1217   :  { %v3302_v57 = vpack.c.bf16 %v3294_v32, %v3294_v32  ;;  %v3316_v38 = vunpack.c.l.b16 %v3300_v48 }
0x1218   :  { %v3317_v37 = vunpack.c.l.b16 %v3301_v9 }
0x1219   :  { %v3318_v47 = vunpack.c.l.b16 %v3302_v57  ;;  %v3324_v27 = vrot.slane %v3316_v38, 5 }
0x121a   :  { %v3325_v22 = vrot.slane %v3317_v37, 4 }
0x121b   :  { %v3277_v50 = vpop.permute.xlu1 %3276  ;;  %v3327_v16 = vrot.slane %v3318_v47, 3 }
0x121c   :  { %v3296_v2 = vmul.f32 %v3277_v50, %v6417_v12  ;;  %v3281_v56 = vpop.permute.xlu0 %3280  ;;  %v3275_v63 = vpop.permute.xlu2 %3274  ;;  %v3326_v10 = vsel %vm7069_vm13, %v3325_v22, %v3324_v27 }
0x121d   :  { %v3295_v24 = vmul.f32 %v3275_v63, %v6427_v11  ;;  %v3298_v19 = vmul.f32 %v3281_v56, %v6412_v43  ;;  %v3328_v46 = vsel %vm7070_vm5, %v3327_v16, %v3326_v10 }
0x121e   :  { %v3304_v49 = vpack.c.bf16 %v3296_v2, %v3296_v2 }
0x121f   :  { %v3303_v5 = vpack.c.bf16 %v3295_v24, %v3295_v24  ;;  %v3306_v35 = vpack.c.bf16 %v3298_v19, %v3298_v19 }
0x1220   :  { %v3320_v51 = vunpack.c.l.b16 %v3304_v49 }
0x1221   :  { %v3319_v60 = vunpack.c.l.b16 %v3303_v5  ;;  %v3322_v14 = vunpack.c.l.b16 %v3306_v35 }
0x1222   :  { %v3331_v43 = vrot.slane %v3320_v51, 1 }
0x1223   :  { %v3283_v1 = vpop.permute.xlu1 %3282  ;;  %v3329_v29 = vrot.slane %v3319_v60, 2  ;;  %v3334_v36 = vrot.slane %v3322_v14, 7 }
0x1224   :  { %v3299_v12 = vmul.f32 %v3283_v1, %v6434_v55  ;;  %v3279_v53 = vpop.permute.xlu2 %3278 }
0x1225   :  { %v3297_v11 = vmul.f32 %v3279_v53, %v6445_v41  ;;  %v3330_v44 = vsel %vm7071_vm0, %v3329_v29, %v3328_v46 }
0x1226   :  { %v3307_v28 = vpack.c.bf16 %v3299_v12, %v3299_v12  ;;  %v3332_v0 = vsel %vm7072_vm1, %v3331_v43, %v3330_v44 }
0x1227   :  { %v3305_v4 = vpack.c.bf16 %v3297_v11, %v3297_v11 }
0x1228   :  { %v3323_v45 = vunpack.c.l.b16 %v3307_v28 }
0x1229   :  { %v3321_v31 = vunpack.c.l.b16 %v3305_v4 }
0x122a   :  { %v3336_v62 = vrot.slane %v3323_v45, 6 }
0x122b   :  { %v3333_v21 = vsel %vm7073_vm14, %v3321_v31, %v3332_v0 }
0x122c   :  { %v3335_v55 = vsel %vm7074_vm15, %v3334_v36, %v3333_v21 }
0x122d   :  { %v3337_v41 = vsel %vm7075_vm2, %v3336_v62, %v3335_v55 }
0x122e   :  { %v3338_v42 = vpack.c.b16 %v3337_v41, %v3337_v41 }
0x1230   :  { %3339 = vrot.lane.b32.xlu0 %v3338_v42, %s5035_s2 }
0x12a2   :  { %v3340_v33 = vpop.permute.xlu0 %3339 }
0x12a3   :  { %4387 = vmatmul.msk.bf16.vlgmr.msra.gmra.mxu2 %vm7076_vm6, %v3340_v33 }
0x1326   :  { %v3353_v30 = vpop.f32.mrf.mxu2 }
0x1327   :  { %v3358_v18 = vrot.slane %v3353_v30, 2  ;;  %v3359_v6 = vrot.slane %v3353_v30, 3  ;;  %v3360_v54 = vrot.slane %v3353_v30, 4  ;;  %v3361_v7 = vrot.slane %v3353_v30, 5 }
0x1328   :  { %v3362_v32 = vrot.slane %v3353_v30, 6  ;;  %v3363_v48 = vrot.slane %v3353_v30, 7  ;;  %v3379_v9 = vadd.f32 %v3353_v30, %v5289_v20  ;;  %v3364_v5 = vrot.slane %v3353_v30, 1 }
0x1329   :  { %v3373_v57 = vadd.f32 %v3358_v18, %v5234_v15  ;;  %v3374_v50 = vadd.f32 %v3359_v6, %v5240_v26  ;;  %v3375_v38 = vadd.f32 %v3360_v54, %v5245_v17  ;;  %v3376_v63 = vadd.f32 %v3361_v7, %v5250_v39 }
0x132a   :  { %v3377_v37 = vadd.f32 %v3362_v32, %v5257_v58  ;;  %v3378_v2 = vadd.f32 %v3363_v48, %v5266_v13  ;;  %v4394_v56 = vmul.f32 -1.442695, %v3379_v9  ;;  %v3380_v35 = vadd.f32 %v3364_v5, %v5294_v25 }
0x132b   :  { %v4388_v24 = vmul.f32 -1.442695, %v3373_v57  ;;  %v4389_v47 = vmul.f32 -1.442695, %v3374_v50  ;;  %v4390_v49 = vmul.f32 -1.442695, %v3375_v38 }
0x132c   :  { %4775 = vpow2.f32 %v4394_v56  ;;  %v4392_v19 = vmul.f32 -1.442695, %v3377_v37  ;;  %v4393_v27 = vmul.f32 -1.442695, %v3378_v2  ;;  %v4391_v60 = vmul.f32 -1.442695, %v3376_v63 }
0x132d   :  { %4777 = vpow2.f32 %v4388_v24  ;;  %v4395_v46 = vmul.f32 -1.442695, %v3380_v35 }
0x132e   :  { %4779 = vpow2.f32 %v4389_v47  ;;  %v3355_v22 = vpop.f32.mrf.mxu2 }
0x132f   :  { %4781 = vpow2.f32 %v4390_v49 }
0x1330   :  { %4783 = vpow2.f32 %v4392_v19 }
0x1331   :  { %4785 = vpow2.f32 %v4393_v27 }
0x1332   :  { %v4776_v16 = vpop.eup %4775  ;;  %4787 = vpow2.f32 %v4391_v60 }
0x1333   :  { %v4778_v51 = vpop.eup %4777  ;;  %v6541_v12 = vadd.f32 1.0, %v4776_v16 }
0x1334   :  { %v4780_v1 = vpop.eup %4779  ;;  %v6539_v10 = vadd.f32 1.0, %v4778_v51 }
0x1335   :  { %v4782_v29 = vpop.eup %4781  ;;  %v6543_v53 = vadd.f32 1.0, %v4780_v1 }
0x1336   :  { %v6545_v11 = vadd.f32 1.0, %v4782_v29  ;;  %4789 = vrcp.f32 %v6539_v10  ;;  %v4784_v28 = vpop.eup %4783  ;;  %v3422_v4 = vand.u32 2147483647, %v6539_v10  ;;  %v3424_v21 = vand.u32 2147483648, %v6539_v10 }
0x1337   :  { %4791 = vrcp.f32 %v6543_v53  ;;  %v4786_v43 = vpop.eup %4785  ;;  %v3439_v44 = vand.u32 2147483648, %v6543_v53  ;;  %v3437_v31 = vand.u32 2147483647, %v6543_v53  ;;  %v6557_v0 = vadd.f32 1.0, %v4784_v28 }
0x1338   :  { %4793 = vrcp.f32 %v6545_v11  ;;  %v4788_v14 = vpop.eup %4787  ;;  %v3454_v45 = vand.u32 2147483648, %v6545_v11  ;;  %v6555_v62 = vadd.f32 1.0, %v4786_v43  ;;  %v3452_v36 = vand.u32 2147483647, %v6545_v11 }
0x1339   :  { %4795 = vrcp.f32 %v6541_v12  ;;  %vm3433_vm4 = vweird.f32 %v6543_v53  ;;  %vm3418_vm7 = vweird.f32 %v6539_v10  ;;  %v6564_v41 = vadd.f32 1.0, %v4788_v14 }
0x133a   :  { %4797 = vpow2.f32 %v4395_v46  ;;  %vm3448_vm8 = vweird.f32 %v6545_v11  ;;  %v3440_v33 = vor.u32 1.1754944e-38, %v3439_v44  ;;  %v3455_v6 = vor.u32 1.1754944e-38, %v3454_v45 }
0x133b   :  { %4799 = vrcp.f32 %v6555_v62  ;;  %vm6570_vm11 = vcmp.eq.f32.partialorder %v3437_v31, 8.507059e+37  ;;  %vm6574_vm9 = vcmp.eq.f32.partialorder %v3422_v4, 8.507059e+37  ;;  %v3499_v48 = vand.u32 2147483648, %v6555_v62 }
0x133c   :  { %v4790_v55 = vpop.eup %4789  ;;  %4801 = vrcp.f32 %v6557_v0  ;;  %vm6582_vm3 = vcmp.eq.f32.partialorder %v3452_v36, 8.507059e+37  ;;  %v3425_v37 = vor.u32 1.1754944e-38, %v3424_v21  ;;  %v3497_v2 = vand.u32 2147483647, %v6555_v62 }
0x133d   :  { %v4792_v42 = vpop.eup %4791  ;;  %v3414_v30 = vmul.f32 %v4790_v55, %v6539_v10  ;;  %v3482_v63 = vand.u32 2147483647, %v6557_v0  ;;  %v3484_v24 = vand.u32 2147483648, %v6557_v0  ;;  %4803 = vrcp.f32 %v6564_v41 }
0x133e   :  { %v4794_v18 = vpop.eup %4793  ;;  %v3429_v54 = vmul.f32 %v4792_v42, %v6543_v53  ;;  %vm3434_vm10 = vweird.f32 %v4792_v42  ;;  %vm3419_vm12 = vweird.f32 %v4790_v55  ;;  %vm3493_vm13 = vweird.f32 %v6555_v62 }
0x133f   :  { %v6579_v9 = vpop.eup %4795  ;;  %v3444_v57 = vmul.f32 %v4794_v18, %v6545_v11  ;;  %v3415_v38 = vsub.f32 1.0, %v3414_v30  ;;  %vm3449_vm5 = vweird.f32 %v4794_v18  ;;  %v3500_v5 = vor.u32 1.1754944e-38, %v3499_v48  ;;  %vm3420_vm14 = vmor %vm3418_vm7, %vm3419_vm12 }
0x1340   :  { %v3430_v56 = vsub.f32 1.0, %v3429_v54  ;;  %v6590_v47 = vpop.eup %4797  ;;  %v3504_v60 = vmul.f32 %v6579_v9, %v6541_v12  ;;  %vm6597_vm1 = vcmp.eq.f32.partialorder %v3497_v2, 8.507059e+37  ;;  %v3467_v28 = vand.u32 2147483647, %v6564_v41  ;;  %vm3435_vm6 = vmor %vm3433_vm4, %vm3434_vm10 }
0x1341   :  { %v3445_v49 = vsub.f32 1.0, %v3444_v57  ;;  %v3416_v19 = vmul.f32 %v4790_v55, %v3415_v38  ;;  %v4800_v27 = vpop.eup %4799  ;;  %vm6606_vm2 = vcmp.eq.f32.partialorder %v3482_v63, 8.507059e+37  ;;  %v3485_v44 = vor.u32 1.1754944e-38, %v3484_v24  ;;  %vm3450_vm7 = vmor %vm3448_vm8, %vm3449_vm5 }
0x1342   :  { %v3431_v22 = vmul.f32 %v4792_v42, %v3430_v56  ;;  %v4802_v16 = vpop.eup %4801  ;;  %v3489_v1 = vmul.f32 %v4800_v27, %v6555_v62  ;;  %vm3494_vm15 = vweird.f32 %v4800_v27  ;;  %v3505_v54 = vsub.f32 1.0, %v3504_v60 }
0x1343   :  { %v3446_v51 = vmul.f32 %v4794_v18, %v3445_v49  ;;  %v3417_v35 = vadd.f32 %v4790_v55, %v3416_v19  ;;  %v3474_v43 = vmul.f32 %v4802_v16, %v6557_v0  ;;  %vm3479_vm0 = vweird.f32 %v4802_v16  ;;  %v4804_v36 = vpop.eup %4803  ;;  %vm3495_vm4 = vmor %vm3493_vm13, %vm3494_vm15 }
0x1344   :  { %v3432_v46 = vadd.f32 %v4792_v42, %v3431_v22  ;;  %v3490_v31 = vsub.f32 1.0, %v3489_v1  ;;  %v3459_v32 = vmul.f32 %v4804_v36, %v6564_v41  ;;  %v3469_v7 = vand.u32 2147483648, %v6564_v41 }
0x1345   :  { %v3447_v4 = vadd.f32 %v4794_v18, %v3446_v51  ;;  %v3421_v45 = vsel %vm3420_vm14, %v4790_v55, %v3417_v35  ;;  %v3475_v30 = vsub.f32 1.0, %v3474_v43  ;;  %vm7087_vm8 = vweird.f32 %v6557_v0 }
0x1346   :  { %v3436_v10 = vsel %vm3435_vm6, %v4792_v42, %v3432_v46  ;;  %v6618_v21 = vsel %vm6574_vm9, %v3425_v37, %v3421_v45  ;;  %v3491_v57 = vmul.f32 %v4800_v27, %v3490_v31  ;;  %v3460_v50 = vsub.f32 1.0, %v3459_v32 }
0x1347   :  { %v3451_v48 = vsel %vm3450_vm7, %v4794_v18, %v3447_v4  ;;  %v6622_v53 = vsel %vm6570_vm11, %v3440_v33, %v3436_v10  ;;  %v3533_v55 = vmul.f32 2.0, %v6618_v21  ;;  %v3476_v42 = vmul.f32 %v4802_v16, %v3475_v30  ;;  %vm3480_vm11 = vmor %vm7087_vm8, %vm3479_vm0 }
0x1348   :  { %v6627_v38 = vsel %vm6582_vm3, %v3455_v6, %v3451_v48  ;;  %v3534_v11 = vmul.f32 2.0, %v6622_v53  ;;  %v3492_v18 = vadd.f32 %v4800_v27, %v3491_v57  ;;  %v3506_v6 = vmul.f32 %v6579_v9, %v3505_v54 }
0x1349   :  { %v3535_v37 = vmul.f32 2.0, %v6627_v38  ;;  %v4396_v2 = vadd.f32 -1.0, %v3533_v55  ;;  %v3477_v56 = vadd.f32 %v4802_v16, %v3476_v42  ;;  %vm3464_vm9 = vweird.f32 %v4804_v36 }
0x134a   :  { %v4397_v33 = vadd.f32 -1.0, %v3534_v11  ;;  %v3496_v24 = vsel %vm3495_vm4, %v4800_v27, %v3492_v18  ;;  %vm3509_vm3 = vweird.f32 %v6579_v9  ;;  %v3461_v19 = vmul.f32 %v4804_v36, %v3460_v50 }
0x134b   :  { %v4398_v63 = vadd.f32 -1.0, %v3535_v37  ;;  %3589 = vrot.lane.b32.xlu2 %v4396_v2, %s5028_s28  ;;  %v6645_v62 = vsel %vm6597_vm1, %v3500_v5, %v3496_v24  ;;  %v3481_v49 = vsel %vm3480_vm11, %v4802_v16, %v3477_v56  ;;  %v3507_v22 = vadd.f32 %v6579_v9, %v3506_v6 }
0x134c   :  { %3591 = vrot.lane.b32.xlu1 %v4397_v33, %s5028_s28  ;;  %v6651_v27 = vsel %vm6606_vm2, %v3485_v44, %v3481_v49  ;;  %vm3463_vm10 = vweird.f32 %v6564_v41  ;;  %v3514_v0 = vand.u32 2147483648, %v6541_v12  ;;  %v3412_v60 = vadd.f32 1.0, %v6590_v47 }
0x134d   :  { %3593 = vrot.lane.b32.xlu0 %v4398_v63, %s5028_s28  ;;  %v3537_v51 = vmul.f32 2.0, %v6651_v27  ;;  %v3462_v5 = vadd.f32 %v4804_v36, %v3461_v19  ;;  %vm3465_vm12 = vmor %vm3463_vm10, %vm3464_vm9  ;;  %vm3508_vm13 = vweird.f32 %v6541_v12  ;;  %v3512_v16 = vand.u32 2147483647, %v6541_v12 }
0x134e   :  { %v3538_v35 = vmul.f32 2.0, %v6645_v62  ;;  %v3470_v1 = vor.u32 1.1754944e-38, %v3469_v7  ;;  %vm3510_vm5 = vmor %vm3508_vm13, %vm3509_vm3  ;;  %4805 = vrcp.f32 %v3412_v60  ;;  %vm3468_vm0 = vcmp.eq.f32.partialorder %v3467_v28, 8.507059e+37 }
0x134f   :  { %v3466_v41 = vsel %vm3465_vm12, %v4804_v36, %v3462_v5  ;;  %v3511_v29 = vsel %vm3510_vm5, %v6579_v9, %v3507_v22  ;;  %v3515_v46 = vor.u32 1.1754944e-38, %v3514_v0  ;;  %v4400_v43 = vadd.f32 -1.0, %v3537_v51 }
0x1350   :  { %v6663_v47 = vsel %vm3468_vm0, %v3470_v1, %v3466_v41  ;;  %vm3513_vm1 = vcmp.eq.f32.partialorder %v3512_v16, 8.507059e+37  ;;  %v4401_v44 = vadd.f32 -1.0, %v3538_v35  ;;  %v3529_v36 = vand.u32 2147483648, %v3412_v60 }
0x1351   :  { %v3536_v14 = vmul.f32 2.0, %v6663_v47  ;;  %v6666_v12 = vsel %vm3513_vm1, %v3515_v46, %v3511_v29  ;;  %v3527_v54 = vand.u32 2147483647, %v3412_v60  ;;  %vm3523_vm15 = vweird.f32 %v3412_v60 }
0x1352   :  { %v3539_v9 = vmul.f32 2.0, %v6666_v12  ;;  %v3530_v55 = vor.u32 1.1754944e-38, %v3529_v36  ;;  %v3557_v5 = vrot.slane %v6497_v40, 7  ;;  %v3558_v16 = vrot.slane %v6470_v59, 7 }
0x1353   :  { %v4399_v4 = vadd.f32 -1.0, %v3536_v14  ;;  %vm3528_vm6 = vcmp.eq.f32.partialorder %v3527_v54, 8.507059e+37  ;;  %v3561_v14 = vrot.slane %v6480_v3, 7  ;;  %v3560_v40 = vrot.slane %v6504_v8, 7 }
0x1354   :  { %3597 = vrot.lane.b32.xlu1 %v4400_v43, %s5028_s28  ;;  %v4806_v45 = vpop.eup %4805  ;;  %v4402_v10 = vadd.f32 -1.0, %v3539_v9  ;;  %v3573_v35 = vmul.f32 %v3557_v5, %v6618_v21  ;;  %v3574_v41 = vmul.f32 %v3558_v16, %v6622_v53  ;;  %v3563_v3 = vrot.slane %v6482_v52, 7 }
0x1355   :  { %3599 = vrot.lane.b32.xlu0 %v4401_v44, %s5028_s28  ;;  %3595 = vrot.lane.b32.xlu2 %v4399_v4, %s5028_s28  ;;  %v3519_v28 = vmul.f32 %v4806_v45, %v3412_v60  ;;  %vm3524_vm14 = vweird.f32 %v4806_v45  ;;  %v3577_v59 = vmul.f32 %v3561_v14, %v6651_v27  ;;  %v3576_v9 = vmul.f32 %v3560_v40, %v6663_v47 }
0x1356   :  { %vm3525_vm2 = vmor %vm3523_vm15, %vm3524_vm14  ;;  %v3579_v8 = vmul.f32 %v3563_v3, %v6666_v12  ;;  %vm7088_vm7 = vcmask 1041409   ;;  %vm7089_vm4 = vcmask 1042434   ;;  %vm7090_vm8 = vcmask 1043459  }
0x1357   :  { %v3520_v31 = vsub.f32 1.0, %v3519_v28  ;;  %vm7091_vm11 = vcmask 1044484   ;;  %vm7092_vm9 = vcmask 1045509   ;;  %vm7093_vm3 = vcmask 1046534  }
0x1358   :  { %vm7094_vm10 = vcmask 1047559   ;;  %vm7095_vm12 = vcmask 261120  }
0x1359   :  { %v3521_v30 = vmul.f32 %v4806_v45, %v3520_v31 }
0x135b   :  { %v3522_v48 = vadd.f32 %v4806_v45, %v3521_v30 }
0x135c   :  { %3601 = vrot.lane.b32.xlu1 %v4402_v10, %s5028_s28 }
0x135d   :  { %v3526_v57 = vsel %vm3525_vm2, %v4806_v45, %v3522_v48 }
0x135e   :  { %v6673_v11 = vsel %vm3528_vm6, %v3530_v55, %v3526_v57  ;;  %v3564_v55 = vrot.slane %v6490_v34, 7  ;;  %v3559_v57 = vrot.slane %v6472_v61, 7  ;;  %v3562_v34 = vrot.slane %v6509_v23, 7 }
0x135f   :  { %v3540_v42 = vmul.f32 2.0, %v6673_v11 }
0x1360   :  { %v3580_v52 = vmul.f32 %v3564_v55, %v6673_v11  ;;  %v3578_v61 = vmul.f32 %v3562_v34, %v6645_v62 }
0x1361   :  { %v4403_v32 = vadd.f32 -1.0, %v3540_v42 }
0x1363   :  { %3603 = vrot.lane.b32.xlu2 %v4403_v32, %s5028_s28  ;;  %v3575_v32 = vmul.f32 %v3559_v57, %v6627_v38 }
0x13a5   :  { %v3590_v37 = vpop.permute.xlu2 %3589 }
0x13a6   :  { %v3613_v2 = vmul.f32 %v3590_v37, %v6618_v21 }
0x13a8   :  { %3629 = vrot.lane.b32.xlu0 %v3613_v2, %s5035_s2 }
0x13af   :  { %v3596_v18 = vpop.permute.xlu2 %3595 }
0x13b0   :  { %v3616_v7 = vmul.f32 %v3596_v18, %v6663_v47 }
0x13b2   :  { %3635 = vrot.lane.b32.xlu0 %v3616_v7, %s5035_s2 }
0x13bd   :  { %v3604_v33 = vpop.permute.xlu2 %3603 }
0x13be   :  { %v3592_v56 = vpop.permute.xlu1 %3591  ;;  %v3620_v50 = vmul.f32 %v3604_v33, %v6673_v11 }
0x13bf   :  { %v3594_v6 = vpop.permute.xlu0 %3593  ;;  %v3614_v63 = vmul.f32 %v3592_v56, %v6622_v53 }
0x13c0   :  { %v3615_v24 = vmul.f32 %v3594_v6, %v6627_v38  ;;  %3643 = vrot.lane.b32.xlu0 %v3620_v50, %s5035_s2 }
0x13c1   :  { %3631 = vrot.lane.b32.xlu2 %v3614_v63, %s5035_s2 }
0x13c2   :  { %3633 = vrot.lane.b32.xlu1 %v3615_v24, %s5035_s2 }
0x13c6   :  { %v3598_v49 = vpop.permute.xlu1 %3597 }
0x13c7   :  { %v3600_v19 = vpop.permute.xlu0 %3599  ;;  %v3617_v22 = vmul.f32 %v3598_v49, %v6651_v27 }
0x13c8   :  { %v3618_v0 = vmul.f32 %v3600_v19, %v6645_v62 }
0x13c9   :  { %3637 = vrot.lane.b32.xlu2 %v3617_v22, %s5035_s2 }
0x13ca   :  { %3639 = vrot.lane.b32.xlu1 %v3618_v0, %s5035_s2 }
0x13ce   :  { %v3602_v60 = vpop.permute.xlu1 %3601 }
0x13cf   :  { %v3619_v51 = vmul.f32 %v3602_v60, %v6666_v12 }
0x13d1   :  { %3641 = vrot.lane.b32.xlu2 %v3619_v51, %s5035_s2 }
0x141a   :  { %v3630_v1 = vpop.permute.xlu0 %3629 }
0x141b   :  { %v6697_v29 = vadd.f32 %v3630_v1, %v3573_v35  ;;  %v3632_v46 = vpop.permute.xlu2 %3631 }
0x141c   :  { %v6699_v43 = vadd.f32 %v3632_v46, %v3574_v41 }
0x141d   :  { %4807 = vtanh.f32 %v6697_v29 }
0x141e   :  { %4809 = vtanh.f32 %v6699_v43 }
0x1423   :  { %v4808_v44 = vpop.eup %4807  ;;  %v3638_v4 = vpop.permute.xlu2 %3637 }
0x1424   :  { %v4810_v45 = vpop.eup %4809  ;;  %v6707_v28 = vadd.f32 %v3638_v4, %v3577_v59  ;;  %3677 = vrot.lane.b32.xlu1 %v4808_v44, %s5028_s28  ;;  %v3636_v31 = vpop.permute.xlu0 %3635 }
0x1425   :  { %3679 = vrot.lane.b32.xlu0 %v4810_v45, %s5028_s28  ;;  %v6711_v36 = vadd.f32 %v3636_v31, %v3576_v9 }
0x1426   :  { %4811 = vtanh.f32 %v6707_v28 }
0x1427   :  { %4813 = vtanh.f32 %v6711_v36 }
0x142b   :  { %v3642_v10 = vpop.permute.xlu2 %3641 }
0x142c   :  { %v4812_v30 = vpop.eup %4811  ;;  %v6717_v54 = vadd.f32 %v3642_v10, %v3579_v8 }
0x142d   :  { %3685 = vrot.lane.b32.xlu0 %v4812_v30, %s5028_s28  ;;  %v4814_v48 = vpop.eup %4813 }
0x142e   :  { %4815 = vtanh.f32 %v6717_v54  ;;  %3683 = vrot.lane.b32.xlu1 %v4814_v48, %s5028_s28 }
0x1432   :  { %v3644_v42 = vpop.permute.xlu0 %3643 }
0x1433   :  { %v6726_v2 = vadd.f32 %v3644_v42, %v3580_v52 }
0x1434   :  { %v4816_v37 = vpop.eup %4815  ;;  %v3634_v18 = vpop.permute.xlu1 %3633 }
0x1435   :  { %v6728_v7 = vadd.f32 %v3634_v18, %v3575_v32  ;;  %3689 = vrot.lane.b32.xlu0 %v4816_v37, %s5028_s28  ;;  %4817 = vtanh.f32 %v6726_v2 }
0x1437   :  { %4819 = vtanh.f32 %v6728_v7 }
0x143b   :  { %v4818_v33 = vpop.eup %4817 }
0x143c   :  { %v3640_v56 = vpop.permute.xlu1 %3639  ;;  %3691 = vrot.lane.b32.xlu1 %v4818_v33, %s5028_s28 }
0x143d   :  { %v4820_v50 = vpop.eup %4819  ;;  %v6736_v6 = vadd.f32 %v3640_v56, %v3578_v61 }
0x143e   :  { %3681 = vrot.lane.b32.xlu2 %v4820_v50, %s5028_s28 }
0x143f   :  { %4821 = vtanh.f32 %v6736_v6 }
0x1445   :  { %v4822_v63 = vpop.eup %4821 }
0x1446   :  { %3687 = vrot.lane.b32.xlu2 %v4822_v63, %s5028_s28 }
0x1496   :  { %v3678_v24 = vpop.permute.xlu1 %3677 }
0x1497   :  { %v3680_v49 = vpop.permute.xlu0 %3679  ;;  %v3701_v23 = vmul.f32 %v3678_v24, %v6618_v21 }
0x1498   :  { %v3682_v19 = vpop.permute.xlu2 %3681  ;;  %v3702_v22 = vmul.f32 %v3680_v49, %v6622_v53 }
0x1499   :  { %v3703_v0 = vmul.f32 %v3682_v19, %v6627_v38  ;;  %v3709_v60 = vpack.c.bf16 %v3701_v23, %v3701_v23 }
0x149a   :  { %v3710_v51 = vpack.c.bf16 %v3702_v22, %v3702_v22 }
0x149b   :  { %v3711_v16 = vpack.c.bf16 %v3703_v0, %v3703_v0  ;;  %v3725_v41 = vunpack.c.l.b16 %v3709_v60 }
0x149c   :  { %v3726_v46 = vunpack.c.l.b16 %v3710_v51 }
0x149d   :  { %v3727_v44 = vunpack.c.l.b16 %v3711_v16  ;;  %v3733_v21 = vrot.slane %v3725_v41, 6 }
0x149e   :  { %v3734_v45 = vrot.slane %v3726_v46, 5 }
0x149f   :  { %v3686_v5 = vpop.permute.xlu0 %3685  ;;  %v3736_v31 = vrot.slane %v3727_v44, 4 }
0x14a0   :  { %v3684_v35 = vpop.permute.xlu1 %3683  ;;  %v3705_v1 = vmul.f32 %v3686_v5, %v6651_v27  ;;  %v3688_v40 = vpop.permute.xlu2 %3687  ;;  %v3735_v27 = vsel %vm7088_vm7, %v3734_v45, %v3733_v21 }
0x14a1   :  { %v3704_v14 = vmul.f32 %v3684_v35, %v6663_v47  ;;  %v3706_v38 = vmul.f32 %v3688_v40, %v6645_v62  ;;  %v3737_v47 = vsel %vm7089_vm4, %v3736_v31, %v3735_v27 }
0x14a2   :  { %v3713_v4 = vpack.c.bf16 %v3705_v1, %v3705_v1 }
0x14a3   :  { %v3712_v59 = vpack.c.bf16 %v3704_v14, %v3704_v14  ;;  %v3714_v30 = vpack.c.bf16 %v3706_v38, %v3706_v38 }
0x14a4   :  { %v3729_v3 = vunpack.c.l.b16 %v3713_v4 }
0x14a5   :  { %v3728_v53 = vunpack.c.l.b16 %v3712_v59  ;;  %v3730_v52 = vunpack.c.l.b16 %v3714_v30 }
0x14a6   :  { %v3740_v48 = vrot.slane %v3729_v3, 2 }
0x14a7   :  { %v3690_v9 = vpop.permute.xlu0 %3689  ;;  %v3738_v10 = vrot.slane %v3728_v53, 3  ;;  %v3742_v18 = vrot.slane %v3730_v52, 1 }
0x14a8   :  { %v3707_v8 = vmul.f32 %v3690_v9, %v6666_v12 }
0x14a9   :  { %v3739_v57 = vsel %vm7090_vm8, %v3738_v10, %v3737_v47 }
0x14aa   :  { %v3715_v55 = vpack.c.bf16 %v3707_v8, %v3707_v8  ;;  %v3741_v62 = vsel %vm7091_vm11, %v3740_v48, %v3739_v57 }
0x14ab   :  { %v3743_v12 = vsel %vm7092_vm9, %v3742_v18, %v3741_v62 }
0x14ac   :  { %v3731_v37 = vunpack.c.l.b16 %v3715_v55 }
0x14ae   :  { %v3692_v42 = vpop.permute.xlu1 %3691  ;;  %v3744_v33 = vsel %vm7093_vm3, %v3731_v37, %v3743_v12 }
0x14af   :  { %v3708_v32 = vmul.f32 %v3692_v42, %v6673_v11 }
0x14b1   :  { %v3716_v34 = vpack.c.bf16 %v3708_v32, %v3708_v32 }
0x14b3   :  { %v3732_v61 = vunpack.c.l.b16 %v3716_v34 }
0x14b5   :  { %v3745_v56 = vrot.slane %v3732_v61, 7 }
0x14b7   :  { %v3746_v50 = vsel %vm7094_vm10, %v3745_v56, %v3744_v33 }
0x14b8   :  { %v3747_v63 = vpack.c.b16 %v3746_v50, %v3746_v50 }
0x14ba   :  { %3748 = vrot.lane.b32.xlu2 %v3747_v63, %s5035_s2 }
0x1514   :  { %v3749_v24 = vpop.permute.xlu2 %3748 }
0x1515   :  { %4404 = vmatmul.msk.bf16.vlgmr.msra.gmra.mxu0 %vm7095_vm12, %v3749_v24 }
0x1592   :  { %v3762_v11 = vpop.f32.mrf.mxu0 }
0x1593   :  { %v3767_v49 = vrot.slane %v3762_v11, 1  ;;  %v3768_v19 = vrot.slane %v3762_v11, 2  ;;  %v3769_v23 = vrot.slane %v3762_v11, 3  ;;  %v3770_v22 = vrot.slane %v3762_v11, 4 }
0x1594   :  { %v3771_v0 = vrot.slane %v3762_v11, 5  ;;  %v3772_v60 = vrot.slane %v3762_v11, 6  ;;  %v3789_v51 = vadd.f32 %v3762_v11, %v5294_v25  ;;  %v3773_v21 = vrot.slane %v3762_v11, 7 }
0x1595   :  { %v3782_v5 = vadd.f32 %v3767_v49, %v5234_v15  ;;  %v3783_v16 = vadd.f32 %v3768_v19, %v5240_v26  ;;  %v3784_v35 = vadd.f32 %v3769_v23, %v5245_v17  ;;  %v3785_v14 = vadd.f32 %v3770_v22, %v5250_v39 }
0x1596   :  { %v3786_v1 = vadd.f32 %v3771_v0, %v5257_v58  ;;  %v3787_v41 = vadd.f32 %v3772_v60, %v5266_v13  ;;  %v4412_v46 = vmul.f32 -1.442695, %v3789_v51  ;;  %v3788_v13 = vadd.f32 %v3773_v21, %v5289_v20 }
0x1597   :  { %v4405_v40 = vmul.f32 -1.442695, %v3782_v5  ;;  %v4406_v59 = vmul.f32 -1.442695, %v3783_v16  ;;  %v4407_v44 = vmul.f32 -1.442695, %v3784_v35 }
0x1598   :  { %4823 = vpow2.f32 %v4412_v46  ;;  %v4409_v4 = vmul.f32 -1.442695, %v3786_v1  ;;  %v4410_v25 = vmul.f32 -1.442695, %v3787_v41  ;;  %v4408_v26 = vmul.f32 -1.442695, %v3785_v14 }
0x1599   :  { %4825 = vpow2.f32 %v4405_v40  ;;  %v4411_v8 = vmul.f32 -1.442695, %v3788_v13 }
0x159a   :  { %4827 = vpow2.f32 %v4406_v59  ;;  %v3764_v15 = vpop.f32.mrf.mxu0 }
0x159b   :  { %4829 = vpow2.f32 %v4407_v44 }
0x159c   :  { %4831 = vpow2.f32 %v4409_v4 }
0x159d   :  { %4833 = vpow2.f32 %v4410_v25 }
0x159e   :  { %v4824_v17 = vpop.eup %4823  ;;  %4835 = vpow2.f32 %v4408_v26 }
0x159f   :  { %v4826_v58 = vpop.eup %4825  ;;  %v6768_v38 = vadd.f32 1.0, %v4824_v17 }
0x15a0   :  { %v4828_v39 = vpop.eup %4827  ;;  %v6766_v45 = vadd.f32 1.0, %v4826_v58 }
0x15a1   :  { %v4830_v53 = vpop.eup %4829  ;;  %v6770_v9 = vadd.f32 1.0, %v4828_v39 }
0x15a2   :  { %v6772_v31 = vadd.f32 1.0, %v4830_v53  ;;  %4837 = vrcp.f32 %v6766_v45  ;;  %v4832_v3 = vpop.eup %4831  ;;  %v3831_v30 = vand.u32 2147483647, %v6766_v45  ;;  %v3833_v42 = vand.u32 2147483648, %v6766_v45 }
0x15a3   :  { %4839 = vrcp.f32 %v6770_v9  ;;  %v4834_v27 = vpop.eup %4833  ;;  %v3848_v10 = vand.u32 2147483648, %v6770_v9  ;;  %v3846_v48 = vand.u32 2147483647, %v6770_v9  ;;  %v6784_v57 = vadd.f32 1.0, %v4832_v3 }
0x15a4   :  { %4841 = vrcp.f32 %v6772_v31  ;;  %v4836_v20 = vpop.eup %4835  ;;  %v3863_v47 = vand.u32 2147483648, %v6772_v31  ;;  %v6782_v55 = vadd.f32 1.0, %v4834_v27  ;;  %v3861_v52 = vand.u32 2147483647, %v6772_v31 }
0x15a5   :  { %4843 = vrcp.f32 %v6768_v38  ;;  %vm3842_vm13 = vweird.f32 %v6770_v9  ;;  %vm3827_vm5 = vweird.f32 %v6766_v45  ;;  %v6791_v62 = vadd.f32 1.0, %v4836_v20 }
0x15a6   :  { %4845 = vpow2.f32 %v4411_v8  ;;  %vm3857_vm0 = vweird.f32 %v6772_v31  ;;  %v3849_v18 = vor.u32 1.1754944e-38, %v3848_v10  ;;  %v3864_v61 = vor.u32 1.1754944e-38, %v3863_v47 }
0x15a7   :  { %4847 = vrcp.f32 %v6782_v55  ;;  %vm6797_vm1 = vcmp.eq.f32.partialorder %v3846_v48, 8.507059e+37  ;;  %vm6801_vm14 = vcmp.eq.f32.partialorder %v3831_v30, 8.507059e+37  ;;  %v3908_v63 = vand.u32 2147483648, %v6782_v55 }
0x15a8   :  { %v4838_v32 = vpop.eup %4837  ;;  %4849 = vrcp.f32 %v6784_v57  ;;  %vm6809_vm15 = vcmp.eq.f32.partialorder %v3861_v52, 8.507059e+37  ;;  %v3834_v23 = vor.u32 1.1754944e-38, %v3833_v42  ;;  %v3906_v22 = vand.u32 2147483647, %v6782_v55 }
0x15a9   :  { %v4840_v37 = vpop.eup %4839  ;;  %v3823_v34 = vmul.f32 %v4838_v32, %v6766_v45  ;;  %v3891_v60 = vand.u32 2147483647, %v6784_v57  ;;  %v3893_v51 = vand.u32 2147483648, %v6784_v57  ;;  %4851 = vrcp.f32 %v6791_v62 }
0x15aa   :  { %v4842_v12 = vpop.eup %4841  ;;  %v3838_v33 = vmul.f32 %v4840_v37, %v6770_v9  ;;  %vm3843_vm2 = vweird.f32 %v4840_v37  ;;  %vm3828_vm6 = vweird.f32 %v4838_v32  ;;  %vm3902_vm7 = vweird.f32 %v6782_v55 }
0x15ab   :  { %v6806_v24 = vpop.eup %4843  ;;  %v3853_v11 = vmul.f32 %v4842_v12, %v6772_v31  ;;  %v3824_v19 = vsub.f32 1.0, %v3823_v34  ;;  %vm3858_vm4 = vweird.f32 %v4842_v12  ;;  %v3909_v46 = vor.u32 1.1754944e-38, %v3908_v63  ;;  %vm3829_vm9 = vmor %vm3827_vm5, %vm3828_vm6 }
0x15ac   :  { %v3839_v0 = vsub.f32 1.0, %v3838_v33  ;;  %v6817_v5 = vpop.eup %4845  ;;  %v3928_v14 = vmul.f32 %v6806_v24, %v6768_v38  ;;  %vm6824_vm11 = vcmp.eq.f32.partialorder %v3906_v22, 8.507059e+37  ;;  %v3876_v15 = vand.u32 2147483647, %v6791_v62  ;;  %vm3844_vm12 = vmor %vm3842_vm13, %vm3843_vm2 }
0x15ad   :  { %v3854_v16 = vsub.f32 1.0, %v3853_v11  ;;  %v3825_v35 = vmul.f32 %v4838_v32, %v3824_v19  ;;  %v4848_v1 = vpop.eup %4847  ;;  %vm6833_vm10 = vcmp.eq.f32.partialorder %v3891_v60, 8.507059e+37  ;;  %v3894_v58 = vor.u32 1.1754944e-38, %v3893_v51  ;;  %vm3859_vm5 = vmor %vm3857_vm0, %vm3858_vm4 }
0x15ae   :  { %v3840_v41 = vmul.f32 %v4840_v37, %v3839_v0  ;;  %v4850_v40 = vpop.eup %4849  ;;  %v3898_v4 = vmul.f32 %v4848_v1, %v6782_v55  ;;  %vm3903_vm3 = vweird.f32 %v4848_v1  ;;  %v3929_v20 = vsub.f32 1.0, %v3928_v14 }
0x15af   :  { %v3855_v59 = vmul.f32 %v4842_v12, %v3854_v16  ;;  %v3826_v44 = vadd.f32 %v4838_v32, %v3825_v35  ;;  %v3883_v26 = vmul.f32 %v4850_v40, %v6784_v57  ;;  %vm3888_vm8 = vweird.f32 %v4850_v40  ;;  %v4852_v3 = vpop.eup %4851  ;;  %vm3904_vm13 = vmor %vm3902_vm7, %vm3903_vm3 }
0x15b0   :  { %v3841_v21 = vadd.f32 %v4840_v37, %v3840_v41  ;;  %v3899_v53 = vsub.f32 1.0, %v3898_v4  ;;  %v3868_v42 = vmul.f32 %v4852_v3, %v6791_v62  ;;  %vm7106_vm0 = vweird.f32 %v6784_v57 }
0x15b1   :  { %v3856_v13 = vadd.f32 %v4842_v12, %v3855_v59  ;;  %v3830_v39 = vsel %vm3829_vm9, %v4838_v32, %v3826_v44  ;;  %v3884_v27 = vsub.f32 1.0, %v3883_v26  ;;  %vm3872_vm2 = vweird.f32 %v6791_v62 }
0x15b2   :  { %v3845_v45 = vsel %vm3844_vm12, %v4840_v37, %v3841_v21  ;;  %v6845_v8 = vsel %vm6801_vm14, %v3834_v23, %v3830_v39  ;;  %v3900_v47 = vmul.f32 %v4848_v1, %v3899_v53  ;;  %v3869_v56 = vsub.f32 1.0, %v3868_v42 }
0x15b3   :  { %v3860_v10 = vsel %vm3859_vm5, %v4842_v12, %v3856_v13  ;;  %v6849_v9 = vsel %vm6797_vm1, %v3849_v18, %v3845_v45  ;;  %v3942_v30 = vmul.f32 2.0, %v6845_v8  ;;  %v3885_v52 = vmul.f32 %v4850_v40, %v3884_v27  ;;  %vm3889_vm1 = vmor %vm7106_vm0, %vm3888_vm8 }
0x15b4   :  { %v6854_v48 = vsel %vm6809_vm15, %v3864_v61, %v3860_v10  ;;  %v3943_v31 = vmul.f32 2.0, %v6849_v9  ;;  %v3901_v34 = vadd.f32 %v4848_v1, %v3900_v47  ;;  %v3878_v12 = vand.u32 2147483648, %v6791_v62 }
0x15b5   :  { %v3944_v32 = vmul.f32 2.0, %v6854_v48  ;;  %v4413_v37 = vadd.f32 -1.0, %v3942_v30  ;;  %v3886_v33 = vadd.f32 %v4850_v40, %v3885_v52  ;;  %v3930_v61 = vmul.f32 %v6806_v24, %v3929_v20 }
0x15b6   :  { %v4414_v18 = vadd.f32 -1.0, %v3943_v31  ;;  %v3905_v63 = vsel %vm3904_vm13, %v4848_v1, %v3901_v34  ;;  %vm3873_vm14 = vweird.f32 %v4852_v3  ;;  %vm3933_vm15 = vweird.f32 %v6806_v24 }
0x15b7   :  { %v4415_v50 = vadd.f32 -1.0, %v3944_v32  ;;  %3998 = vrot.lane.b32.xlu1 %v4413_v37, %s5028_s28  ;;  %v6872_v55 = vsel %vm6824_vm11, %v3909_v46, %v3905_v63  ;;  %v3890_v11 = vsel %vm3889_vm1, %v4850_v40, %v3886_v33  ;;  %v3870_v49 = vmul.f32 %v4852_v3, %v3869_v56  ;;  %vm3874_vm6 = vmor %vm3872_vm2, %vm3873_vm14 }
0x15b8   :  { %4000 = vrot.lane.b32.xlu0 %v4414_v18, %s5028_s28  ;;  %v3931_v19 = vadd.f32 %v6806_v24, %v3930_v61  ;;  %v6878_v23 = vsel %vm6833_vm10, %v3894_v58, %v3890_v11  ;;  %v3938_v57 = vand.u32 2147483648, %v6768_v38  ;;  %v3820_v22 = vadd.f32 1.0, %v6817_v5 }
0x15b9   :  { %4002 = vrot.lane.b32.xlu2 %v4415_v50, %s5028_s28  ;;  %v3946_v0 = vmul.f32 2.0, %v6878_v23  ;;  %v3871_v60 = vadd.f32 %v4852_v3, %v3870_v49  ;;  %vm3932_vm7 = vweird.f32 %v6768_v38  ;;  %v3936_v51 = vand.u32 2147483647, %v6768_v38 }
0x15ba   :  { %v3947_v16 = vmul.f32 2.0, %v6872_v55  ;;  %v3879_v35 = vor.u32 1.1754944e-38, %v3878_v12  ;;  %vm3934_vm4 = vmor %vm3932_vm7, %vm3933_vm15  ;;  %4853 = vrcp.f32 %v3820_v22  ;;  %vm3877_vm8 = vcmp.eq.f32.partialorder %v3876_v15, 8.507059e+37 }
0x15bb   :  { %v3875_v62 = vsel %vm3874_vm6, %v4852_v3, %v3871_v60  ;;  %v3935_v1 = vsel %vm3934_vm4, %v6806_v24, %v3931_v19  ;;  %v3939_v41 = vor.u32 1.1754944e-38, %v3938_v57  ;;  %v4417_v46 = vadd.f32 -1.0, %v3946_v0 }
0x15bc   :  { %v6890_v5 = vsel %vm3877_vm8, %v3879_v35, %v3875_v62  ;;  %vm3937_vm11 = vcmp.eq.f32.partialorder %v3936_v51, 8.507059e+37  ;;  %v4418_v40 = vadd.f32 -1.0, %v3947_v16  ;;  %v3923_v15 = vand.u32 2147483648, %v3820_v22 }
0x15bd   :  { %v3945_v14 = vmul.f32 2.0, %v6890_v5  ;;  %v6893_v38 = vsel %vm3937_vm11, %v3939_v41, %v3935_v1  ;;  %v3921_v17 = vand.u32 2147483647, %v3820_v22  ;;  %vm3917_vm3 = vweird.f32 %v3820_v22 }
0x15be   :  { %v3949_v24 = vmul.f32 2.0, %v6893_v38  ;;  %v3924_v13 = vor.u32 1.1754944e-38, %v3923_v15  ;;  %v3966_v50 = vrot.slane %v6697_v29, 7  ;;  %v3968_v63 = vrot.slane %v6728_v7, 7 }
0x15bf   :  { %v4416_v59 = vadd.f32 -1.0, %v3945_v14  ;;  %vm3922_vm12 = vcmp.eq.f32.partialorder %v3921_v17, 8.507059e+37  ;;  %v3971_v60 = vrot.slane %v6736_v6, 7  ;;  %v3969_v51 = vrot.slane %v6711_v36, 7 }
0x15c0   :  { %4006 = vrot.lane.b32.xlu0 %v4417_v46, %s5028_s28  ;;  %v4854_v44 = vpop.eup %4853  ;;  %v4420_v21 = vadd.f32 -1.0, %v3949_v24  ;;  %v3982_v11 = vmul.f32 %v3966_v50, %v6845_v8  ;;  %v3984_v19 = vmul.f32 %v3968_v63, %v6854_v48  ;;  %v3967_v36 = vrot.slane %v6699_v43, 7 }
0x15c1   :  { %4008 = vrot.lane.b32.xlu2 %v4418_v40, %s5028_s28  ;;  %4004 = vrot.lane.b32.xlu1 %v4416_v59, %s5028_s28  ;;  %v3913_v4 = vmul.f32 %v4854_v44, %v3820_v22  ;;  %vm3918_vm9 = vweird.f32 %v4854_v44  ;;  %v3987_v35 = vmul.f32 %v3971_v60, %v6872_v55  ;;  %v3985_v7 = vmul.f32 %v3969_v51, %v6890_v5 }
0x15c2   :  { %vm3919_vm10 = vmor %vm3917_vm3, %vm3918_vm9  ;;  %v3972_v40 = vrot.slane %v6717_v54, 7  ;;  %v3973_v54 = vrot.slane %v6726_v2, 7  ;;  %v4442_v2 = vld [vmem:[#allocation8 + $0x70] sm:$0xff]  ;;  %vm7107_vm5 = vcmask 1041409   ;;  %vm7108_vm13 = vcmask 1042434  }
0x15c3   :  { %v3914_v25 = vsub.f32 1.0, %v3913_v4  ;;  %vm7109_vm0 = vcmask 1043459   ;;  %vm7110_vm1 = vcmask 1044484   ;;  %vm7111_vm14 = vcmask 1045509  }
0x15c4   :  { %vm7112_vm15 = vcmask 1046534   ;;  %vm7113_vm2 = vcmask 1047559   ;;  %vm7114_vm6 = vcmask 261120   ;;  %vm7115_vm7 = vcmask 64512  }
0x15c5   :  { %v3915_v26 = vmul.f32 %v4854_v44, %v3914_v25 }
0x15c7   :  { %v3916_v58 = vadd.f32 %v4854_v44, %v3915_v26 }
0x15c8   :  { %4012 = vrot.lane.b32.xlu0 %v4420_v21, %s5028_s28  ;;  %v3970_v21 = vrot.slane %v6707_v28, 7 }
0x15c9   :  { %v3920_v39 = vsel %vm3919_vm10, %v4854_v44, %v3916_v58  ;;  %v3983_v44 = vmul.f32 %v3967_v36, %v6849_v9 }
0x15ca   :  { %v6900_v53 = vsel %vm3922_vm12, %v3924_v13, %v3920_v39  ;;  %v3986_v26 = vmul.f32 %v3970_v21, %v6878_v23  ;;  %v3989_v39 = vmul.f32 %v3973_v54, %v6893_v38 }
0x15cb   :  { %v3948_v3 = vmul.f32 2.0, %v6900_v53  ;;  %v3988_v59 = vmul.f32 %v3972_v40, %v6900_v53 }
0x15cd   :  { %v4419_v45 = vadd.f32 -1.0, %v3948_v3 }
0x15cf   :  { %4010 = vrot.lane.b32.xlu1 %v4419_v45, %s5028_s28 }
0x1613   :  { %v4003_v27 = vpop.permute.xlu2 %4002 }
0x1614   :  { %v4024_v20 = vmul.f32 %v4003_v27, %v6854_v48 }
0x1616   :  { %4042 = vrot.lane.b32.xlu0 %v4024_v20, %s5035_s2 }
0x161b   :  { %v4009_v10 = vpop.permute.xlu2 %4008 }
0x161c   :  { %v4027_v30 = vmul.f32 %v4009_v10, %v6872_v55 }
0x161e   :  { %4048 = vrot.lane.b32.xlu0 %v4027_v30, %s5035_s2 }
0x1629   :  { %v3999_v47 = vpop.permute.xlu1 %3998 }
0x162a   :  { %v4001_v31 = vpop.permute.xlu0 %4000  ;;  %v4022_v52 = vmul.f32 %v3999_v47, %v6845_v8  ;;  %v4443_v47 = vld [vmem:[#allocation8 + $0x78] sm:$0xff] }
0x162b   :  { %v4023_v42 = vmul.f32 %v4001_v31, %v6849_v9  ;;  %4181 = vmatpush.bf16.msra.mxu3 %v4443_v47 }
0x162c   :  { %4038 = vrot.lane.b32.xlu2 %v4022_v52, %s5035_s2 }
0x162d   :  { %4040 = vrot.lane.b32.xlu1 %v4023_v42, %s5035_s2 }
0x162f   :  { %4182 = vmatpush.bf16.msra.mxu3 %v4442_v2 }
0x1632   :  { %v4007_v32 = vpop.permute.xlu0 %4006 }
0x1633   :  { %v4026_v37 = vmul.f32 %v4007_v32, %v6878_v23  ;;  %v4005_v34 = vpop.permute.xlu1 %4004 }
0x1634   :  { %v4025_v12 = vmul.f32 %v4005_v34, %v6890_v5 }
0x1635   :  { %4046 = vrot.lane.b32.xlu1 %v4026_v37, %s5035_s2 }
0x1636   :  { %4044 = vrot.lane.b32.xlu2 %v4025_v12, %s5035_s2 }
0x163a   :  { %v4013_v18 = vpop.permute.xlu0 %4012 }
0x163b   :  { %v4029_v33 = vmul.f32 %v4013_v18, %v6893_v38 }
0x163d   :  { %4052 = vrot.lane.b32.xlu1 %v4029_v33, %s5035_s2 }
0x1641   :  { %v4011_v56 = vpop.permute.xlu1 %4010 }
0x1642   :  { %v4028_v61 = vmul.f32 %v4011_v56, %v6900_v53 }
0x1644   :  { %4050 = vrot.lane.b32.xlu2 %v4028_v61, %s5035_s2 }
0x1686   :  { %v4039_v49 = vpop.permute.xlu2 %4038 }
0x1687   :  { %v4062_v57 = vadd.f32 %v4039_v49, %v3982_v11 }
0x1688   :  { %v4043_v22 = vpop.permute.xlu0 %4042 }
0x1689   :  { %v4064_v0 = vadd.f32 %v4043_v22, %v3984_v19  ;;  %4855 = vtanh.f32 %v4062_v57 }
0x168b   :  { %4857 = vtanh.f32 %v4064_v0 }
0x168f   :  { %v4856_v16 = vpop.eup %4855 }
0x1690   :  { %v4049_v29 = vpop.permute.xlu0 %4048  ;;  %4086 = vrot.lane.b32.xlu0 %v4856_v16, %s5028_s28  ;;  %v4045_v41 = vpop.permute.xlu2 %4044 }
0x1691   :  { %v4858_v62 = vpop.eup %4857  ;;  %v4067_v1 = vadd.f32 %v4049_v29, %v3987_v35  ;;  %v4065_v46 = vadd.f32 %v4045_v41, %v3985_v7 }
0x1692   :  { %4090 = vrot.lane.b32.xlu1 %v4858_v62, %s5028_s28 }
0x1693   :  { %4859 = vtanh.f32 %v4067_v1 }
0x1694   :  { %4861 = vtanh.f32 %v4065_v46 }
0x1699   :  { %v4860_v14 = vpop.eup %4859 }
0x169a   :  { %v4862_v6 = vpop.eup %4861  ;;  %4096 = vrot.lane.b32.xlu1 %v4860_v14, %s5028_s28 }
0x169b   :  { %4092 = vrot.lane.b32.xlu0 %v4862_v6, %s5028_s28 }
0x169e   :  { %v4051_v24 = vpop.permute.xlu2 %4050 }
0x169f   :  { %v4041_v4 = vpop.permute.xlu1 %4040  ;;  %v4068_v25 = vadd.f32 %v4051_v24, %v3988_v59 }
0x16a0   :  { %v4063_v15 = vadd.f32 %v4041_v4, %v3983_v44 }
0x16a1   :  { %4863 = vtanh.f32 %v4068_v25  ;;  %v4873_v25 = vld [vmem:[#allocation10] sm:$0xff] }
0x16a2   :  { %4865 = vtanh.f32 %v4063_v15  ;;  %v4126_v15 = vperm.slane %v4873_v25, 4 }
0x16a7   :  { %v4047_v17 = vpop.permute.xlu1 %4046  ;;  %v4864_v58 = vpop.eup %4863 }
0x16a8   :  { %v4066_v13 = vadd.f32 %v4047_v17, %v3986_v26  ;;  %v4866_v43 = vpop.eup %4865  ;;  %4098 = vrot.lane.b32.xlu0 %v4864_v58, %s5028_s28 }
0x16a9   :  { %4088 = vrot.lane.b32.xlu2 %v4866_v43, %s5028_s28 }
0x16aa   :  { %4867 = vtanh.f32 %v4066_v13 }
0x16af   :  { %v4053_v3 = vpop.permute.xlu1 %4052 }
0x16b0   :  { %v4868_v45 = vpop.eup %4867  ;;  %v4069_v27 = vadd.f32 %v4053_v3, %v3989_v39 }
0x16b1   :  { %4094 = vrot.lane.b32.xlu2 %v4868_v45, %s5028_s28 }
0x16b2   :  { %4869 = vtanh.f32 %v4069_v27 }
0x16b8   :  { %v4870_v28 = vpop.eup %4869 }
0x16b9   :  { %4100 = vrot.lane.b32.xlu2 %v4870_v28, %s5028_s28 }
0x1702   :  { %v4087_v20 = vpop.permute.xlu0 %4086 }
0x1703   :  { %v4089_v10 = vpop.permute.xlu2 %4088  ;;  %v4110_v31 = vmul.f32 %v4087_v20, %v6845_v8 }
0x1704   :  { %v4091_v30 = vpop.permute.xlu1 %4090  ;;  %v4111_v52 = vmul.f32 %v4089_v10, %v6849_v9 }
0x1705   :  { %v4112_v42 = vmul.f32 %v4091_v30, %v6854_v48  ;;  %v4118_v32 = vpack.c.bf16 %v4110_v31, %v4110_v31 }
0x1706   :  { %v4119_v37 = vpack.c.bf16 %v4111_v52, %v4111_v52 }
0x1707   :  { %v4120_v33 = vpack.c.bf16 %v4112_v42, %v4112_v42  ;;  %v4135_v61 = vunpack.c.l.b16 %v4118_v32 }
0x1708   :  { %v4136_v50 = vunpack.c.l.b16 %v4119_v37 }
0x1709   :  { %v4137_v11 = vunpack.c.l.b16 %v4120_v33  ;;  %v4143_v49 = vrot.slane %v4135_v61, 7 }
0x170a   :  { %v4144_v19 = vrot.slane %v4136_v50, 6 }
0x170b   :  { %v4095_v12 = vpop.permute.xlu2 %4094  ;;  %v4146_v22 = vrot.slane %v4137_v11, 5 }
0x170c   :  { %v4114_v56 = vmul.f32 %v4095_v12, %v6878_v23  ;;  %v4097_v8 = vpop.permute.xlu1 %4096 }
0x170d   :  { %v4093_v34 = vpop.permute.xlu0 %4092  ;;  %v4115_v48 = vmul.f32 %v4097_v8, %v6872_v55 }
0x170e   :  { %v4113_v18 = vmul.f32 %v4093_v34, %v6890_v5  ;;  %v4122_v9 = vpack.c.bf16 %v4114_v56, %v4114_v56  ;;  %v4145_v5 = vsel %vm7107_vm5, %v4144_v19, %v4143_v49 }
0x170f   :  { %v4123_v16 = vpack.c.bf16 %v4115_v48, %v4115_v48  ;;  %v4147_v29 = vsel %vm7108_vm13, %v4146_v22, %v4145_v5 }
0x1710   :  { %v4121_v63 = vpack.c.bf16 %v4113_v18, %v4113_v18  ;;  %v4139_v0 = vunpack.c.l.b16 %v4122_v9 }
0x1711   :  { %v4140_v41 = vunpack.c.l.b16 %v4123_v16 }
0x1712   :  { %v4138_v57 = vunpack.c.l.b16 %v4121_v63  ;;  %v4150_v7 = vrot.slane %v4139_v0, 3 }
0x1713   :  { %v4101_v60 = vpop.permute.xlu2 %4100  ;;  %v4152_v36 = vrot.slane %v4140_v41, 2 }
0x1714   :  { %v4148_v51 = vrot.slane %v4138_v57, 4  ;;  %v4117_v23 = vmul.f32 %v4101_v60, %v6893_v38 }
0x1716   :  { %v4149_v1 = vsel %vm7109_vm0, %v4148_v51, %v4147_v29  ;;  %v4125_v55 = vpack.c.bf16 %v4117_v23, %v4117_v23 }
0x1717   :  { %v4151_v14 = vsel %vm7110_vm1, %v4150_v7, %v4149_v1 }
0x1718   :  { %v4153_v59 = vsel %vm7111_vm14, %v4152_v36, %v4151_v14  ;;  %v4142_v44 = vunpack.c.l.b16 %v4125_v55 }
0x171a   :  { %v4099_v35 = vpop.permute.xlu0 %4098 }
0x171b   :  { %v4116_v62 = vmul.f32 %v4099_v35, %v6900_v53 }
0x171d   :  { %v4124_v46 = vpack.c.bf16 %v4116_v62, %v4116_v62 }
0x171f   :  { %v4141_v6 = vunpack.c.l.b16 %v4124_v46 }
0x1721   :  { %v4154_v40 = vrot.slane %v4141_v6, 1 }
0x1723   :  { %v4155_v38 = vsel %vm7112_vm15, %v4154_v40, %v4153_v59 }
0x1724   :  { %v4156_v24 = vsel %vm7113_vm2, %v4142_v44, %v4155_v38 }
0x1725   :  { %v4157_v4 = vpack.c.b16 %v4156_v24, %v4156_v24 }
0x1727   :  { %4158 = vrot.lane.b32.xlu1 %v4157_v4, %s5035_s2 }
0x1799   :  { %v4159_v53 = vpop.permute.xlu1 %4158 }
0x179a   :  { %4429 = vmatmul.msk.bf16.vlgmr.msra.gmra.mxu3 %vm7114_vm6, %v4159_v53 }
0x181d   :  { %v4184_v21 = vpop.f32.mrf.mxu3 }
0x181e   :  { %v4185_v26 = vadd.f32 %v4184_v21, %v4126_v15 }
0x1820   :  { %4188 = vst.msk [vmem:[#allocation11] sm:$0xff] %vm7115_vm7, %v4185_v26 }
0x1821   :  { %4199 = dma.vmem_to_hbm [thread:$0]  %s4195_s19, 128, %s4197_s22, [#allocation4]  }
0x1825   :  { %v4186_v17 = vpop.f32.mrf.mxu3 }
0x1826   :  { %5024 = dma.done.wait [#allocation4], 128  }
0x1827   :  { %5025 = vsyncadd [#allocation4], 4294967168 }
0x1828   :  { %4204 = vsyncpa [#allocation3], 1 }
0x1829   :  { %4205 = vsyncpa [#allocation6], 1 }
0x182a   :  { %4206 = vsyncpa [#allocation9], 1 }
0x182b   :  { %4207 = vsyncpa [#allocation4], 1 }

</bundles_post_ra>
